<compile_context>
chip_gen: v7x
topology: tpu7x:2x2x1
jax: 0.10.0
libtpu: 0.0.40
codegen_flags: <defaults>
</compile_context>

<pallas_src>
import numpy as np
import jax
import jax.numpy as jnp
from jax.experimental import pallas as pl
from jax.experimental.pallas import tpu as pltpu

IN_FEATURES = 7 * 7 * 256          # 12544
H1, H2, OUT = 256, 64, 10
K_CHUNK = 6272                     # 12544 = 2 * 6272 ; 6272 = 49 * 128 (lane aligned)
MAX_BATCH_TILE = 128               # batch tile for the "parallel" grid axis


# ---------------------------------------------------------------------------
# Fused MLP kernel: grid = (batch tiles [parallel], fc4 K-chunks [arbitrary]).
# ---------------------------------------------------------------------------
def _mlp_kernel(x_ref, w4_ref, b4_ref, w5_ref, b5_ref, w6_ref, b6_ref,
                o_ref, acc_ref):
    # x_ref  : (TM, K_CHUNK)  bf16   current (batch-tile, K) slice of the input
    # w4_ref : (K_CHUNK, 256) bf16   current K slice of fc4 weight (streamed)
    # b4_ref : (1, 256)  f32
    # w5_ref : (256, 64) f32, b5_ref: (1, 64) f32
    # w6_ref : (64, 10)  f32, b6_ref: (1, 10) f32
    # o_ref  : (TM, 10)  f32         logits for this batch tile
    # acc_ref: (TM, 256) f32 VMEM    fc4 accumulator (resident across K axis)
    k = pl.program_id(1)

    @pl.when(k == 0)
    def _init():
        # Fold the fc4 bias into the accumulator init (single broadcast).
        acc_ref[...] = jnp.broadcast_to(b4_ref[...], acc_ref.shape)

    # Partial fc4: bf16 x bf16 MXU matmul, f32 accumulation.
    acc_ref[...] += jnp.dot(x_ref[...], w4_ref[...],
                            preferred_element_type=jnp.float32)

    @pl.when(k == pl.num_programs(1) - 1)
    def _finish():
        h1 = jnp.maximum(acc_ref[...], 0.0)                         # relu(fc4)
        h2 = jnp.dot(h1, w5_ref[...],
                     preferred_element_type=jnp.float32) + b5_ref[...]
        h2 = jnp.maximum(h2, 0.0)                                   # relu(fc5)
        out = jnp.dot(h2, w6_ref[...],
                      preferred_element_type=jnp.float32) + b6_ref[...]
        o_ref[...] = out.astype(o_ref.dtype)                        # fc6 (no relu)


# ---------------------------------------------------------------------------
# Wrapper: flattening, bf16 cast, batch padding, pallas_call plumbing.
# Weights are stored (in, out) so there are no in-kernel transposes.
# ---------------------------------------------------------------------------
def mlp_block2_forward(x, w4, b4, w5, b5, w6, b6):
    """Pallas implementation of MLPBlock2.forward.

    x: any shape with IN_FEATURES trailing elements per sample
       (e.g. (N, 256, 7, 7) or (N, 12544)); returns (N, 10) float32.
    """
    xf = x.reshape(-1, IN_FEATURES)                      # == x.view(-1, 7*7*256)
    n = xf.shape[0]

    kc = IN_FEATURES // K_CHUNK                          # 2 reduction steps
    assert kc * K_CHUNK == IN_FEATURES

    # Batch tiling: tile of up to 128 rows, padded so the grid is exact.
    if n >= MAX_BATCH_TILE:
        tm = MAX_BATCH_TILE
        n_pad = pl.cdiv(n, tm) * tm
    else:
        tm = n                                           # block == full array dim
        n_pad = n
    n_tiles = n_pad // tm

    # Cast the big streamed operands to bf16 OUTSIDE the kernel so the HBM
    # stream itself is half-width.  Small residents stay f32.
    xf_bf = xf.astype(jnp.bfloat16)
    if n_pad != n:
        xf_bf = jnp.pad(xf_bf, ((0, n_pad - n), (0, 0)))
    w4_bf = w4.astype(jnp.bfloat16)

    cost = pl.CostEstimate(
        flops=2 * n_pad * (IN_FEATURES * H1 + H1 * H2 + H2 * OUT),
        transcendentals=0,
        bytes_accessed=(xf_bf.size * 2                    # input stream (bf16)
                        + n_tiles * w4_bf.size * 2        # w4 re-streamed per batch tile
                        + (w5.size + w6.size + H1 + H2 + OUT) * 4
                        + n_pad * OUT * 4),               # output
    )

    out = pl.pallas_call(
        _mlp_kernel,
        out_shape=jax.ShapeDtypeStruct((n_pad, OUT), jnp.float32),
        grid=(n_tiles, kc),
        in_specs=[
            pl.BlockSpec((tm, K_CHUNK), lambda b, k: (b, k)),     # x slice
            pl.BlockSpec((K_CHUNK, H1), lambda b, k: (k, 0)),     # w4 slice (streamed)
            pl.BlockSpec((1, H1), lambda b, k: (0, 0)),           # b4
            pl.BlockSpec((H1, H2), lambda b, k: (0, 0)),          # w5 (resident)
            pl.BlockSpec((1, H2), lambda b, k: (0, 0)),           # b5
            pl.BlockSpec((H2, OUT), lambda b, k: (0, 0)),         # w6 (resident)
            pl.BlockSpec((1, OUT), lambda b, k: (0, 0)),          # b6
        ],
        out_specs=pl.BlockSpec((tm, OUT), lambda b, k: (b, 0)),   # written on last K step
        scratch_shapes=[pltpu.VMEM((tm, H1), jnp.float32)],       # fc4 accumulator
        compiler_params=pltpu.CompilerParams(
            dimension_semantics=("parallel", "arbitrary"),        # batch || , K reduction
            vmem_limit_bytes=32 * 1024 * 1024),
        cost_estimate=cost,
    )(xf_bf, w4_bf, b4.reshape(1, H1), w5, b5.reshape(1, H2),
      w6, b6.reshape(1, OUT))

    return out[:n]


# ---------------------------------------------------------------------------
# Pure-JAX reference (correctness check only; full f32)
# ---------------------------------------------------------------------------
def _reference(x, w4, b4, w5, b5, w6, b6):
    xf = x.reshape(-1, IN_FEATURES)
    h1 = jnp.maximum(xf @ w4 + b4, 0.0)
    h2 = jnp.maximum(h1 @ w5 + b5, 0.0)
    return h2 @ w6 + b6


if __name__ == "__main__":
    key = jax.random.PRNGKey(0)
    k1, k2, k3, k4, k5, k6, k7 = jax.random.split(key, 7)

    # Deterministic synthetic parameters (shapes from MLPBlock2.__init__),
    # stored as (in, out) for the kernel.
    w4 = jax.random.normal(k1, (IN_FEATURES, H1), jnp.float32) * 0.01
    b4 = jax.random.normal(k2, (H1,), jnp.float32) * 0.05
    w5 = jax.random.normal(k3, (H1, H2), jnp.float32) * 0.05
    b5 = jax.random.normal(k4, (H2,), jnp.float32) * 0.05
    w6 = jax.random.normal(k5, (H2, OUT), jnp.float32) * 0.05
    b6 = jax.random.normal(k6, (OUT,), jnp.float32) * 0.05

    # Small input consistent with the module: N=2 samples of (256, 7, 7),
    # flattened inside forward exactly like x.view(-1, 7*7*256).
    x = jax.random.normal(k7, (2, 256, 7, 7), jnp.float32)

    out = jax.block_until_ready(mlp_block2_forward(x, w4, b4, w5, b5, w6, b6))
    assert out.shape == (2, OUT), out.shape

    ref = jax.block_until_ready(_reference(x, w4, b4, w5, b5, w6, b6))
    np.testing.assert_allclose(np.asarray(out), np.asarray(ref),
                               rtol=1e-2, atol=1e-2)
    print("KERNEL_OK")
</pallas_src>

<mosaic_0001>
module attributes {stable_mosaic.version = 11 : i64} {
  func.func @_mlp_kernel(%arg0: i32, %arg1: i32, %arg2: memref<2x6272xbf16, #tpu.memory_space<vmem>>, %arg3: memref<6272x256xbf16, #tpu.memory_space<vmem>>, %arg4: memref<1x256xf32, #tpu.memory_space<vmem>>, %arg5: memref<256x64xf32, #tpu.memory_space<vmem>>, %arg6: memref<1x64xf32, #tpu.memory_space<vmem>>, %arg7: memref<64x10xf32, #tpu.memory_space<vmem>>, %arg8: memref<1x10xf32, #tpu.memory_space<vmem>>, %arg9: memref<2x10xf32, #tpu.memory_space<vmem>>, %arg10: memref<2x256xf32, #tpu.memory_space<vmem>>) attributes {dimension_semantics = [#tpu.dimension_semantics<parallel>, #tpu.dimension_semantics<arbitrary>], iteration_bounds = array<i64: 1, 2>, scalar_prefetch = 0 : i64, scratch_operands = 1 : i64, tpu.core_type = #tpu.core_type<tc>, window_params = [{transform_indices = @transform_0, window_bounds = array<i64: 2, 6272>}, {transform_indices = @transform_1, window_bounds = array<i64: 6272, 256>}, {pipeline_mode = #tpu.pipeline_mode<synchronous>, transform_indices = @transform_2, window_bounds = array<i64: 1, 256>}, {pipeline_mode = #tpu.pipeline_mode<synchronous>, transform_indices = @transform_3, window_bounds = array<i64: 256, 64>}, {pipeline_mode = #tpu.pipeline_mode<synchronous>, transform_indices = @transform_4, window_bounds = array<i64: 1, 64>}, {pipeline_mode = #tpu.pipeline_mode<synchronous>, transform_indices = @transform_5, window_bounds = array<i64: 64, 10>}, {pipeline_mode = #tpu.pipeline_mode<synchronous>, transform_indices = @transform_6, window_bounds = array<i64: 1, 10>}, {transform_indices = @transform_7, window_bounds = array<i64: 2, 10>}]} {
    %c0_i32 = arith.constant 0 : i32
    %0 = arith.cmpi eq, %arg1, %c0_i32 : i32
    %1 = arith.extui %0 : i1 to i32
    %c0_i32_0 = arith.constant 0 : i32
    %2 = arith.cmpi ne, %1, %c0_i32_0 : i32
    scf.if %2 {
      %c0_9 = arith.constant 0 : index
      %c0_10 = arith.constant 0 : index
      %12 = vector.load %arg4[%c0_9, %c0_10] : memref<1x256xf32, #tpu.memory_space<vmem>>, vector<1x256xf32>
      %13 = vector.shape_cast %12 : vector<1x256xf32> to vector<1x256xf32>
      %14 = vector.broadcast %13 : vector<1x256xf32> to vector<2x256xf32>
      %c0_11 = arith.constant 0 : index
      %c0_12 = arith.constant 0 : index
      %15 = vector.load %arg10[%c0_11, %c0_12] : memref<2x256xf32, #tpu.memory_space<vmem>>, vector<2x256xf32>
      tpu.vector_store %arg10[%c0_11, %c0_12], %14 {strides = array<i32>} : memref<2x256xf32, #tpu.memory_space<vmem>>, vector<2x256xf32>,
    } else {
    }
    %c0 = arith.constant 0 : index
    %c0_1 = arith.constant 0 : index
    %3 = vector.load %arg10[%c0, %c0_1] : memref<2x256xf32, #tpu.memory_space<vmem>>, vector<2x256xf32>
    %c0_2 = arith.constant 0 : index
    %c0_3 = arith.constant 0 : index
    %4 = vector.load %arg2[%c0_2, %c0_3] : memref<2x6272xbf16, #tpu.memory_space<vmem>>, vector<2x6272xbf16>
    %c0_4 = arith.constant 0 : index
    %c0_5 = arith.constant 0 : index
    %5 = vector.load %arg3[%c0_4, %c0_5] : memref<6272x256xbf16, #tpu.memory_space<vmem>>, vector<6272x256xbf16>
    %cst = arith.constant dense<0.000000e+00> : vector<2x256xf32>
    %6 = tpu.matmul %4, %5, %cst {dimension_numbers = #tpu.dot_dimension_numbers<[1], [0], [0], [1], [0, 0, 1, 1], [], []>} : vector<2x6272xbf16>, vector<6272x256xbf16>, vector<2x256xf32> -> vector<2x256xf32>
    %7 = arith.addf %3, %6 : vector<2x256xf32>
    %c0_6 = arith.constant 0 : index
    %c0_7 = arith.constant 0 : index
    %8 = vector.load %arg10[%c0_6, %c0_7] : memref<2x256xf32, #tpu.memory_space<vmem>>, vector<2x256xf32>
    tpu.vector_store %arg10[%c0_6, %c0_7], %7 {strides = array<i32>} : memref<2x256xf32, #tpu.memory_space<vmem>>, vector<2x256xf32>,
    %c1_i32 = arith.constant 1 : i32
    %9 = arith.cmpi eq, %arg1, %c1_i32 : i32
    %10 = arith.extui %9 : i1 to i32
    %c0_i32_8 = arith.constant 0 : i32
    %11 = arith.cmpi ne, %10, %c0_i32_8 : i32
    scf.if %11 {
      %c0_9 = arith.constant 0 : index
      %c0_10 = arith.constant 0 : index
      %12 = vector.load %arg10[%c0_9, %c0_10] : memref<2x256xf32, #tpu.memory_space<vmem>>, vector<2x256xf32>
      %cst_11 = arith.constant 0.000000e+00 : f32
      %13 = vector.broadcast %cst_11 : f32 to vector<2x256xf32>
      %14 = arith.maximumf %12, %13 : vector<2x256xf32>
      %c0_12 = arith.constant 0 : index
      %c0_13 = arith.constant 0 : index
      %15 = vector.load %arg5[%c0_12, %c0_13] : memref<256x64xf32, #tpu.memory_space<vmem>>, vector<256x64xf32>
      %cst_14 = arith.constant dense<0.000000e+00> : vector<2x64xf32>
      %16 = tpu.matmul %14, %15, %cst_14 {dimension_numbers = #tpu.dot_dimension_numbers<[1], [0], [0], [1], [0, 0, 1, 1], [], []>} : vector<2x256xf32>, vector<256x64xf32>, vector<2x64xf32> -> vector<2x64xf32>
      %c0_15 = arith.constant 0 : index
      %c0_16 = arith.constant 0 : index
      %17 = vector.load %arg6[%c0_15, %c0_16] : memref<1x64xf32, #tpu.memory_space<vmem>>, vector<1x64xf32>
      %18 = vector.broadcast %17 : vector<1x64xf32> to vector<2x64xf32>
      %19 = arith.addf %16, %18 : vector<2x64xf32>
      %cst_17 = arith.constant 0.000000e+00 : f32
      %20 = vector.broadcast %cst_17 : f32 to vector<2x64xf32>
      %21 = arith.maximumf %19, %20 : vector<2x64xf32>
      %c0_18 = arith.constant 0 : index
      %c0_19 = arith.constant 0 : index
      %22 = vector.load %arg7[%c0_18, %c0_19] : memref<64x10xf32, #tpu.memory_space<vmem>>, vector<64x10xf32>
      %cst_20 = arith.constant dense<0.000000e+00> : vector<2x10xf32>
      %23 = tpu.matmul %21, %22, %cst_20 {dimension_numbers = #tpu.dot_dimension_numbers<[1], [0], [0], [1], [0, 0, 1, 1], [], []>} : vector<2x64xf32>, vector<64x10xf32>, vector<2x10xf32> -> vector<2x10xf32>
      %c0_21 = arith.constant 0 : index
      %c0_22 = arith.constant 0 : index
      %24 = vector.load %arg8[%c0_21, %c0_22] : memref<1x10xf32, #tpu.memory_space<vmem>>, vector<1x10xf32>
      %25 = vector.broadcast %24 : vector<1x10xf32> to vector<2x10xf32>
      %26 = arith.addf %23, %25 : vector<2x10xf32>
      %c0_23 = arith.constant 0 : index
      %c0_24 = arith.constant 0 : index
      %27 = vector.load %arg9[%c0_23, %c0_24] : memref<2x10xf32, #tpu.memory_space<vmem>>, vector<2x10xf32>
      tpu.vector_store %arg9[%c0_23, %c0_24], %26 {strides = array<i32>} : memref<2x10xf32, #tpu.memory_space<vmem>>, vector<2x10xf32>,
    } else {
    }
    return
  }
  func.func @transform_0(%arg0: i32, %arg1: i32) -> (i32, i32) {
    %c0_i32 = arith.constant 0 : i32
    return %arg0, %arg1 : i32, i32
  }
  func.func @transform_1(%arg0: i32, %arg1: i32) -> (i32, i32) {
    %c0_i32 = arith.constant 0 : i32
    %c0_i32_0 = arith.constant 0 : i32
    return %arg1, %c0_i32 : i32, i32
  }
  func.func @transform_2(%arg0: i32, %arg1: i32) -> (i32, i32) {
    %c0_i32 = arith.constant 0 : i32
    %c0_i32_0 = arith.constant 0 : i32
    %c0_i32_1 = arith.constant 0 : i32
    return %c0_i32, %c0_i32_0 : i32, i32
  }
  func.func @transform_3(%arg0: i32, %arg1: i32) -> (i32, i32) {
    %c0_i32 = arith.constant 0 : i32
    %c0_i32_0 = arith.constant 0 : i32
    %c0_i32_1 = arith.constant 0 : i32
    return %c0_i32, %c0_i32_0 : i32, i32
  }
  func.func @transform_4(%arg0: i32, %arg1: i32) -> (i32, i32) {
    %c0_i32 = arith.constant 0 : i32
    %c0_i32_0 = arith.constant 0 : i32
    %c0_i32_1 = arith.constant 0 : i32
    return %c0_i32, %c0_i32_0 : i32, i32
  }
  func.func @transform_5(%arg0: i32, %arg1: i32) -> (i32, i32) {
    %c0_i32 = arith.constant 0 : i32
    %c0_i32_0 = arith.constant 0 : i32
    %c0_i32_1 = arith.constant 0 : i32
    return %c0_i32, %c0_i32_0 : i32, i32
  }
  func.func @transform_6(%arg0: i32, %arg1: i32) -> (i32, i32) {
    %c0_i32 = arith.constant 0 : i32
    %c0_i32_0 = arith.constant 0 : i32
    %c0_i32_1 = arith.constant 0 : i32
    return %c0_i32, %c0_i32_0 : i32, i32
  }
  func.func @transform_7(%arg0: i32, %arg1: i32) -> (i32, i32) {
    %c0_i32 = arith.constant 0 : i32
    %c0_i32_0 = arith.constant 0 : i32
    return %arg0, %c0_i32 : i32, i32
  }
}

</mosaic_0001>

<bundles_post_ra>
// kernel: tpu_custom_call.1
= control target key start
LH: loop header
LB: loop body
LE: loop exit
PB: predicated region body
PF: predicated region fallthrough
CT: control target
= control target key end

     0   :  { %s10891_s0 = inlined_call_operand.hbm [shape: bf16[2,12544], index: 0, kind: input, shape index: {}]   ;;  %s10892_s1 = inlined_call_operand.hbm [shape: bf16[12544,256], index: 1, kind: input, shape index: {}]   ;;  %s10893_s2 = inlined_call_operand.hbm [shape: f32[1,256], index: 2, kind: input, shape index: {}]   ;;  %s10894_s3 = inlined_call_operand.vmem [shape: f32[256,64], index: 3, kind: input, shape index: {}]   ;;  %s10895_s4 = inlined_call_operand.hbm [shape: f32[1,64], index: 4, kind: input, shape index: {}]   ;;  %s10896_s5 = inlined_call_operand.vmem [shape: f32[64,10], index: 5, kind: input, shape index: {}]   ;;  %s10897_s6 = inlined_call_operand.hbm [shape: f32[1,10], index: 6, kind: input, shape index: {}]   ;;  %s10898_s7 = inlined_call_operand.hbm [shape: f32[2,10], index: 7, kind: output, shape index: {}]  }
   0x1   :  { %10902 = sst [smem:[#allocation18_spill]] %s10891_s0 }
   0x2   :  { %10903 = sst [smem:[#allocation19_spill]] %s10893_s2 }
   0x3   :  { %12 = vsyncpa [#allocation4], 0 }
   0x4   :  { %14 = vsyncpa [#allocation4 + $0x1], 0 }
   0x5   :  { %15 = vsyncpa [#allocation7], 0 }
   0x6   :  { %17 = vsyncpa [#allocation7 + $0x1], 0 }
   0x7   :  { %18 = vsyncpa [#allocation10], 0 }
   0x8   :  { %19 = vsyncpa [#allocation5], 0  ;;  %s9466_s24 = smov 0   ;;  %s9468_s25 = smov 0  }
   0x9   :  { %s9470_s26 = smov 0   ;;  %s9472_s27 = smov 0  }
   0xa   :  { %s9474_s28 = smov 0   ;;  %s9476_s29 = smov 0  }
   0xb LB: > { %s9495_s30 = sadd.s32 4294967295, %s9410_s29   ;;  %p59_p0 = scmp.ne.s32.totalorder %s9394_s25, %s9390_s24  ;;  %s9410_s29 = sphi %s9476_s29, %s25_s29   ;;  %s9406_s28 = sphi %s9474_s28, %s10921_s28   ;;  %s9402_s27 = sphi %s9472_s27, %s10920_s27   ;;  %s9398_s26 = sphi %s9470_s26, %s10919_s26   ;;  %s9394_s25 = sphi %s9468_s25, %s10918_s25   ;;  %s9390_s24 = sphi %s9466_s24, %s10917_s24  }
   0xc   : > { %p10899_p1 = scmp.eq.s32.totalorder %s9495_s30, 0  ;;  %p6866_p2 = scmp.ge.s32.totalorder %s9410_s29, 1 }
   0xd   : > { %p227_p3 = scmp.lt.s32.totalorder %s9410_s29, 3  ;;  %s9412_s10 = smov [#allocation8]  }
   0xe   : > { %p9503_p4 = por %p10899_p1, %p59_p0  ;;  %s240_s11 = sshll.u32 %s9412_s10, 4  ;;  %s241_s11 = int_to_ptr.vmem [resolvable:$true] %s240_s11 }
   0xf   : > { %p9507_p5 = pnand %p6866_p2, %p227_p3  ;;  %s9413_s12 = smov [#allocation9]  }
  0x10   : > { %s10904_s8 = scalar_select %p9503_p4, 1, 0 }
  0x11   : > { %s10905_s9 = scalar_select %p9507_p5, 1, 0 }
  0x12   : > { %p7902_p6 = pneg %p9507_p5  ;;  %s254_s13 = sshll.u32 %s9413_s12, 4  ;;  %s9519_s13 = int_to_ptr.vmem [resolvable:$true] %s254_s13 }
  0x13   : > { %s9414_s15 = smov [#allocation11]   ;;  %s10907_s2 = sld [smem:[#allocation19_spill]] }
  0x14   : > { %p9515_p7 = pnand %p7902_p6, %p10899_p1  ;;  %s268_s16 = sshll.u32 %s9414_s15, 4  ;;  %s9521_s16 = int_to_ptr.vmem [resolvable:$true] %s268_s16 }
  0x16   : > { %p9531_p9 = pneg %p9515_p7 }
  0x19   : > { %s9174_s19 = scalar_lea.hbm %s10907_s2, 32 }
  0x1a   : > { %p9175_p8 = scmp.ne.s32.totalorder %s10907_s2, %s9174_s19  ;;  %p9181_p12 = scmp.lt.u32.totalorder %s9174_s19, %s10907_s2 }
  0x1c   : > { %p9177_p10 = pnand %p9531_p9, %p9175_p8 }
  0x1e   : > { %p9178_p11 = pneg %p9177_p10 }
  0x20   : > { %p9183_p13 = pnand %p9181_p12, %p9178_p11 }
  0x22   : > { %9186 = shalt.err (!%p9183_p13)
}
  0x23   : > { %s9187_s10 = scalar_lea.vmem %s241_s11, 32  ;;  %p9195_p6 = scmp.lt.s32.totalorder %s241_s11, %s241_s11 }
  0x24   : > { %p9188_p0 = scmp.ne.s32.totalorder %s241_s11, %s9187_s10  ;;  %p9196_p1 = scmp.lt.s32.totalorder %s9187_s10, %s9187_s10 }
  0x26   : > { %p9190_p2 = pnand %p9188_p0, %p9531_p9  ;;  %p9197_p4 = por %p9196_p1, %p9195_p6 }
  0x28   : > { %p9191_p3 = pneg %p9190_p2 }
  0x2a   : > { %p9198_p5 = pnand %p9197_p4, %p9191_p3 }
  0x2c   : > { %9201 = shalt.err (!%p9198_p5)
}
  0x2d   : > { %7905 = dma.hbm_to_vmem [thread:$0]  (!%p9515_p7), %s10907_s2, 32, %s241_s11, [#allocation7]  }
  0x2e   : > { %s9202_s19 = scalar_lea.hbm %s10895_s4, 16 }
  0x2f   : > { %p9203_p8 = scmp.ne.s32.totalorder %s10895_s4, %s9202_s19  ;;  %p9209_p4 = scmp.lt.u32.totalorder %s9202_s19, %s10895_s4 }
  0x31   : > { %p9205_p10 = pnand %p9203_p8, %p9531_p9 }
  0x33   : > { %p9206_p1 = pneg %p9205_p10 }
  0x35   : > { %p9211_p5 = pnand %p9209_p4, %p9206_p1 }
  0x37   : > { %9214 = shalt.err (!%p9211_p5)
}
  0x38   : > { %s9215_s11 = scalar_lea.vmem %s9519_s13, 16  ;;  %s9222_s10 = scalar_lea.vmem %s9519_s13, 32 }
  0x39   : > { %p9216_p11 = scmp.ne.s32.totalorder %s9519_s13, %s9215_s11  ;;  %p9223_p0 = scmp.lt.s32.totalorder %s9519_s13, %s9519_s13 }
  0x3a   : > { %p9224_p2 = scmp.lt.s32.totalorder %s9222_s10, %s9215_s11 }
  0x3b   : > { %p9218_p12 = pnand %p9216_p11, %p9531_p9 }
  0x3c   : > { %p9225_p3 = por %p9224_p2, %p9223_p0 }
  0x3d   : > { %p9219_p13 = pneg %p9218_p12 }
  0x3f   : > { %p9226_p6 = pnand %p9225_p3, %p9219_p13 }
  0x41   : > { %9229 = shalt.err (!%p9226_p6)
}
  0x42   : > { %7908 = dma.hbm_to_vmem [thread:$0]  (!%p9515_p7), %s10895_s4, 16, %s9519_s13, [#allocation10]  }
  0x43   : > { %s9230_s19 = scalar_lea.hbm %s10897_s6, 16 }
  0x44   : > { %p9231_p8 = scmp.ne.s32.totalorder %s10897_s6, %s9230_s19  ;;  %p9237_p4 = scmp.lt.u32.totalorder %s9230_s19, %s10897_s6 }
  0x46   : > { %p9233_p10 = pnand %p9231_p8, %p9531_p9 }
  0x48   : > { %p9234_p1 = pneg %p9233_p10 }
  0x4a   : > { %p9239_p5 = pnand %p9237_p4, %p9234_p1 }
  0x4c   : > { %9242 = shalt.err (!%p9239_p5)
}
  0x4d   : > { %s9243_s13 = scalar_lea.vmem %s9521_s16, 16  ;;  %s9250_s11 = scalar_lea.vmem %s9521_s16, 32 }
  0x4e   : > { %p9244_p11 = scmp.ne.s32.totalorder %s9521_s16, %s9243_s13  ;;  %p9251_p0 = scmp.lt.s32.totalorder %s9521_s16, %s9521_s16 }
  0x4f   : > { %p9252_p2 = scmp.lt.s32.totalorder %s9250_s11, %s9243_s13 }
  0x50   : > { %p9246_p12 = pnand %p9244_p11, %p9531_p9 }
  0x51   : > { %p9253_p3 = por %p9252_p2, %p9251_p0 }
  0x52   : > { %p9247_p13 = pneg %p9246_p12 }
  0x54   : > { %p9254_p6 = pnand %p9253_p3, %p9247_p13 }
  0x56   : > { %9257 = shalt.err (!%p9254_p6)
}
  0x57   : > { %7911 = dma.hbm_to_vmem [thread:$0]  (!%p9515_p7), %s10897_s6, 16, %s9521_s16, [#allocation10]  }
  0x58   : > { %s46_s22 = sadd.s32 1, %s9398_s26  ;;  %s34_s15 = sadd.s32 1, %s9406_s28 }
  0x59   : > { %p53_p9 = scmp.ne.s32.totalorder %s9398_s26, %s9394_s25  ;;  %p35_p8 = scmp.ge.s32.totalorder %s34_s15, 2 }
  0x5a   : > { %p54_p10 = scmp.eq.s32.totalorder %s9410_s29, 0  ;;  %p7922_p1 = scmp.lt.s32.totalorder %s9410_s29, 2 }
  0x5b   : > { %s9602_s14 = sand.u32 1, %s9398_s26   ;;  %s10923_s15 = smov (%p35_p8, %s34_s15), 0 }
  0x5c   : > { %p55_p4 = por %p54_p10, %p53_p9  ;;  %s42_s17 = ssub.s32 %s9406_s28, %s10923_s15 }
  0x5d   : > { %s7878_s18 = smul.u32 49, %s9602_s14  ;;  %p44_p5 = scmp.eq.s32.totalorder %s42_s17, 0 }
  0x5e   : > { %s7673_s19 = smul.u32 784, %s9406_s28  ;;  %p9610_p11 = pnand %p7922_p1, %p55_p4 }
  0x5f   : > { %s9615_s20 = scalar_select %p44_p5, %s9398_s26, %s46_s22  }
  0x60   : > { %s10910_s0 = sld [smem:[#allocation18_spill]]  ;;  %s283_s13 = scalar_lea.vmem [#allocation3], %s7878_s18 }
  0x61   : > { %s293_s11 = sshll.u32 %s283_s13, 4  ;;  %s280_s10 = scalar_lea.sflag [#allocation4], %s9602_s14  ;;  %s9622_s11 = int_to_ptr.vmem [resolvable:$true] %s293_s11 }
  0x62   : > { %p9260_p12 = pneg %p9610_p11 }
  0x66   : > { %s9620_s24 = scalar_lea.hbm %s10910_s0, %s7673_s19  ;;  %s9263_s19 = scalar_lea.hbm %s10910_s0, 1568 }
  0x67   : > { %s9258_s12 = scalar_lea.hbm %s9620_s24, 784  ;;  %p9264_p2 = scmp.lt.u32.totalorder %s9620_s24, %s10910_s0 }
  0x68   : > { %p9259_p7 = scmp.ne.s32.totalorder %s9620_s24, %s9258_s12  ;;  %p9265_p3 = scmp.lt.u32.totalorder %s9263_s19, %s9258_s12 }
  0x69   : > { %p9267_p9 = scmp.lt.u32.totalorder %s9258_s12, %s9620_s24 }
  0x6a   : > { %p9261_p13 = pnand %p9260_p12, %p9259_p7  ;;  %p9266_p6 = por %p9265_p3, %p9264_p2 }
  0x6c   : > { %p9262_p0 = pneg %p9261_p13  ;;  %p9268_p8 = por %p9267_p9, %p9266_p6 }
  0x6e   : > { %p9269_p10 = pnand %p9268_p8, %p9262_p0 }
  0x70   : > { %9272 = shalt.err (!%p9269_p10)
}
  0x71   : > { %s9273_s18 = scalar_lea.vmem %s9622_s11, 784  ;;  %s9415_s13 = smov [#allocation3]  }
  0x72   : > { %p9274_p1 = scmp.ne.s32.totalorder %s9622_s11, %s9273_s18  ;;  %s9278_s22 = sshll.u32 %s9415_s13, 4  ;;  %s9279_s22 = int_to_ptr.vmem [resolvable:$false] %s9278_s22 }
  0x73   : > { %s9280_s17 = scalar_lea.vmem %s9279_s22, 1568  ;;  %p9281_p7 = scmp.lt.s32.totalorder %s9622_s11, %s9279_s22 }
  0x74   : > { %p9276_p4 = pnand %p9274_p1, %p9260_p12  ;;  %p9282_p13 = scmp.lt.s32.totalorder %s9280_s17, %s9273_s18 }
  0x76   : > { %p9277_p5 = pneg %p9276_p4  ;;  %p9283_p2 = por %p9282_p13, %p9281_p7 }
  0x78   : > { %p9284_p3 = pnand %p9283_p2, %p9277_p5 }
  0x7a   : > { %9287 = shalt.err (!%p9284_p3)
}
  0x7b   : > { %7915 = dma.hbm_to_vmem [thread:$0]  (!%p9610_p11), %s9620_s24, 784, %s9622_s11, %s280_s10  }
  0x7c   : > { %s7879_s12 = smul.u32 6272, %s9602_s14  ;;  %s300_s19 = sand.u32 1, %s9410_s29  }
  0x7d   : > { %s7676_s21 = smul.u32 100352, %s9406_s28  ;;  %s9660_s17 = scalar_lea.sflag [#allocation7], %s300_s19 }
  0x7e   : > { %s304_s23 = scalar_lea.vmem [#allocation6], %s7879_s12  ;;  %s9293_s0 = scalar_lea.hbm %s10892_s1, 200704 }
  0x7f   : > { %s312_s13 = sshll.u32 %s304_s23, 4  ;;  %s9656_s18 = scalar_lea.hbm %s10892_s1, %s7676_s21  ;;  %s9658_s13 = int_to_ptr.vmem [resolvable:$true] %s312_s13 }
  0x80   : > { %s9288_s2 = scalar_lea.hbm %s9656_s18, 100352  ;;  %p9294_p8 = scmp.lt.u32.totalorder %s9656_s18, %s10892_s1 }
  0x81   : > { %p9289_p0 = scmp.ne.s32.totalorder %s9656_s18, %s9288_s2  ;;  %p9295_p10 = scmp.lt.u32.totalorder %s9293_s0, %s9288_s2 }
  0x82   : > { %p9297_p4 = scmp.lt.u32.totalorder %s9288_s2, %s9656_s18 }
  0x83   : > { %p9291_p6 = pnand %p9289_p0, %p9260_p12  ;;  %p9296_p1 = por %p9295_p10, %p9294_p8 }
  0x85   : > { %p9292_p9 = pneg %p9291_p6  ;;  %p9298_p5 = por %p9297_p4, %p9296_p1 }
  0x87   : > { %p9299_p7 = pnand %p9298_p5, %p9292_p9 }
  0x89   : > { %9302 = shalt.err (!%p9299_p7)
}
  0x8a   : > { %s9303_s12 = scalar_lea.vmem %s9658_s13, 100352  ;;  %s9416_s19 = smov [#allocation6]  }
  0x8b   : > { %p9304_p13 = scmp.ne.s32.totalorder %s9658_s13, %s9303_s12  ;;  %s9308_s21 = sshll.u32 %s9416_s19, 4  ;;  %s9309_s21 = int_to_ptr.vmem [resolvable:$false] %s9308_s21 }
  0x8c   : > { %s9310_s23 = scalar_lea.vmem %s9309_s21, 200704  ;;  %p9311_p0 = scmp.lt.s32.totalorder %s9658_s13, %s9309_s21 }
  0x8d   : > { %p9306_p2 = pnand %p9304_p13, %p9260_p12  ;;  %p9312_p6 = scmp.lt.s32.totalorder %s9310_s23, %s9303_s12 }
  0x8f   : > { %p9307_p3 = pneg %p9306_p2  ;;  %p9313_p8 = por %p9312_p6, %p9311_p0 }
  0x91   : > { %p9314_p10 = pnand %p9313_p8, %p9307_p3 }
  0x93   : > { %9317 = shalt.err (!%p9314_p10)
}
  0x94   : > { %s9417_s2 = smov 128   ;;  %s9418_s22 = smov 8  }
  0x95   : > { %7918 = dma.hbm_to_vmem [thread:$0]  (!%p9610_p11), %s9656_s18, 100352, %s9658_s13, %s9660_s17, %s9417_s2, %s9417_s2, %s9418_s22  }
  0x96   : > { %p10911_p12 = scmp.ne.s32.totalorder %s10905_s9, 0 }
  0x97   : > { %s326_s14 = sand.u32 (!%p10911_p12), 1, %s9394_s25   ;;  %p10912_p9 = scmp.ne.s32.totalorder (!%p10911_p12), %s10904_s8, 0 }
  0x98   : > { %324 = sbr.rel (%p10911_p12) target bundleno = 1681 (0x691), region = 48  ;;  %s327_s0 = scalar_lea.sflag (!%p10911_p12), [#allocation4], %s326_s14 }
  0x99   : > { %s7880_s24 = smul.u32 (!%p10911_p12), 49, %s326_s14 }
  0x9b   : > { %s9689_s11 = scalar_lea.vmem (!%p10911_p12), [#allocation3], %s7880_s24 }
  0x9f   : > { %9369 = dma.done.wait (%p10912_p9), %s327_s0, 784  }
  0xa0   : > { %9371 = vsyncadd (%p10912_p9), %s327_s0, 4294966512  ;;  %s335_s10 = sand.u32 1, %s9495_s30   ;;  %s7881_s16 = smul.u32 6272, %s326_s14 }
  0xa1   : > { %s336_s13 = scalar_lea.sflag [#allocation7], %s335_s10 }
  0xa2   : > { %s9696_s18 = scalar_lea.vmem [#allocation6], %s7881_s16 }
  0xa3   : > { %9373 = dma.done.wait (%p10912_p9), %s336_s13, 100352  }
  0xa4   : > { %9375 = vsyncadd (%p10912_p9), %s336_s13, 4294866944  ;;  %p10913_p11 = scmp.eq.s32.totalorder %s9495_s30, 0 }
  0xa6   : > { %9377 = dma.done.wait (%p10913_p11), [#allocation7], 32   ;;  %p10914_p1 = pmov %p10913_p11 }
  0xa8   : > { %9379 = vsyncadd (%p10914_p1), [#allocation7], 4294967264  ;;  %p10915_p4 = pmov %p10914_p1 }
  0xa9   : > { %p10916_p5 = pmov %p10914_p1 }
  0xaa   : > { %9381 = dma.done.wait (%p10915_p4), [#allocation10], 32  }
  0xab   : > { %9383 = vsyncadd (%p10916_p5), [#allocation10], 4294967264  ;;  %p6878_p7 = scmp.ne.s32.totalorder %s9402_s27, 0 }
  0xac   : > { %v391_v0 = vlaneseq (!%p6878_p7)  ;;  %v389_v2 = vld [vmem:[#allocation8] sm:$0x3] (!%p6878_p7) }
  0xad   : > { %388 = sbr.rel (%p6878_p7) target bundleno = 183 (0xb7), region = 72 }
  0xae   : > { %v392_v1 = vshrl.u32 (!%p6878_p7), %v391_v0, 7 }
  0xb0   : > { %v393_v3 = vsub.s32 (!%p6878_p7), 0, %v392_v1  ;;  %v397_v4 = vsub.s32 (!%p6878_p7), 1, %v392_v1 }
  0xb2   : > { %v394_v5 = vrot.slane (!%p6878_p7), %v389_v2, %v393_v3  ;;  %v398_v6 = vrot.slane (!%p6878_p7), %v389_v2, %v397_v4 }
  0xb4   : > { %v399_v7 = vcombine.low %v394_v5, %v398_v6 }
  0xb6   : > { %6879 = vst.sshfl [vmem:[#allocation2] sm:$0x33 pattern:$0x76325410] %v399_v7 }
  0xb7 PF: > { %v7988_v8 = vld [vmem:[%s9696_s18 + $0x4] ss:$8 sps:$4 sm:$0xff]   ;;  %v7992_v10 = vld [vmem:[%s9696_s18] ss:$8 sps:$4 sm:$0xff]   ;;  %v7994_v12 = vld [vmem:[%s9696_s18 + $0x14] ss:$8 sps:$4 sm:$0xff]   ;;  %v1212_v46 = vlaneseq }
  0xb8   : > { %v7990_v9 = vld [vmem:[%s9696_s18 + $0xc04] ss:$8 sps:$4 sm:$0xff]   ;;  %5485 = vmatprep.subr.bf16.mxu1 %v7988_v8  ;;  %v7993_v11 = vld [vmem:[%s9696_s18 + $0xc00] ss:$8 sps:$4 sm:$0xff]   ;;  %v7996_v13 = vld [vmem:[%s9696_s18 + $0xc14] ss:$8 sps:$4 sm:$0xff]  }
  0xb9   : > { %5977 = vmatprep.subr.bf16.mxu0 %v7990_v9  ;;  %5486 = vmatpush1.bf16.msra.mxu1 %v7992_v10  ;;  %v7998_v14 = vld [vmem:[%s9696_s18 + $0x10] ss:$8 sps:$4 sm:$0xff]   ;;  %v8000_v16 = vld [vmem:[%s9696_s18 + $0x24] ss:$8 sps:$4 sm:$0xff]   ;;  %v8004_v18 = vld [vmem:[%s9696_s18 + $0x20] ss:$8 sps:$4 sm:$0xff]  }
  0xba   : > { %5978 = vmatpush1.bf16.msra.mxu0 %v7993_v11  ;;  %5487 = vmatprep.subr.bf16.mxu1 %v7994_v12  ;;  %v7999_v15 = vld [vmem:[%s9696_s18 + $0xc10] ss:$8 sps:$4 sm:$0xff]   ;;  %v8002_v17 = vld [vmem:[%s9696_s18 + $0xc24] ss:$8 sps:$4 sm:$0xff]   ;;  %v8005_v19 = vld [vmem:[%s9696_s18 + $0xc20] ss:$8 sps:$4 sm:$0xff]  }
  0xbb   : > { %5979 = vmatprep.subr.bf16.mxu0 %v7996_v13  ;;  %v8006_v20 = vld [vmem:[%s9696_s18 + $0x34] ss:$8 sps:$4 sm:$0xff]   ;;  %v8010_v22 = vld [vmem:[%s9696_s18 + $0x30] ss:$8 sps:$4 sm:$0xff]   ;;  %v8012_v24 = vld [vmem:[%s9696_s18 + $0x44] ss:$8 sps:$4 sm:$0xff]  }
  0xbc   : > { %v8008_v21 = vld [vmem:[%s9696_s18 + $0xc34] ss:$8 sps:$4 sm:$0xff]   ;;  %v8011_v23 = vld [vmem:[%s9696_s18 + $0xc30] ss:$8 sps:$4 sm:$0xff]   ;;  %v8014_v25 = vld [vmem:[%s9696_s18 + $0xc44] ss:$8 sps:$4 sm:$0xff]  }
  0xbd   : > { %5488 = vmatpush1.bf16.msra.mxu1 %v7998_v14  ;;  %v8016_v26 = vld [vmem:[%s9696_s18 + $0x40] ss:$8 sps:$4 sm:$0xff]   ;;  %v8018_v28 = vld [vmem:[%s9696_s18 + $0x54] ss:$8 sps:$4 sm:$0xff]   ;;  %v8022_v30 = vld [vmem:[%s9696_s18 + $0x50] ss:$8 sps:$4 sm:$0xff]  }
  0xbe   : > { %5980 = vmatpush1.bf16.msra.mxu0 %v7999_v15  ;;  %5489 = vmatprep.subr.bf16.mxu1 %v8000_v16  ;;  %v8017_v27 = vld [vmem:[%s9696_s18 + $0xc40] ss:$8 sps:$4 sm:$0xff]   ;;  %v8020_v29 = vld [vmem:[%s9696_s18 + $0xc54] ss:$8 sps:$4 sm:$0xff]   ;;  %v8023_v31 = vld [vmem:[%s9696_s18 + $0xc50] ss:$8 sps:$4 sm:$0xff]  }
  0xbf   : > { %5981 = vmatprep.subr.bf16.mxu0 %v8002_v17  ;;  %v8024_v32 = vld [vmem:[%s9696_s18 + $0x64] ss:$8 sps:$4 sm:$0xff]   ;;  %v8028_v34 = vld [vmem:[%s9696_s18 + $0x60] ss:$8 sps:$4 sm:$0xff]   ;;  %v8030_v36 = vld [vmem:[%s9696_s18 + $0x74] ss:$8 sps:$4 sm:$0xff]  }
  0xc0   : > { %v8026_v33 = vld [vmem:[%s9696_s18 + $0xc64] ss:$8 sps:$4 sm:$0xff]   ;;  %v8029_v35 = vld [vmem:[%s9696_s18 + $0xc60] ss:$8 sps:$4 sm:$0xff]   ;;  %v8032_v37 = vld [vmem:[%s9696_s18 + $0xc74] ss:$8 sps:$4 sm:$0xff]  }
  0xc1   : > { %5490 = vmatpush1.bf16.msra.mxu1 %v8004_v18  ;;  %v8034_v38 = vld [vmem:[%s9696_s18 + $0x70] ss:$8 sps:$4 sm:$0xff]   ;;  %v8036_v40 = vld [vmem:[%s9696_s18 + $0x84] ss:$8 sps:$4 sm:$0xff]   ;;  %v8040_v42 = vld [vmem:[%s9696_s18 + $0x80] ss:$8 sps:$4 sm:$0xff]  }
  0xc2   : > { %5982 = vmatpush1.bf16.msra.mxu0 %v8005_v19  ;;  %5491 = vmatprep.subr.bf16.mxu1 %v8006_v20  ;;  %v8035_v39 = vld [vmem:[%s9696_s18 + $0xc70] ss:$8 sps:$4 sm:$0xff]   ;;  %v8038_v41 = vld [vmem:[%s9696_s18 + $0xc84] ss:$8 sps:$4 sm:$0xff]   ;;  %v8041_v43 = vld [vmem:[%s9696_s18 + $0xc80] ss:$8 sps:$4 sm:$0xff]  }
  0xc3   : > { %5983 = vmatprep.subr.bf16.mxu0 %v8008_v21  ;;  %v9419_v44 = vmov 1966171168   ;;  %v8042_v47 = vld [vmem:[%s9696_s18 + $0x94] ss:$8 sps:$4 sm:$0xff]   ;;  %v8046_v49 = vld [vmem:[%s9696_s18 + $0x90] ss:$8 sps:$4 sm:$0xff]  }
  0xc4   : > { %v1210_v45 = vunpack.c.l.s4 %v9419_v44  ;;  %v8044_v48 = vld [vmem:[%s9696_s18 + $0xc94] ss:$8 sps:$4 sm:$0xff]   ;;  %v9750_v51 = vshrl.u32 %v1212_v46, 7  ;;  %v8047_v52 = vld [vmem:[%s9696_s18 + $0xc90] ss:$8 sps:$4 sm:$0xff]   ;;  %p7665_p13 = scmp.ne.s32.totalorder %s9402_s27, 1 }
  0xc5   : > { %5492 = vmatpush1.bf16.msra.mxu1 %v8010_v22  ;;  %v8048_v53 = vld [vmem:[%s9696_s18 + $0xa4] ss:$8 sps:$4 sm:$0xff]   ;;  %v8052_v55 = vld [vmem:[%s9696_s18 + $0xa0] ss:$8 sps:$4 sm:$0xff]   ;;  %v8054_v58 = vld [vmem:[%s9696_s18 + $0xb4] ss:$8 sps:$4 sm:$0xff]  }
  0xc6   : > { %5984 = vmatpush1.bf16.msra.mxu0 %v8011_v23  ;;  %5493 = vmatprep.subr.bf16.mxu1 %v8012_v24  ;;  %v1211_v50 = vunpack.c.0.s8 %v1210_v45  ;;  %v8050_v54 = vld [vmem:[%s9696_s18 + $0xca4] ss:$8 sps:$4 sm:$0xff]   ;;  %v8053_v56 = vld [vmem:[%s9696_s18 + $0xca0] ss:$8 sps:$4 sm:$0xff]   ;;  %v8056_v59 = vld [vmem:[%s9696_s18 + $0xcb4] ss:$8 sps:$4 sm:$0xff]  }
  0xc7   : > { %5985 = vmatprep.subr.bf16.mxu0 %v8014_v25  ;;  %v9763_v60 = vld [vmem:[%s9689_s11] sm:$0xff]  ;;  %v9770_v0 = vld [vmem:[%s9689_s11 + $0x18] sm:$0xff]  ;;  %vm9423_vm0 = vmmov (!%p7665_p13), 0   ;;  %vm6665_vm1 = vcmask (!%p7665_p13), 523264   ;;  %vm6739_vm2 = vcmask (!%p7665_p13), 74752  }
  0xc8   : > { %v9758_v57 = vsub.s32 %v1211_v50, %v9750_v51  ;;  %v8058_v61 = vld [vmem:[%s9696_s18 + $0xb0] ss:$8 sps:$4 sm:$0xff]   ;;  %v8060_v1 = vld [vmem:[%s9696_s18 + $0xc4] ss:$8 sps:$4 sm:$0xff]   ;;  %v8064_v7 = vld [vmem:[%s9696_s18 + $0xc0] ss:$8 sps:$4 sm:$0xff]  }
  0xc9   : > { %5494 = vmatpush1.bf16.msra.mxu1 %v8016_v26  ;;  %v8059_v63 = vld [vmem:[%s9696_s18 + $0xcb0] ss:$8 sps:$4 sm:$0xff]   ;;  %v8062_v2 = vld [vmem:[%s9696_s18 + $0xcc4] ss:$8 sps:$4 sm:$0xff]   ;;  %v8065_v8 = vld [vmem:[%s9696_s18 + $0xcc0] ss:$8 sps:$4 sm:$0xff]  }
  0xca   : > { %5986 = vmatpush1.bf16.msra.mxu0 %v8017_v27  ;;  %5495 = vmatprep.subr.bf16.mxu1 %v8018_v28  ;;  %v1215_v62 = vrot.slane %v9763_v60, %v9758_v57  ;;  %v1362_v4 = vrot.slane %v9770_v0, %v9758_v57  ;;  %v8066_v9 = vld [vmem:[%s9696_s18 + $0xd4] ss:$8 sps:$4 sm:$0xff]   ;;  %v8070_v12 = vld [vmem:[%s9696_s18 + $0xd0] ss:$8 sps:$4 sm:$0xff]   ;;  %v8072_v14 = vld [vmem:[%s9696_s18 + $0xe4] ss:$8 sps:$4 sm:$0xff]  }
  0xcb   : > { %5987 = vmatprep.subr.bf16.mxu0 %v8020_v29  ;;  %v8068_v10 = vld [vmem:[%s9696_s18 + $0xcd4] ss:$8 sps:$4 sm:$0xff]   ;;  %v8071_v13 = vld [vmem:[%s9696_s18 + $0xcd0] ss:$8 sps:$4 sm:$0xff]   ;;  %v8074_v15 = vld [vmem:[%s9696_s18 + $0xce4] ss:$8 sps:$4 sm:$0xff]  }
  0xcc   : > { %v1223_v3 = vcombine.high %v1215_v62, %v1215_v62  ;;  %v1370_v6 = vcombine.high %v1362_v4, %v1362_v4  ;;  %v8076_v16 = vld [vmem:[%s9696_s18 + $0xe0] ss:$8 sps:$4 sm:$0xff]   ;;  %v8078_v18 = vld [vmem:[%s9696_s18 + $0xf4] ss:$8 sps:$4 sm:$0xff]   ;;  %v8082_v20 = vld [vmem:[%s9696_s18 + $0xf0] ss:$8 sps:$4 sm:$0xff]   ;;  %v9795_v24 = vrot.slane %v1215_v62, %v9758_v57  ;;  %v9798_v25 = vrot.slane %v1362_v4, %v9758_v57 }
  0xcd   : > { %5496 = vmatpush1.bf16.msra.mxu1 %v8022_v30  ;;  %v8077_v17 = vld [vmem:[%s9696_s18 + $0xce0] ss:$8 sps:$4 sm:$0xff]   ;;  %v8080_v19 = vld [vmem:[%s9696_s18 + $0xcf4] ss:$8 sps:$4 sm:$0xff]   ;;  %v8083_v21 = vld [vmem:[%s9696_s18 + $0xcf0] ss:$8 sps:$4 sm:$0xff]  }
  0xce   : > { %5988 = vmatpush1.bf16.msra.mxu0 %v8023_v31  ;;  %5497 = vmatprep.subr.bf16.mxu1 %v8024_v32  ;;  %v1245_v5 = vrot.slane %v1223_v3, %v9758_v57  ;;  %v1392_v11 = vrot.slane %v1370_v6, %v9758_v57  ;;  %v8087_v22 = vld [vmem:[%s9696_s18 + $0x104] ss:$8 sps:$4 sm:$0xff]   ;;  %v8085_v26 = vld [vmem:[%s9696_s18 + $0x100] ss:$8 sps:$4 sm:$0xff]   ;;  %v8094_v28 = vld [vmem:[%s9696_s18 + $0x114] ss:$8 sps:$4 sm:$0xff]  }
  0xcf   : > { %5989 = vmatprep.subr.bf16.mxu0 %v8026_v33  ;;  %v8091_v23 = vld [vmem:[%s9696_s18 + $0xd04] ss:$8 sps:$4 sm:$0xff]   ;;  %v8089_v27 = vld [vmem:[%s9696_s18 + $0xd00] ss:$8 sps:$4 sm:$0xff]   ;;  %v8097_v29 = vld [vmem:[%s9696_s18 + $0xd14] ss:$8 sps:$4 sm:$0xff]  }
  0xd0   : > { %5517 = vmatprep.mubr.bf16.mxu1 %v1245_v5  ;;  %6009 = vmatprep.mubr.bf16.mxu0 %v1392_v11  ;;  %v1255_v30 = vcombine.high %v1245_v5, %v1245_v5  ;;  %v1402_v31 = vcombine.high %v1392_v11, %v1392_v11  ;;  %v8092_v32 = vld [vmem:[%s9696_s18 + $0x110] ss:$8 sps:$4 sm:$0xff]   ;;  %v8110_v44 = vld [vmem:[%s9696_s18 + $0x140] ss:$8 sps:$4 sm:$0xff]   ;;  %v8118_v46 = vld [vmem:[%s9696_s18 + $0x154] ss:$8 sps:$4 sm:$0xff]  }
  0xd1   : > { %5498 = vmatpush1.bf16.msra.mxu1 %v8028_v34  ;;  %v8095_v33 = vld [vmem:[%s9696_s18 + $0xd10] ss:$8 sps:$4 sm:$0xff]   ;;  %v8100_v34 = vld [vmem:[%s9696_s18 + $0x124] ss:$8 sps:$4 sm:$0xff]   ;;  %v8113_v45 = vld [vmem:[%s9696_s18 + $0xd40] ss:$8 sps:$4 sm:$0xff]  }
  0xd2   : > { %5990 = vmatpush1.bf16.msra.mxu0 %v8029_v35  ;;  %5499 = vmatprep.subr.bf16.mxu1 %v8030_v36  ;;  %v8103_v35 = vld [vmem:[%s9696_s18 + $0xd24] ss:$8 sps:$4 sm:$0xff]   ;;  %v8098_v36 = vld [vmem:[%s9696_s18 + $0x120] ss:$8 sps:$4 sm:$0xff]   ;;  %v8145_v3 = vld [vmem:[%s9696_s18 + $0xd94] ss:$8 sps:$4 sm:$0xff]  }
  0xd3   : > { %5991 = vmatprep.subr.bf16.mxu0 %v8032_v37  ;;  %v8101_v37 = vld [vmem:[%s9696_s18 + $0xd20] ss:$8 sps:$4 sm:$0xff]   ;;  %v8124_v50 = vld [vmem:[%s9696_s18 + $0x164] ss:$8 sps:$4 sm:$0xff]   ;;  %v8140_v4 = vld [vmem:[%s9696_s18 + $0x190] ss:$8 sps:$4 sm:$0xff]  }
  0xd4   : > { %v8139_v62 = vld [vmem:[%s9696_s18 + $0xd84] ss:$8 sps:$4 sm:$0xff]   ;;  %v8143_v5 = vld [vmem:[%s9696_s18 + $0xd90] ss:$8 sps:$4 sm:$0xff]   ;;  %v8157_v11 = vld [vmem:[%s9696_s18 + $0xdb4] ss:$8 sps:$4 sm:$0xff]  }
  0xd5   : > { %5500 = vmatpush1.bf16.msra.mxu1 %v8034_v38  ;;  %v8106_v38 = vld [vmem:[%s9696_s18 + $0x134] ss:$8 sps:$4 sm:$0xff]   ;;  %v8148_v6 = vld [vmem:[%s9696_s18 + $0x1a4] ss:$8 sps:$4 sm:$0xff]  }
  0xd6   : > { %5992 = vmatpush1.bf16.msra.mxu0 %v8035_v39  ;;  %5501 = vmatprep.subr.bf16.mxu1 %v8036_v40  ;;  %v8109_v39 = vld [vmem:[%s9696_s18 + $0xd34] ss:$8 sps:$4 sm:$0xff]   ;;  %v8104_v40 = vld [vmem:[%s9696_s18 + $0x130] ss:$8 sps:$4 sm:$0xff]  }
  0xd7   : > { %5993 = vmatprep.subr.bf16.mxu0 %v8038_v41  ;;  %v8107_v41 = vld [vmem:[%s9696_s18 + $0xd30] ss:$8 sps:$4 sm:$0xff]  }
  0xd9   : > { %5502 = vmatpush1.bf16.msra.mxu1 %v8040_v42  ;;  %v8112_v42 = vld [vmem:[%s9696_s18 + $0x144] ss:$8 sps:$4 sm:$0xff]  }
  0xda   : > { %5994 = vmatpush1.bf16.msra.mxu0 %v8041_v43  ;;  %5503 = vmatprep.subr.bf16.mxu1 %v8042_v47  ;;  %v8115_v43 = vld [vmem:[%s9696_s18 + $0xd44] ss:$8 sps:$4 sm:$0xff]   ;;  %v8121_v47 = vld [vmem:[%s9696_s18 + $0xd54] ss:$8 sps:$4 sm:$0xff]  }
  0xdb   : > { %5995 = vmatprep.subr.bf16.mxu0 %v8044_v48  ;;  %v8116_v48 = vld [vmem:[%s9696_s18 + $0x150] ss:$8 sps:$4 sm:$0xff]  }
  0xdd   : > { %5504 = vmatpush1.bf16.msra.mxu1 %v8046_v49  ;;  %v8119_v49 = vld [vmem:[%s9696_s18 + $0xd50] ss:$8 sps:$4 sm:$0xff]  }
  0xde   : > { %5996 = vmatpush1.bf16.msra.mxu0 %v8047_v52  ;;  %5505 = vmatprep.subr.bf16.mxu1 %v8048_v53  ;;  %v8127_v52 = vld [vmem:[%s9696_s18 + $0xd64] ss:$8 sps:$4 sm:$0xff]   ;;  %v8122_v53 = vld [vmem:[%s9696_s18 + $0x160] ss:$8 sps:$4 sm:$0xff]  }
  0xdf   : > { %5997 = vmatprep.subr.bf16.mxu0 %v8050_v54  ;;  %v8125_v54 = vld [vmem:[%s9696_s18 + $0xd60] ss:$8 sps:$4 sm:$0xff]  }
  0xe1   : > { %5506 = vmatpush1.bf16.msra.mxu1 %v8052_v55  ;;  %v8130_v55 = vld [vmem:[%s9696_s18 + $0x174] ss:$8 sps:$4 sm:$0xff]  }
  0xe2   : > { %5998 = vmatpush1.bf16.msra.mxu0 %v8053_v56  ;;  %5507 = vmatprep.subr.bf16.mxu1 %v8054_v58  ;;  %v8133_v56 = vld [vmem:[%s9696_s18 + $0xd74] ss:$8 sps:$4 sm:$0xff]   ;;  %v8128_v58 = vld [vmem:[%s9696_s18 + $0x170] ss:$8 sps:$4 sm:$0xff]  }
  0xe3   : > { %5999 = vmatprep.subr.bf16.mxu0 %v8056_v59  ;;  %v8131_v59 = vld [vmem:[%s9696_s18 + $0xd70] ss:$8 sps:$4 sm:$0xff]  }
  0xe5   : > { %5508 = vmatpush1.bf16.msra.mxu1 %v8058_v61  ;;  %v8136_v61 = vld [vmem:[%s9696_s18 + $0x184] ss:$8 sps:$4 sm:$0xff]  }
  0xe6   : > { %6000 = vmatpush1.bf16.msra.mxu0 %v8059_v63  ;;  %5509 = vmatprep.subr.bf16.mxu1 %v8060_v1  ;;  %v8134_v63 = vld [vmem:[%s9696_s18 + $0x180] ss:$8 sps:$4 sm:$0xff]  }
  0xe7   : > { %6001 = vmatprep.subr.bf16.mxu0 %v8062_v2  ;;  %v8137_v1 = vld [vmem:[%s9696_s18 + $0xd80] ss:$8 sps:$4 sm:$0xff]   ;;  %v8142_v2 = vld [vmem:[%s9696_s18 + $0x194] ss:$8 sps:$4 sm:$0xff]  }
  0xe9   : > { %5510 = vmatpush1.bf16.msra.mxu1 %v8064_v7  ;;  %v8151_v7 = vld [vmem:[%s9696_s18 + $0xda4] ss:$8 sps:$4 sm:$0xff]  }
  0xea   : > { %6002 = vmatpush1.bf16.msra.mxu0 %v8065_v8  ;;  %5511 = vmatprep.subr.bf16.mxu1 %v8066_v9  ;;  %v8146_v8 = vld [vmem:[%s9696_s18 + $0x1a0] ss:$8 sps:$4 sm:$0xff]  }
  0xeb   : > { %6003 = vmatprep.subr.bf16.mxu0 %v8068_v10  ;;  %v8149_v9 = vld [vmem:[%s9696_s18 + $0xda0] ss:$8 sps:$4 sm:$0xff]   ;;  %v8154_v10 = vld [vmem:[%s9696_s18 + $0x1b4] ss:$8 sps:$4 sm:$0xff]  }
  0xed   : > { %5512 = vmatpush1.bf16.msra.mxu1 %v8070_v12  ;;  %v8152_v12 = vld [vmem:[%s9696_s18 + $0x1b0] ss:$8 sps:$4 sm:$0xff]  }
  0xee   : > { %6004 = vmatpush1.bf16.msra.mxu0 %v8071_v13  ;;  %5513 = vmatprep.subr.bf16.mxu1 %v8072_v14  ;;  %v8155_v13 = vld [vmem:[%s9696_s18 + $0xdb0] ss:$8 sps:$4 sm:$0xff]   ;;  %v8160_v14 = vld [vmem:[%s9696_s18 + $0x1c4] ss:$8 sps:$4 sm:$0xff]  }
  0xef   : > { %6005 = vmatprep.subr.bf16.mxu0 %v8074_v15  ;;  %v8163_v15 = vld [vmem:[%s9696_s18 + $0xdc4] ss:$8 sps:$4 sm:$0xff]  }
  0xf1   : > { %5514 = vmatpush1.bf16.msra.mxu1 %v8076_v16  ;;  %v8158_v16 = vld [vmem:[%s9696_s18 + $0x1c0] ss:$8 sps:$4 sm:$0xff]  }
  0xf2   : > { %6006 = vmatpush1.bf16.msra.mxu0 %v8077_v17  ;;  %5515 = vmatprep.subr.bf16.mxu1 %v8078_v18  ;;  %v8161_v17 = vld [vmem:[%s9696_s18 + $0xdc0] ss:$8 sps:$4 sm:$0xff]   ;;  %v8166_v18 = vld [vmem:[%s9696_s18 + $0x1d4] ss:$8 sps:$4 sm:$0xff]  }
  0xf3   : > { %6007 = vmatprep.subr.bf16.mxu0 %v8080_v19  ;;  %v8169_v19 = vld [vmem:[%s9696_s18 + $0xdd4] ss:$8 sps:$4 sm:$0xff]  }
  0xf5   : > { %5516 = vmatpush1.bf16.msra.mxu1 %v8082_v20  ;;  %v8164_v20 = vld [vmem:[%s9696_s18 + $0x1d0] ss:$8 sps:$4 sm:$0xff]  }
  0xf6   : > { %6008 = vmatpush1.bf16.msra.mxu0 %v8083_v21  ;;  %5526 = vmatprep.subr.bf16.mxu1 %v8087_v22  ;;  %v8167_v21 = vld [vmem:[%s9696_s18 + $0xdd0] ss:$8 sps:$4 sm:$0xff]   ;;  %v8172_v22 = vld [vmem:[%s9696_s18 + $0x1e4] ss:$8 sps:$4 sm:$0xff]  }
  0xf7   : > { %6018 = vmatprep.subr.bf16.mxu0 %v8091_v23  ;;  %v8175_v23 = vld [vmem:[%s9696_s18 + $0xde4] ss:$8 sps:$4 sm:$0xff]  }
  0xf8   : > { %5518 = vmatmul.mubr.bf16.vlgmr.msra.gmra.mrb[0].mxu1 %v9795_v24 }
  0xf9   : > { %6010 = vmatmul.mubr.bf16.vlgmr.msra.gmra.mrb[0].mxu0 %v9798_v25  ;;  %5527 = vmatpush1.bf16.msra.mxu1 %v8085_v26  ;;  %v1208_v26 = vcombine.high %v9763_v60, %v9763_v60  ;;  %v8176_v60 = vld [vmem:[%s9696_s18 + $0x1f0] ss:$8 sps:$4 sm:$0xff]  }
  0xfa   : > { %6019 = vmatpush1.bf16.msra.mxu0 %v8089_v27  ;;  %5528 = vmatprep.subr.bf16.mxu1 %v8094_v28  ;;  %v1355_v27 = vcombine.high %v9770_v0, %v9770_v0  ;;  %v8170_v28 = vld [vmem:[%s9696_s18 + $0x1e0] ss:$8 sps:$4 sm:$0xff]   ;;  %v8179_v0 = vld [vmem:[%s9696_s18 + $0xdf0] ss:$8 sps:$4 sm:$0xff]  }
  0xfb   : > { %6020 = vmatprep.subr.bf16.mxu0 %v8097_v29  ;;  %5558 = vmatprep.mubr.bf16.mxu1 %v1255_v30  ;;  %v8173_v29 = vld [vmem:[%s9696_s18 + $0xde0] ss:$8 sps:$4 sm:$0xff]   ;;  %v8178_v30 = vld [vmem:[%s9696_s18 + $0x1f4] ss:$8 sps:$4 sm:$0xff]  }
  0xfc   : > { %6050 = vmatprep.mubr.bf16.mxu0 %v1402_v31  ;;  %v8181_v31 = vld [vmem:[%s9696_s18 + $0xdf4] ss:$8 sps:$4 sm:$0xff]  }
  0xfd   : > { %5529 = vmatpush1.bf16.msra.mxu1 %v8092_v32  ;;  %v9867_v32 = vrot.slane %v1208_v26, %v9758_v57  ;;  %v8248_v26 = vld [vmem:[%s9696_s18 + $0x2b0] ss:$8 sps:$4 sm:$0xff]  }
  0xfe   : > { %6021 = vmatpush1.bf16.msra.mxu0 %v8095_v33  ;;  %5530 = vmatprep.subr.bf16.mxu1 %v8100_v34  ;;  %v9870_v33 = vrot.slane %v1355_v27, %v9758_v57  ;;  %v8184_v34 = vld [vmem:[%s9696_s18 + $0x204] ss:$8 sps:$4 sm:$0xff]   ;;  %v8251_v27 = vld [vmem:[%s9696_s18 + $0xeb0] ss:$8 sps:$4 sm:$0xff]  }
  0xff   : > { %6022 = vmatprep.subr.bf16.mxu0 %v8103_v35  ;;  %v8187_v35 = vld [vmem:[%s9696_s18 + $0xe04] ss:$8 sps:$4 sm:$0xff]  }
 0x101   : > { %5531 = vmatpush1.bf16.msra.mxu1 %v8098_v36  ;;  %v1224_v36 = vcombine.high %v9867_v32, %v9867_v32 }
 0x102   : > { %6023 = vmatpush1.bf16.msra.mxu0 %v8101_v37  ;;  %5532 = vmatprep.subr.bf16.mxu1 %v8106_v38  ;;  %v1371_v37 = vcombine.high %v9870_v33, %v9870_v33  ;;  %v1253_v38 = vcombine.high %v9795_v24, %v9795_v24 }
 0x103   : > { %6024 = vmatprep.subr.bf16.mxu0 %v8109_v39  ;;  %v1400_v39 = vcombine.high %v9798_v25, %v9798_v25  ;;  %v8188_v25 = vld [vmem:[%s9696_s18 + $0x210] ss:$8 sps:$4 sm:$0xff]  }
 0x104   : > { %v9892_v24 = vrot.slane %v1371_v37, %v9758_v57  ;;  %v8271_v37 = vld [vmem:[%s9696_s18 + $0xee4] ss:$8 sps:$4 sm:$0xff]  }
 0x105   : > { %5533 = vmatpush1.bf16.msra.mxu1 %v8104_v40  ;;  %v8182_v40 = vld [vmem:[%s9696_s18 + $0x200] ss:$8 sps:$4 sm:$0xff]  }
 0x106   : > { %6025 = vmatpush1.bf16.msra.mxu0 %v8107_v41  ;;  %5534 = vmatprep.subr.bf16.mxu1 %v8112_v42  ;;  %v8185_v41 = vld [vmem:[%s9696_s18 + $0xe00] ss:$8 sps:$4 sm:$0xff]   ;;  %v8190_v42 = vld [vmem:[%s9696_s18 + $0x214] ss:$8 sps:$4 sm:$0xff]  }
 0x107   : > { %6026 = vmatprep.subr.bf16.mxu0 %v8115_v43  ;;  %v8193_v43 = vld [vmem:[%s9696_s18 + $0xe14] ss:$8 sps:$4 sm:$0xff]  }
 0x109   : > { %5535 = vmatpush1.bf16.msra.mxu1 %v8110_v44  ;;  %v9889_v44 = vrot.slane %v1224_v36, %v9758_v57  ;;  %v8268_v36 = vld [vmem:[%s9696_s18 + $0x2e4] ss:$8 sps:$4 sm:$0xff]  }
 0x10a   : > { %6027 = vmatpush1.bf16.msra.mxu0 %v8113_v45  ;;  %5536 = vmatprep.subr.bf16.mxu1 %v8118_v46  ;;  %v8191_v45 = vld [vmem:[%s9696_s18 + $0xe10] ss:$8 sps:$4 sm:$0xff]   ;;  %v8196_v46 = vld [vmem:[%s9696_s18 + $0x224] ss:$8 sps:$4 sm:$0xff]  }
 0x10b   : > { %6028 = vmatprep.subr.bf16.mxu0 %v8121_v47  ;;  %v8199_v47 = vld [vmem:[%s9696_s18 + $0xe24] ss:$8 sps:$4 sm:$0xff]  }
 0x10d   : > { %5537 = vmatpush1.bf16.msra.mxu1 %v8116_v48  ;;  %v8194_v48 = vld [vmem:[%s9696_s18 + $0x220] ss:$8 sps:$4 sm:$0xff]  }
 0x10e   : > { %6029 = vmatpush1.bf16.msra.mxu0 %v8119_v49  ;;  %5538 = vmatprep.subr.bf16.mxu1 %v8124_v50  ;;  %v8197_v49 = vld [vmem:[%s9696_s18 + $0xe20] ss:$8 sps:$4 sm:$0xff]   ;;  %v8202_v50 = vld [vmem:[%s9696_s18 + $0x234] ss:$8 sps:$4 sm:$0xff]  }
 0x10f   : > { %6030 = vmatprep.subr.bf16.mxu0 %v8127_v52  ;;  %v8205_v52 = vld [vmem:[%s9696_s18 + $0xe34] ss:$8 sps:$4 sm:$0xff]  }
 0x111   : > { %5539 = vmatpush1.bf16.msra.mxu1 %v8122_v53  ;;  %v8200_v53 = vld [vmem:[%s9696_s18 + $0x230] ss:$8 sps:$4 sm:$0xff]  }
 0x112   : > { %6031 = vmatpush1.bf16.msra.mxu0 %v8125_v54  ;;  %5540 = vmatprep.subr.bf16.mxu1 %v8130_v55  ;;  %v8203_v54 = vld [vmem:[%s9696_s18 + $0xe30] ss:$8 sps:$4 sm:$0xff]   ;;  %v8208_v55 = vld [vmem:[%s9696_s18 + $0x244] ss:$8 sps:$4 sm:$0xff]  }
 0x113   : > { %6032 = vmatprep.subr.bf16.mxu0 %v8133_v56  ;;  %v8211_v56 = vld [vmem:[%s9696_s18 + $0xe44] ss:$8 sps:$4 sm:$0xff]  }
 0x115   : > { %5541 = vmatpush1.bf16.msra.mxu1 %v8128_v58  ;;  %v8206_v58 = vld [vmem:[%s9696_s18 + $0x240] ss:$8 sps:$4 sm:$0xff]  }
 0x116   : > { %6033 = vmatpush1.bf16.msra.mxu0 %v8131_v59  ;;  %5542 = vmatprep.subr.bf16.mxu1 %v8136_v61  ;;  %v8209_v59 = vld [vmem:[%s9696_s18 + $0xe40] ss:$8 sps:$4 sm:$0xff]   ;;  %v8214_v61 = vld [vmem:[%s9696_s18 + $0x254] ss:$8 sps:$4 sm:$0xff]  }
 0x117   : > { %6034 = vmatprep.subr.bf16.mxu0 %v8139_v62  ;;  %v8217_v62 = vld [vmem:[%s9696_s18 + $0xe54] ss:$8 sps:$4 sm:$0xff]  }
 0x119   : > { %5543 = vmatpush1.bf16.msra.mxu1 %v8134_v63  ;;  %v8212_v63 = vld [vmem:[%s9696_s18 + $0x250] ss:$8 sps:$4 sm:$0xff]  }
 0x11a   : > { %6035 = vmatpush1.bf16.msra.mxu0 %v8137_v1  ;;  %5544 = vmatprep.subr.bf16.mxu1 %v8142_v2  ;;  %v8215_v1 = vld [vmem:[%s9696_s18 + $0xe50] ss:$8 sps:$4 sm:$0xff]   ;;  %v8220_v2 = vld [vmem:[%s9696_s18 + $0x264] ss:$8 sps:$4 sm:$0xff]  }
 0x11b   : > { %6036 = vmatprep.subr.bf16.mxu0 %v8145_v3  ;;  %v8223_v3 = vld [vmem:[%s9696_s18 + $0xe64] ss:$8 sps:$4 sm:$0xff]  }
 0x11d   : > { %5545 = vmatpush1.bf16.msra.mxu1 %v8140_v4  ;;  %v8218_v4 = vld [vmem:[%s9696_s18 + $0x260] ss:$8 sps:$4 sm:$0xff]  }
 0x11e   : > { %6037 = vmatpush1.bf16.msra.mxu0 %v8143_v5  ;;  %5546 = vmatprep.subr.bf16.mxu1 %v8148_v6  ;;  %v8221_v5 = vld [vmem:[%s9696_s18 + $0xe60] ss:$8 sps:$4 sm:$0xff]   ;;  %v8226_v6 = vld [vmem:[%s9696_s18 + $0x274] ss:$8 sps:$4 sm:$0xff]  }
 0x11f   : > { %6038 = vmatprep.subr.bf16.mxu0 %v8151_v7  ;;  %v8229_v7 = vld [vmem:[%s9696_s18 + $0xe74] ss:$8 sps:$4 sm:$0xff]  }
 0x121   : > { %5547 = vmatpush1.bf16.msra.mxu1 %v8146_v8  ;;  %v8224_v8 = vld [vmem:[%s9696_s18 + $0x270] ss:$8 sps:$4 sm:$0xff]  }
 0x122   : > { %6039 = vmatpush1.bf16.msra.mxu0 %v8149_v9  ;;  %5548 = vmatprep.subr.bf16.mxu1 %v8154_v10  ;;  %v8227_v9 = vld [vmem:[%s9696_s18 + $0xe70] ss:$8 sps:$4 sm:$0xff]   ;;  %v8232_v10 = vld [vmem:[%s9696_s18 + $0x284] ss:$8 sps:$4 sm:$0xff]  }
 0x123   : > { %6040 = vmatprep.subr.bf16.mxu0 %v8157_v11  ;;  %v8235_v11 = vld [vmem:[%s9696_s18 + $0xe84] ss:$8 sps:$4 sm:$0xff]  }
 0x125   : > { %5549 = vmatpush1.bf16.msra.mxu1 %v8152_v12  ;;  %v8230_v12 = vld [vmem:[%s9696_s18 + $0x280] ss:$8 sps:$4 sm:$0xff]  }
 0x126   : > { %6041 = vmatpush1.bf16.msra.mxu0 %v8155_v13  ;;  %5550 = vmatprep.subr.bf16.mxu1 %v8160_v14  ;;  %v8233_v13 = vld [vmem:[%s9696_s18 + $0xe80] ss:$8 sps:$4 sm:$0xff]   ;;  %v8238_v14 = vld [vmem:[%s9696_s18 + $0x294] ss:$8 sps:$4 sm:$0xff]  }
 0x127   : > { %6042 = vmatprep.subr.bf16.mxu0 %v8163_v15  ;;  %v8241_v15 = vld [vmem:[%s9696_s18 + $0xe94] ss:$8 sps:$4 sm:$0xff]  }
 0x129   : > { %5551 = vmatpush1.bf16.msra.mxu1 %v8158_v16  ;;  %v8236_v16 = vld [vmem:[%s9696_s18 + $0x290] ss:$8 sps:$4 sm:$0xff]  }
 0x12a   : > { %6043 = vmatpush1.bf16.msra.mxu0 %v8161_v17  ;;  %5552 = vmatprep.subr.bf16.mxu1 %v8166_v18  ;;  %v8239_v17 = vld [vmem:[%s9696_s18 + $0xe90] ss:$8 sps:$4 sm:$0xff]   ;;  %v8244_v18 = vld [vmem:[%s9696_s18 + $0x2a4] ss:$8 sps:$4 sm:$0xff]  }
 0x12b   : > { %6044 = vmatprep.subr.bf16.mxu0 %v8169_v19  ;;  %v8247_v19 = vld [vmem:[%s9696_s18 + $0xea4] ss:$8 sps:$4 sm:$0xff]  }
 0x12d   : > { %5553 = vmatpush1.bf16.msra.mxu1 %v8164_v20  ;;  %v8242_v20 = vld [vmem:[%s9696_s18 + $0x2a0] ss:$8 sps:$4 sm:$0xff]  }
 0x12e   : > { %6045 = vmatpush1.bf16.msra.mxu0 %v8167_v21  ;;  %5554 = vmatprep.subr.bf16.mxu1 %v8172_v22  ;;  %v8245_v21 = vld [vmem:[%s9696_s18 + $0xea0] ss:$8 sps:$4 sm:$0xff]   ;;  %v8250_v22 = vld [vmem:[%s9696_s18 + $0x2b4] ss:$8 sps:$4 sm:$0xff]  }
 0x12f   : > { %6046 = vmatprep.subr.bf16.mxu0 %v8175_v23  ;;  %v8253_v23 = vld [vmem:[%s9696_s18 + $0xeb4] ss:$8 sps:$4 sm:$0xff]  }
 0x131   : > { %5555 = vmatpush1.bf16.msra.mxu1 %v8170_v28  ;;  %v8256_v28 = vld [vmem:[%s9696_s18 + $0x2c4] ss:$8 sps:$4 sm:$0xff]  }
 0x132   : > { %6047 = vmatpush1.bf16.msra.mxu0 %v8173_v29  ;;  %5556 = vmatprep.subr.bf16.mxu1 %v8178_v30  ;;  %v8259_v29 = vld [vmem:[%s9696_s18 + $0xec4] ss:$8 sps:$4 sm:$0xff]   ;;  %v8254_v30 = vld [vmem:[%s9696_s18 + $0x2c0] ss:$8 sps:$4 sm:$0xff]  }
 0x133   : > { %6048 = vmatprep.subr.bf16.mxu0 %v8181_v31  ;;  %v8257_v31 = vld [vmem:[%s9696_s18 + $0xec0] ss:$8 sps:$4 sm:$0xff]  }
 0x135   : > { %5557 = vmatpush1.bf16.msra.mxu1 %v8176_v60  ;;  %v8262_v60 = vld [vmem:[%s9696_s18 + $0x2d4] ss:$8 sps:$4 sm:$0xff]  }
 0x136   : > { %6049 = vmatpush1.bf16.msra.mxu0 %v8179_v0  ;;  %5567 = vmatprep.subr.bf16.mxu1 %v8184_v34  ;;  %v8265_v0 = vld [vmem:[%s9696_s18 + $0xed4] ss:$8 sps:$4 sm:$0xff]   ;;  %v8260_v34 = vld [vmem:[%s9696_s18 + $0x2d0] ss:$8 sps:$4 sm:$0xff]  }
 0x137   : > { %6059 = vmatprep.subr.bf16.mxu0 %v8187_v35  ;;  %v8263_v35 = vld [vmem:[%s9696_s18 + $0xed0] ss:$8 sps:$4 sm:$0xff]  }
 0x138   : > { %5559 = vmatmul.mubr.bf16.vlgmr.msra.gmra.mrb[0].mxu1 %v1253_v38  ;;  %v8266_v38 = vld [vmem:[%s9696_s18 + $0x2e0] ss:$8 sps:$4 sm:$0xff]  }
 0x139   : > { %6051 = vmatmul.mubr.bf16.vlgmr.msra.gmra.mrb[0].mxu0 %v1400_v39  ;;  %5568 = vmatpush1.bf16.msra.mxu1 %v8182_v40  ;;  %v8269_v39 = vld [vmem:[%s9696_s18 + $0xee0] ss:$8 sps:$4 sm:$0xff]   ;;  %v8274_v40 = vld [vmem:[%s9696_s18 + $0x2f4] ss:$8 sps:$4 sm:$0xff]  }
 0x13a   : > { %6060 = vmatpush1.bf16.msra.mxu0 %v8185_v41  ;;  %5569 = vmatprep.subr.bf16.mxu1 %v8190_v42  ;;  %v8277_v41 = vld [vmem:[%s9696_s18 + $0xef4] ss:$8 sps:$4 sm:$0xff]   ;;  %v8272_v42 = vld [vmem:[%s9696_s18 + $0x2f0] ss:$8 sps:$4 sm:$0xff]  }
 0x13b   : > { %6061 = vmatprep.subr.bf16.mxu0 %v8193_v43  ;;  %5599 = vmatprep.mubr.bf16.mxu1 %v9889_v44  ;;  %v8275_v43 = vld [vmem:[%s9696_s18 + $0xef0] ss:$8 sps:$4 sm:$0xff]  }
 0x13c   : > { %6091 = vmatprep.mubr.bf16.mxu0 %v9892_v24 }
 0x13d   : > { %5570 = vmatpush1.bf16.msra.mxu1 %v8188_v25  ;;  %v8280_v25 = vld [vmem:[%s9696_s18 + $0x304] ss:$8 sps:$4 sm:$0xff]  }
 0x13e   : > { %6062 = vmatpush1.bf16.msra.mxu0 %v8191_v45  ;;  %5571 = vmatprep.subr.bf16.mxu1 %v8196_v46  ;;  %v8283_v45 = vld [vmem:[%s9696_s18 + $0xf04] ss:$8 sps:$4 sm:$0xff]   ;;  %v9958_v46 = vrot.slane %v9867_v32, %v9758_v57  ;;  %v1256_v32 = vcombine.high %v9889_v44, %v9889_v44 }
 0x13f   : > { %6063 = vmatprep.subr.bf16.mxu0 %v8199_v47  ;;  %v9962_v47 = vrot.slane %v9870_v33, %v9758_v57  ;;  %v8284_v33 = vld [vmem:[%s9696_s18 + $0x310] ss:$8 sps:$4 sm:$0xff]   ;;  %v8292_v44 = vld [vmem:[%s9696_s18 + $0x324] ss:$8 sps:$4 sm:$0xff]  }
 0x141   : > { %5572 = vmatpush1.bf16.msra.mxu1 %v8194_v48  ;;  %v8278_v48 = vld [vmem:[%s9696_s18 + $0x300] ss:$8 sps:$4 sm:$0xff]  }
 0x142   : > { %6064 = vmatpush1.bf16.msra.mxu0 %v8197_v49  ;;  %5573 = vmatprep.subr.bf16.mxu1 %v8202_v50  ;;  %v8281_v49 = vld [vmem:[%s9696_s18 + $0xf00] ss:$8 sps:$4 sm:$0xff]   ;;  %v8286_v50 = vld [vmem:[%s9696_s18 + $0x314] ss:$8 sps:$4 sm:$0xff]  }
 0x143   : > { %6065 = vmatprep.subr.bf16.mxu0 %v8205_v52  ;;  %v8289_v52 = vld [vmem:[%s9696_s18 + $0xf14] ss:$8 sps:$4 sm:$0xff]  }
 0x145   : > { %5574 = vmatpush1.bf16.msra.mxu1 %v8200_v53  ;;  %v1403_v53 = vcombine.high %v9892_v24, %v9892_v24  ;;  %v8290_v24 = vld [vmem:[%s9696_s18 + $0x320] ss:$8 sps:$4 sm:$0xff]  }
 0x146   : > { %6066 = vmatpush1.bf16.msra.mxu0 %v8203_v54  ;;  %5575 = vmatprep.subr.bf16.mxu1 %v8208_v55  ;;  %v8287_v54 = vld [vmem:[%s9696_s18 + $0xf10] ss:$8 sps:$4 sm:$0xff]   ;;  %v8295_v55 = vld [vmem:[%s9696_s18 + $0xf24] ss:$8 sps:$4 sm:$0xff]  }
 0x147   : > { %6067 = vmatprep.subr.bf16.mxu0 %v8211_v56  ;;  %v8293_v56 = vld [vmem:[%s9696_s18 + $0xf20] ss:$8 sps:$4 sm:$0xff]  }
 0x149   : > { %5576 = vmatpush1.bf16.msra.mxu1 %v8206_v58  ;;  %v8298_v58 = vld [vmem:[%s9696_s18 + $0x334] ss:$8 sps:$4 sm:$0xff]  }
 0x14a   : > { %6068 = vmatpush1.bf16.msra.mxu0 %v8209_v59  ;;  %5577 = vmatprep.subr.bf16.mxu1 %v8214_v61  ;;  %v8301_v59 = vld [vmem:[%s9696_s18 + $0xf34] ss:$8 sps:$4 sm:$0xff]   ;;  %v8296_v61 = vld [vmem:[%s9696_s18 + $0x330] ss:$8 sps:$4 sm:$0xff]  }
 0x14b   : > { %6069 = vmatprep.subr.bf16.mxu0 %v8217_v62  ;;  %v8299_v62 = vld [vmem:[%s9696_s18 + $0xf30] ss:$8 sps:$4 sm:$0xff]  }
 0x14d   : > { %5578 = vmatpush1.bf16.msra.mxu1 %v8212_v63  ;;  %v8304_v63 = vld [vmem:[%s9696_s18 + $0x344] ss:$8 sps:$4 sm:$0xff]  }
 0x14e   : > { %6070 = vmatpush1.bf16.msra.mxu0 %v8215_v1  ;;  %5579 = vmatprep.subr.bf16.mxu1 %v8220_v2  ;;  %v8307_v1 = vld [vmem:[%s9696_s18 + $0xf44] ss:$8 sps:$4 sm:$0xff]   ;;  %v8302_v2 = vld [vmem:[%s9696_s18 + $0x340] ss:$8 sps:$4 sm:$0xff]  }
 0x14f   : > { %6071 = vmatprep.subr.bf16.mxu0 %v8223_v3  ;;  %v8305_v3 = vld [vmem:[%s9696_s18 + $0xf40] ss:$8 sps:$4 sm:$0xff]  }
 0x151   : > { %5580 = vmatpush1.bf16.msra.mxu1 %v8218_v4  ;;  %v8310_v4 = vld [vmem:[%s9696_s18 + $0x354] ss:$8 sps:$4 sm:$0xff]  }
 0x152   : > { %6072 = vmatpush1.bf16.msra.mxu0 %v8221_v5  ;;  %5581 = vmatprep.subr.bf16.mxu1 %v8226_v6  ;;  %v8313_v5 = vld [vmem:[%s9696_s18 + $0xf54] ss:$8 sps:$4 sm:$0xff]   ;;  %v8308_v6 = vld [vmem:[%s9696_s18 + $0x350] ss:$8 sps:$4 sm:$0xff]  }
 0x153   : > { %6073 = vmatprep.subr.bf16.mxu0 %v8229_v7  ;;  %v8311_v7 = vld [vmem:[%s9696_s18 + $0xf50] ss:$8 sps:$4 sm:$0xff]  }
 0x155   : > { %5582 = vmatpush1.bf16.msra.mxu1 %v8224_v8  ;;  %v8316_v8 = vld [vmem:[%s9696_s18 + $0x364] ss:$8 sps:$4 sm:$0xff]  }
 0x156   : > { %6074 = vmatpush1.bf16.msra.mxu0 %v8227_v9  ;;  %5583 = vmatprep.subr.bf16.mxu1 %v8232_v10  ;;  %v8319_v9 = vld [vmem:[%s9696_s18 + $0xf64] ss:$8 sps:$4 sm:$0xff]   ;;  %v8314_v10 = vld [vmem:[%s9696_s18 + $0x360] ss:$8 sps:$4 sm:$0xff]  }
 0x157   : > { %6075 = vmatprep.subr.bf16.mxu0 %v8235_v11  ;;  %v8317_v11 = vld [vmem:[%s9696_s18 + $0xf60] ss:$8 sps:$4 sm:$0xff]  }
 0x159   : > { %5584 = vmatpush1.bf16.msra.mxu1 %v8230_v12  ;;  %v8322_v12 = vld [vmem:[%s9696_s18 + $0x374] ss:$8 sps:$4 sm:$0xff]  }
 0x15a   : > { %6076 = vmatpush1.bf16.msra.mxu0 %v8233_v13  ;;  %5585 = vmatprep.subr.bf16.mxu1 %v8238_v14  ;;  %v8325_v13 = vld [vmem:[%s9696_s18 + $0xf74] ss:$8 sps:$4 sm:$0xff]   ;;  %v8320_v14 = vld [vmem:[%s9696_s18 + $0x370] ss:$8 sps:$4 sm:$0xff]  }
 0x15b   : > { %6077 = vmatprep.subr.bf16.mxu0 %v8241_v15  ;;  %v8323_v15 = vld [vmem:[%s9696_s18 + $0xf70] ss:$8 sps:$4 sm:$0xff]  }
 0x15d   : > { %5586 = vmatpush1.bf16.msra.mxu1 %v8236_v16  ;;  %v8328_v16 = vld [vmem:[%s9696_s18 + $0x384] ss:$8 sps:$4 sm:$0xff]  }
 0x15e   : > { %6078 = vmatpush1.bf16.msra.mxu0 %v8239_v17  ;;  %5587 = vmatprep.subr.bf16.mxu1 %v8244_v18  ;;  %v8331_v17 = vld [vmem:[%s9696_s18 + $0xf84] ss:$8 sps:$4 sm:$0xff]   ;;  %v8326_v18 = vld [vmem:[%s9696_s18 + $0x380] ss:$8 sps:$4 sm:$0xff]  }
 0x15f   : > { %6079 = vmatprep.subr.bf16.mxu0 %v8247_v19  ;;  %v8329_v19 = vld [vmem:[%s9696_s18 + $0xf80] ss:$8 sps:$4 sm:$0xff]  }
 0x161   : > { %5588 = vmatpush1.bf16.msra.mxu1 %v8242_v20  ;;  %v8334_v20 = vld [vmem:[%s9696_s18 + $0x394] ss:$8 sps:$4 sm:$0xff]  }
 0x162   : > { %6080 = vmatpush1.bf16.msra.mxu0 %v8245_v21  ;;  %5589 = vmatprep.subr.bf16.mxu1 %v8250_v22  ;;  %v8337_v21 = vld [vmem:[%s9696_s18 + $0xf94] ss:$8 sps:$4 sm:$0xff]   ;;  %v8332_v22 = vld [vmem:[%s9696_s18 + $0x390] ss:$8 sps:$4 sm:$0xff]  }
 0x163   : > { %6081 = vmatprep.subr.bf16.mxu0 %v8253_v23  ;;  %v8335_v23 = vld [vmem:[%s9696_s18 + $0xf90] ss:$8 sps:$4 sm:$0xff]  }
 0x165   : > { %5590 = vmatpush1.bf16.msra.mxu1 %v8248_v26  ;;  %v8340_v26 = vld [vmem:[%s9696_s18 + $0x3a4] ss:$8 sps:$4 sm:$0xff]  }
 0x166   : > { %6082 = vmatpush1.bf16.msra.mxu0 %v8251_v27  ;;  %5591 = vmatprep.subr.bf16.mxu1 %v8256_v28  ;;  %v8343_v27 = vld [vmem:[%s9696_s18 + $0xfa4] ss:$8 sps:$4 sm:$0xff]   ;;  %v8338_v28 = vld [vmem:[%s9696_s18 + $0x3a0] ss:$8 sps:$4 sm:$0xff]  }
 0x167   : > { %6083 = vmatprep.subr.bf16.mxu0 %v8259_v29  ;;  %v8341_v29 = vld [vmem:[%s9696_s18 + $0xfa0] ss:$8 sps:$4 sm:$0xff]  }
 0x169   : > { %5592 = vmatpush1.bf16.msra.mxu1 %v8254_v30  ;;  %v8346_v30 = vld [vmem:[%s9696_s18 + $0x3b4] ss:$8 sps:$4 sm:$0xff]  }
 0x16a   : > { %6084 = vmatpush1.bf16.msra.mxu0 %v8257_v31  ;;  %5593 = vmatprep.subr.bf16.mxu1 %v8262_v60  ;;  %v8349_v31 = vld [vmem:[%s9696_s18 + $0xfb4] ss:$8 sps:$4 sm:$0xff]   ;;  %v8344_v60 = vld [vmem:[%s9696_s18 + $0x3b0] ss:$8 sps:$4 sm:$0xff]  }
 0x16b   : > { %6085 = vmatprep.subr.bf16.mxu0 %v8265_v0  ;;  %v8347_v0 = vld [vmem:[%s9696_s18 + $0xfb0] ss:$8 sps:$4 sm:$0xff]  }
 0x16d   : > { %5594 = vmatpush1.bf16.msra.mxu1 %v8260_v34  ;;  %v8352_v34 = vld [vmem:[%s9696_s18 + $0x3c4] ss:$8 sps:$4 sm:$0xff]  }
 0x16e   : > { %6086 = vmatpush1.bf16.msra.mxu0 %v8263_v35  ;;  %5595 = vmatprep.subr.bf16.mxu1 %v8268_v36  ;;  %v8355_v35 = vld [vmem:[%s9696_s18 + $0xfc4] ss:$8 sps:$4 sm:$0xff]   ;;  %v8350_v36 = vld [vmem:[%s9696_s18 + $0x3c0] ss:$8 sps:$4 sm:$0xff]  }
 0x16f   : > { %6087 = vmatprep.subr.bf16.mxu0 %v8271_v37  ;;  %v8353_v37 = vld [vmem:[%s9696_s18 + $0xfc0] ss:$8 sps:$4 sm:$0xff]  }
 0x171   : > { %5596 = vmatpush1.bf16.msra.mxu1 %v8266_v38  ;;  %v8358_v38 = vld [vmem:[%s9696_s18 + $0x3d4] ss:$8 sps:$4 sm:$0xff]  }
 0x172   : > { %6088 = vmatpush1.bf16.msra.mxu0 %v8269_v39  ;;  %5597 = vmatprep.subr.bf16.mxu1 %v8274_v40  ;;  %v8361_v39 = vld [vmem:[%s9696_s18 + $0xfd4] ss:$8 sps:$4 sm:$0xff]   ;;  %v8356_v40 = vld [vmem:[%s9696_s18 + $0x3d0] ss:$8 sps:$4 sm:$0xff]  }
 0x173   : > { %6089 = vmatprep.subr.bf16.mxu0 %v8277_v41  ;;  %v8359_v41 = vld [vmem:[%s9696_s18 + $0xfd0] ss:$8 sps:$4 sm:$0xff]  }
 0x175   : > { %5598 = vmatpush1.bf16.msra.mxu1 %v8272_v42  ;;  %v8364_v42 = vld [vmem:[%s9696_s18 + $0x3e4] ss:$8 sps:$4 sm:$0xff]  }
 0x176   : > { %6090 = vmatpush1.bf16.msra.mxu0 %v8275_v43  ;;  %5608 = vmatprep.subr.bf16.mxu1 %v8280_v25  ;;  %v8367_v43 = vld [vmem:[%s9696_s18 + $0xfe4] ss:$8 sps:$4 sm:$0xff]   ;;  %v8362_v25 = vld [vmem:[%s9696_s18 + $0x3e0] ss:$8 sps:$4 sm:$0xff]  }
 0x177   : > { %6100 = vmatprep.subr.bf16.mxu0 %v8283_v45  ;;  %v8365_v45 = vld [vmem:[%s9696_s18 + $0xfe0] ss:$8 sps:$4 sm:$0xff]  }
 0x178   : > { %5600 = vmatmul.mubr.bf16.vlgmr.msra.gmra.mrb[0].mxu1 %v9958_v46 }
 0x179   : > { %6092 = vmatmul.mubr.bf16.vlgmr.msra.gmra.mrb[0].mxu0 %v9962_v47  ;;  %5609 = vmatpush1.bf16.msra.mxu1 %v8278_v48  ;;  %v10029_v48 = vld.sshfl [vmem:[%s9689_s11 + $0x8] sm:$0xff pattern:$0x75316420] }
 0x17a   : > { %6101 = vmatpush1.bf16.msra.mxu0 %v8281_v49  ;;  %5610 = vmatprep.subr.bf16.mxu1 %v8286_v50  ;;  %v10032_v49 = vld.sshfl [vmem:[%s9689_s11 + $0x20] sm:$0xff pattern:$0x75316420] }
 0x17b   : > { %6102 = vmatprep.subr.bf16.mxu0 %v8289_v52  ;;  %5640 = vmatprep.mubr.bf16.mxu1 %v1256_v32  ;;  %v8370_v50 = vld [vmem:[%s9696_s18 + $0x3f4] ss:$8 sps:$4 sm:$0xff]   ;;  %v8368_v32 = vld [vmem:[%s9696_s18 + $0x3f0] ss:$8 sps:$4 sm:$0xff]  }
 0x17c   : > { %6132 = vmatprep.mubr.bf16.mxu0 %v1403_v53  ;;  %v8373_v52 = vld [vmem:[%s9696_s18 + $0xff4] ss:$8 sps:$4 sm:$0xff]   ;;  %v8371_v53 = vld [vmem:[%s9696_s18 + $0xff0] ss:$8 sps:$4 sm:$0xff]  }
 0x17d   : > { %5611 = vmatpush1.bf16.msra.mxu1 %v8284_v33  ;;  %v8376_v33 = vld [vmem:[%s9696_s18 + $0x404] ss:$8 sps:$4 sm:$0xff]  }
 0x17e   : > { %6103 = vmatpush1.bf16.msra.mxu0 %v8287_v54  ;;  %5612 = vmatprep.subr.bf16.mxu1 %v8292_v44  ;;  %v8379_v54 = vld [vmem:[%s9696_s18 + $0x1004] ss:$8 sps:$4 sm:$0xff]   ;;  %v1272_v44 = vcombine.high %v10029_v48, %v10029_v48 }
 0x17f   : > { %6104 = vmatprep.subr.bf16.mxu0 %v8295_v55  ;;  %v1419_v55 = vcombine.high %v10032_v49, %v10032_v49 }
 0x181   : > { %5613 = vmatpush1.bf16.msra.mxu1 %v8290_v24  ;;  %v8374_v24 = vld [vmem:[%s9696_s18 + $0x400] ss:$8 sps:$4 sm:$0xff]  }
 0x182   : > { %6105 = vmatpush1.bf16.msra.mxu0 %v8293_v56  ;;  %5614 = vmatprep.subr.bf16.mxu1 %v8298_v58  ;;  %v8377_v56 = vld [vmem:[%s9696_s18 + $0x1000] ss:$8 sps:$4 sm:$0xff]   ;;  %v1254_v58 = vcombine.high %v9958_v46, %v9958_v46  ;;  %v8380_v46 = vld [vmem:[%s9696_s18 + $0x410] ss:$8 sps:$4 sm:$0xff]  }
 0x183   : > { %6106 = vmatprep.subr.bf16.mxu0 %v8301_v59  ;;  %v1401_v59 = vcombine.high %v9962_v47, %v9962_v47  ;;  %v8383_v47 = vld [vmem:[%s9696_s18 + $0x1010] ss:$8 sps:$4 sm:$0xff]  }
 0x185   : > { %5615 = vmatpush1.bf16.msra.mxu1 %v8296_v61  ;;  %v8382_v61 = vld [vmem:[%s9696_s18 + $0x414] ss:$8 sps:$4 sm:$0xff]  }
 0x186   : > { %6107 = vmatpush1.bf16.msra.mxu0 %v8299_v62  ;;  %5616 = vmatprep.subr.bf16.mxu1 %v8304_v63  ;;  %v8385_v62 = vld [vmem:[%s9696_s18 + $0x1014] ss:$8 sps:$4 sm:$0xff]   ;;  %v10053_v63 = vrot.slane %v1272_v44, %v9758_v57  ;;  %v8460_v44 = vld [vmem:[%s9696_s18 + $0x4e4] ss:$8 sps:$4 sm:$0xff]  }
 0x187   : > { %6108 = vmatprep.subr.bf16.mxu0 %v8307_v1  ;;  %v10056_v1 = vrot.slane %v1419_v55, %v9758_v57  ;;  %v8463_v55 = vld [vmem:[%s9696_s18 + $0x10e4] ss:$8 sps:$4 sm:$0xff]  }
 0x189   : > { %5617 = vmatpush1.bf16.msra.mxu1 %v8302_v2  ;;  %v8388_v2 = vld [vmem:[%s9696_s18 + $0x424] ss:$8 sps:$4 sm:$0xff]  }
 0x18a   : > { %6109 = vmatpush1.bf16.msra.mxu0 %v8305_v3  ;;  %5618 = vmatprep.subr.bf16.mxu1 %v8310_v4  ;;  %v8391_v3 = vld [vmem:[%s9696_s18 + $0x1024] ss:$8 sps:$4 sm:$0xff]   ;;  %v8386_v4 = vld [vmem:[%s9696_s18 + $0x420] ss:$8 sps:$4 sm:$0xff]  }
 0x18b   : > { %6110 = vmatprep.subr.bf16.mxu0 %v8313_v5  ;;  %v8389_v5 = vld [vmem:[%s9696_s18 + $0x1020] ss:$8 sps:$4 sm:$0xff]  }
 0x18d   : > { %5619 = vmatpush1.bf16.msra.mxu1 %v8308_v6  ;;  %v8394_v6 = vld [vmem:[%s9696_s18 + $0x434] ss:$8 sps:$4 sm:$0xff]  }
 0x18e   : > { %6111 = vmatpush1.bf16.msra.mxu0 %v8311_v7  ;;  %5620 = vmatprep.subr.bf16.mxu1 %v8316_v8  ;;  %v8397_v7 = vld [vmem:[%s9696_s18 + $0x1034] ss:$8 sps:$4 sm:$0xff]   ;;  %v8392_v8 = vld [vmem:[%s9696_s18 + $0x430] ss:$8 sps:$4 sm:$0xff]  }
 0x18f   : > { %6112 = vmatprep.subr.bf16.mxu0 %v8319_v9  ;;  %v8395_v9 = vld [vmem:[%s9696_s18 + $0x1030] ss:$8 sps:$4 sm:$0xff]  }
 0x191   : > { %5621 = vmatpush1.bf16.msra.mxu1 %v8314_v10  ;;  %v8400_v10 = vld [vmem:[%s9696_s18 + $0x444] ss:$8 sps:$4 sm:$0xff]  }
 0x192   : > { %6113 = vmatpush1.bf16.msra.mxu0 %v8317_v11  ;;  %5622 = vmatprep.subr.bf16.mxu1 %v8322_v12  ;;  %v8403_v11 = vld [vmem:[%s9696_s18 + $0x1044] ss:$8 sps:$4 sm:$0xff]   ;;  %v8398_v12 = vld [vmem:[%s9696_s18 + $0x440] ss:$8 sps:$4 sm:$0xff]  }
 0x193   : > { %6114 = vmatprep.subr.bf16.mxu0 %v8325_v13  ;;  %v8401_v13 = vld [vmem:[%s9696_s18 + $0x1040] ss:$8 sps:$4 sm:$0xff]  }
 0x195   : > { %5623 = vmatpush1.bf16.msra.mxu1 %v8320_v14  ;;  %v8406_v14 = vld [vmem:[%s9696_s18 + $0x454] ss:$8 sps:$4 sm:$0xff]  }
 0x196   : > { %6115 = vmatpush1.bf16.msra.mxu0 %v8323_v15  ;;  %5624 = vmatprep.subr.bf16.mxu1 %v8328_v16  ;;  %v8409_v15 = vld [vmem:[%s9696_s18 + $0x1054] ss:$8 sps:$4 sm:$0xff]   ;;  %v8404_v16 = vld [vmem:[%s9696_s18 + $0x450] ss:$8 sps:$4 sm:$0xff]  }
 0x197   : > { %6116 = vmatprep.subr.bf16.mxu0 %v8331_v17  ;;  %v8407_v17 = vld [vmem:[%s9696_s18 + $0x1050] ss:$8 sps:$4 sm:$0xff]  }
 0x199   : > { %5625 = vmatpush1.bf16.msra.mxu1 %v8326_v18  ;;  %v8412_v18 = vld [vmem:[%s9696_s18 + $0x464] ss:$8 sps:$4 sm:$0xff]  }
 0x19a   : > { %6117 = vmatpush1.bf16.msra.mxu0 %v8329_v19  ;;  %5626 = vmatprep.subr.bf16.mxu1 %v8334_v20  ;;  %v8415_v19 = vld [vmem:[%s9696_s18 + $0x1064] ss:$8 sps:$4 sm:$0xff]   ;;  %v8410_v20 = vld [vmem:[%s9696_s18 + $0x460] ss:$8 sps:$4 sm:$0xff]  }
 0x19b   : > { %6118 = vmatprep.subr.bf16.mxu0 %v8337_v21  ;;  %v8413_v21 = vld [vmem:[%s9696_s18 + $0x1060] ss:$8 sps:$4 sm:$0xff]  }
 0x19d   : > { %5627 = vmatpush1.bf16.msra.mxu1 %v8332_v22  ;;  %v8418_v22 = vld [vmem:[%s9696_s18 + $0x474] ss:$8 sps:$4 sm:$0xff]  }
 0x19e   : > { %6119 = vmatpush1.bf16.msra.mxu0 %v8335_v23  ;;  %5628 = vmatprep.subr.bf16.mxu1 %v8340_v26  ;;  %v8421_v23 = vld [vmem:[%s9696_s18 + $0x1074] ss:$8 sps:$4 sm:$0xff]   ;;  %v8416_v26 = vld [vmem:[%s9696_s18 + $0x470] ss:$8 sps:$4 sm:$0xff]  }
 0x19f   : > { %6120 = vmatprep.subr.bf16.mxu0 %v8343_v27  ;;  %v8419_v27 = vld [vmem:[%s9696_s18 + $0x1070] ss:$8 sps:$4 sm:$0xff]  }
 0x1a1   : > { %5629 = vmatpush1.bf16.msra.mxu1 %v8338_v28  ;;  %v8424_v28 = vld [vmem:[%s9696_s18 + $0x484] ss:$8 sps:$4 sm:$0xff]  }
 0x1a2   : > { %6121 = vmatpush1.bf16.msra.mxu0 %v8341_v29  ;;  %5630 = vmatprep.subr.bf16.mxu1 %v8346_v30  ;;  %v8427_v29 = vld [vmem:[%s9696_s18 + $0x1084] ss:$8 sps:$4 sm:$0xff]   ;;  %v8422_v30 = vld [vmem:[%s9696_s18 + $0x480] ss:$8 sps:$4 sm:$0xff]  }
 0x1a3   : > { %6122 = vmatprep.subr.bf16.mxu0 %v8349_v31  ;;  %v8425_v31 = vld [vmem:[%s9696_s18 + $0x1080] ss:$8 sps:$4 sm:$0xff]  }
 0x1a5   : > { %5631 = vmatpush1.bf16.msra.mxu1 %v8344_v60  ;;  %v8430_v60 = vld [vmem:[%s9696_s18 + $0x494] ss:$8 sps:$4 sm:$0xff]  }
 0x1a6   : > { %6123 = vmatpush1.bf16.msra.mxu0 %v8347_v0  ;;  %5632 = vmatprep.subr.bf16.mxu1 %v8352_v34  ;;  %v8433_v0 = vld [vmem:[%s9696_s18 + $0x1094] ss:$8 sps:$4 sm:$0xff]   ;;  %v8428_v34 = vld [vmem:[%s9696_s18 + $0x490] ss:$8 sps:$4 sm:$0xff]  }
 0x1a7   : > { %6124 = vmatprep.subr.bf16.mxu0 %v8355_v35  ;;  %v8431_v35 = vld [vmem:[%s9696_s18 + $0x1090] ss:$8 sps:$4 sm:$0xff]  }
 0x1a9   : > { %5633 = vmatpush1.bf16.msra.mxu1 %v8350_v36  ;;  %v8436_v36 = vld [vmem:[%s9696_s18 + $0x4a4] ss:$8 sps:$4 sm:$0xff]  }
 0x1aa   : > { %6125 = vmatpush1.bf16.msra.mxu0 %v8353_v37  ;;  %5634 = vmatprep.subr.bf16.mxu1 %v8358_v38  ;;  %v8439_v37 = vld [vmem:[%s9696_s18 + $0x10a4] ss:$8 sps:$4 sm:$0xff]   ;;  %v8434_v38 = vld [vmem:[%s9696_s18 + $0x4a0] ss:$8 sps:$4 sm:$0xff]  }
 0x1ab   : > { %6126 = vmatprep.subr.bf16.mxu0 %v8361_v39  ;;  %v8437_v39 = vld [vmem:[%s9696_s18 + $0x10a0] ss:$8 sps:$4 sm:$0xff]  }
 0x1ad   : > { %5635 = vmatpush1.bf16.msra.mxu1 %v8356_v40  ;;  %v8442_v40 = vld [vmem:[%s9696_s18 + $0x4b4] ss:$8 sps:$4 sm:$0xff]  }
 0x1ae   : > { %6127 = vmatpush1.bf16.msra.mxu0 %v8359_v41  ;;  %5636 = vmatprep.subr.bf16.mxu1 %v8364_v42  ;;  %v8445_v41 = vld [vmem:[%s9696_s18 + $0x10b4] ss:$8 sps:$4 sm:$0xff]   ;;  %v8440_v42 = vld [vmem:[%s9696_s18 + $0x4b0] ss:$8 sps:$4 sm:$0xff]  }
 0x1af   : > { %6128 = vmatprep.subr.bf16.mxu0 %v8367_v43  ;;  %v8443_v43 = vld [vmem:[%s9696_s18 + $0x10b0] ss:$8 sps:$4 sm:$0xff]  }
 0x1b1   : > { %5637 = vmatpush1.bf16.msra.mxu1 %v8362_v25  ;;  %v8448_v25 = vld [vmem:[%s9696_s18 + $0x4c4] ss:$8 sps:$4 sm:$0xff]  }
 0x1b2   : > { %6129 = vmatpush1.bf16.msra.mxu0 %v8365_v45  ;;  %5638 = vmatprep.subr.bf16.mxu1 %v8370_v50  ;;  %v8451_v45 = vld [vmem:[%s9696_s18 + $0x10c4] ss:$8 sps:$4 sm:$0xff]   ;;  %v8446_v50 = vld [vmem:[%s9696_s18 + $0x4c0] ss:$8 sps:$4 sm:$0xff]  }
 0x1b3   : > { %6130 = vmatprep.subr.bf16.mxu0 %v8373_v52  ;;  %v8449_v52 = vld [vmem:[%s9696_s18 + $0x10c0] ss:$8 sps:$4 sm:$0xff]  }
 0x1b5   : > { %5639 = vmatpush1.bf16.msra.mxu1 %v8368_v32  ;;  %v8454_v32 = vld [vmem:[%s9696_s18 + $0x4d4] ss:$8 sps:$4 sm:$0xff]  }
 0x1b6   : > { %6131 = vmatpush1.bf16.msra.mxu0 %v8371_v53  ;;  %5649 = vmatprep.subr.bf16.mxu1 %v8376_v33  ;;  %v8457_v53 = vld [vmem:[%s9696_s18 + $0x10d4] ss:$8 sps:$4 sm:$0xff]   ;;  %v8452_v33 = vld [vmem:[%s9696_s18 + $0x4d0] ss:$8 sps:$4 sm:$0xff]  }
 0x1b7   : > { %6141 = vmatprep.subr.bf16.mxu0 %v8379_v54  ;;  %v8455_v54 = vld [vmem:[%s9696_s18 + $0x10d0] ss:$8 sps:$4 sm:$0xff]  }
 0x1b8   : > { %5641 = vmatmul.mubr.bf16.vlgmr.msra.gmra.mrb[0].mxu1 %v1254_v58  ;;  %v8466_v58 = vld [vmem:[%s9696_s18 + $0x4f4] ss:$8 sps:$4 sm:$0xff]  }
 0x1b9   : > { %6133 = vmatmul.mubr.bf16.vlgmr.msra.gmra.mrb[0].mxu0 %v1401_v59  ;;  %5650 = vmatpush1.bf16.msra.mxu1 %v8374_v24  ;;  %v8458_v24 = vld [vmem:[%s9696_s18 + $0x4e0] ss:$8 sps:$4 sm:$0xff]   ;;  %v8469_v59 = vld [vmem:[%s9696_s18 + $0x10f4] ss:$8 sps:$4 sm:$0xff]  }
 0x1ba   : > { %6142 = vmatpush1.bf16.msra.mxu0 %v8377_v56  ;;  %5651 = vmatprep.subr.bf16.mxu1 %v8382_v61  ;;  %v8461_v56 = vld [vmem:[%s9696_s18 + $0x10e0] ss:$8 sps:$4 sm:$0xff]   ;;  %v8464_v61 = vld [vmem:[%s9696_s18 + $0x4f0] ss:$8 sps:$4 sm:$0xff]  }
 0x1bb   : > { %6143 = vmatprep.subr.bf16.mxu0 %v8385_v62  ;;  %5681 = vmatprep.mubr.bf16.mxu1 %v10053_v63  ;;  %v8467_v62 = vld [vmem:[%s9696_s18 + $0x10f0] ss:$8 sps:$4 sm:$0xff]  }
 0x1bc   : > { %6173 = vmatprep.mubr.bf16.mxu0 %v10056_v1 }
 0x1bd   : > { %5652 = vmatpush1.bf16.msra.mxu1 %v8380_v46  ;;  %v8472_v46 = vld [vmem:[%s9696_s18 + $0x504] ss:$8 sps:$4 sm:$0xff]  }
 0x1be   : > { %6144 = vmatpush1.bf16.msra.mxu0 %v8383_v47  ;;  %5653 = vmatprep.subr.bf16.mxu1 %v8388_v2  ;;  %v8475_v47 = vld [vmem:[%s9696_s18 + $0x1104] ss:$8 sps:$4 sm:$0xff]   ;;  %v10122_v2 = vrot.slane %v10029_v48, %v9758_v57  ;;  %v1304_v48 = vcombine.high %v10053_v63, %v10053_v63 }
 0x1bf   : > { %6145 = vmatprep.subr.bf16.mxu0 %v8391_v3  ;;  %v10126_v3 = vrot.slane %v10032_v49, %v9758_v57  ;;  %v8476_v49 = vld [vmem:[%s9696_s18 + $0x510] ss:$8 sps:$4 sm:$0xff]   ;;  %v8484_v63 = vld [vmem:[%s9696_s18 + $0x524] ss:$8 sps:$4 sm:$0xff]  }
 0x1c1   : > { %5654 = vmatpush1.bf16.msra.mxu1 %v8386_v4  ;;  %v8470_v4 = vld [vmem:[%s9696_s18 + $0x500] ss:$8 sps:$4 sm:$0xff]  }
 0x1c2   : > { %6146 = vmatpush1.bf16.msra.mxu0 %v8389_v5  ;;  %5655 = vmatprep.subr.bf16.mxu1 %v8394_v6  ;;  %v8473_v5 = vld [vmem:[%s9696_s18 + $0x1100] ss:$8 sps:$4 sm:$0xff]   ;;  %v8478_v6 = vld [vmem:[%s9696_s18 + $0x514] ss:$8 sps:$4 sm:$0xff]  }
 0x1c3   : > { %6147 = vmatprep.subr.bf16.mxu0 %v8397_v7  ;;  %v8481_v7 = vld [vmem:[%s9696_s18 + $0x1114] ss:$8 sps:$4 sm:$0xff]  }
 0x1c5   : > { %5656 = vmatpush1.bf16.msra.mxu1 %v8392_v8  ;;  %v1451_v8 = vcombine.high %v10056_v1, %v10056_v1  ;;  %v8482_v1 = vld [vmem:[%s9696_s18 + $0x520] ss:$8 sps:$4 sm:$0xff]  }
 0x1c6   : > { %6148 = vmatpush1.bf16.msra.mxu0 %v8395_v9  ;;  %5657 = vmatprep.subr.bf16.mxu1 %v8400_v10  ;;  %v8479_v9 = vld [vmem:[%s9696_s18 + $0x1110] ss:$8 sps:$4 sm:$0xff]   ;;  %v8487_v10 = vld [vmem:[%s9696_s18 + $0x1124] ss:$8 sps:$4 sm:$0xff]  }
 0x1c7   : > { %6149 = vmatprep.subr.bf16.mxu0 %v8403_v11  ;;  %v8485_v11 = vld [vmem:[%s9696_s18 + $0x1120] ss:$8 sps:$4 sm:$0xff]  }
 0x1c9   : > { %5658 = vmatpush1.bf16.msra.mxu1 %v8398_v12  ;;  %v8490_v12 = vld [vmem:[%s9696_s18 + $0x534] ss:$8 sps:$4 sm:$0xff]  }
 0x1ca   : > { %6150 = vmatpush1.bf16.msra.mxu0 %v8401_v13  ;;  %5659 = vmatprep.subr.bf16.mxu1 %v8406_v14  ;;  %v8493_v13 = vld [vmem:[%s9696_s18 + $0x1134] ss:$8 sps:$4 sm:$0xff]   ;;  %v8488_v14 = vld [vmem:[%s9696_s18 + $0x530] ss:$8 sps:$4 sm:$0xff]  }
 0x1cb   : > { %6151 = vmatprep.subr.bf16.mxu0 %v8409_v15  ;;  %v8491_v15 = vld [vmem:[%s9696_s18 + $0x1130] ss:$8 sps:$4 sm:$0xff]  }
 0x1cd   : > { %5660 = vmatpush1.bf16.msra.mxu1 %v8404_v16  ;;  %v8496_v16 = vld [vmem:[%s9696_s18 + $0x544] ss:$8 sps:$4 sm:$0xff]  }
 0x1ce   : > { %6152 = vmatpush1.bf16.msra.mxu0 %v8407_v17  ;;  %5661 = vmatprep.subr.bf16.mxu1 %v8412_v18  ;;  %v8499_v17 = vld [vmem:[%s9696_s18 + $0x1144] ss:$8 sps:$4 sm:$0xff]   ;;  %v8494_v18 = vld [vmem:[%s9696_s18 + $0x540] ss:$8 sps:$4 sm:$0xff]  }
 0x1cf   : > { %6153 = vmatprep.subr.bf16.mxu0 %v8415_v19  ;;  %v8497_v19 = vld [vmem:[%s9696_s18 + $0x1140] ss:$8 sps:$4 sm:$0xff]  }
 0x1d1   : > { %5662 = vmatpush1.bf16.msra.mxu1 %v8410_v20  ;;  %v8502_v20 = vld [vmem:[%s9696_s18 + $0x554] ss:$8 sps:$4 sm:$0xff]  }
 0x1d2   : > { %6154 = vmatpush1.bf16.msra.mxu0 %v8413_v21  ;;  %5663 = vmatprep.subr.bf16.mxu1 %v8418_v22  ;;  %v8505_v21 = vld [vmem:[%s9696_s18 + $0x1154] ss:$8 sps:$4 sm:$0xff]   ;;  %v8500_v22 = vld [vmem:[%s9696_s18 + $0x550] ss:$8 sps:$4 sm:$0xff]  }
 0x1d3   : > { %6155 = vmatprep.subr.bf16.mxu0 %v8421_v23  ;;  %v8503_v23 = vld [vmem:[%s9696_s18 + $0x1150] ss:$8 sps:$4 sm:$0xff]  }
 0x1d5   : > { %5664 = vmatpush1.bf16.msra.mxu1 %v8416_v26  ;;  %v8508_v26 = vld [vmem:[%s9696_s18 + $0x564] ss:$8 sps:$4 sm:$0xff]  }
 0x1d6   : > { %6156 = vmatpush1.bf16.msra.mxu0 %v8419_v27  ;;  %5665 = vmatprep.subr.bf16.mxu1 %v8424_v28  ;;  %v8511_v27 = vld [vmem:[%s9696_s18 + $0x1164] ss:$8 sps:$4 sm:$0xff]   ;;  %v8506_v28 = vld [vmem:[%s9696_s18 + $0x560] ss:$8 sps:$4 sm:$0xff]  }
 0x1d7   : > { %6157 = vmatprep.subr.bf16.mxu0 %v8427_v29  ;;  %v8509_v29 = vld [vmem:[%s9696_s18 + $0x1160] ss:$8 sps:$4 sm:$0xff]  }
 0x1d9   : > { %5666 = vmatpush1.bf16.msra.mxu1 %v8422_v30  ;;  %v8514_v30 = vld [vmem:[%s9696_s18 + $0x574] ss:$8 sps:$4 sm:$0xff]  }
 0x1da   : > { %6158 = vmatpush1.bf16.msra.mxu0 %v8425_v31  ;;  %5667 = vmatprep.subr.bf16.mxu1 %v8430_v60  ;;  %v8517_v31 = vld [vmem:[%s9696_s18 + $0x1174] ss:$8 sps:$4 sm:$0xff]   ;;  %v8512_v60 = vld [vmem:[%s9696_s18 + $0x570] ss:$8 sps:$4 sm:$0xff]  }
 0x1db   : > { %6159 = vmatprep.subr.bf16.mxu0 %v8433_v0  ;;  %v8515_v0 = vld [vmem:[%s9696_s18 + $0x1170] ss:$8 sps:$4 sm:$0xff]  }
 0x1dd   : > { %5668 = vmatpush1.bf16.msra.mxu1 %v8428_v34  ;;  %v8520_v34 = vld [vmem:[%s9696_s18 + $0x584] ss:$8 sps:$4 sm:$0xff]  }
 0x1de   : > { %6160 = vmatpush1.bf16.msra.mxu0 %v8431_v35  ;;  %5669 = vmatprep.subr.bf16.mxu1 %v8436_v36  ;;  %v8523_v35 = vld [vmem:[%s9696_s18 + $0x1184] ss:$8 sps:$4 sm:$0xff]   ;;  %v8518_v36 = vld [vmem:[%s9696_s18 + $0x580] ss:$8 sps:$4 sm:$0xff]  }
 0x1df   : > { %6161 = vmatprep.subr.bf16.mxu0 %v8439_v37  ;;  %v8521_v37 = vld [vmem:[%s9696_s18 + $0x1180] ss:$8 sps:$4 sm:$0xff]  }
 0x1e1   : > { %5670 = vmatpush1.bf16.msra.mxu1 %v8434_v38  ;;  %v8526_v38 = vld [vmem:[%s9696_s18 + $0x594] ss:$8 sps:$4 sm:$0xff]  }
 0x1e2   : > { %6162 = vmatpush1.bf16.msra.mxu0 %v8437_v39  ;;  %5671 = vmatprep.subr.bf16.mxu1 %v8442_v40  ;;  %v8529_v39 = vld [vmem:[%s9696_s18 + $0x1194] ss:$8 sps:$4 sm:$0xff]   ;;  %v8524_v40 = vld [vmem:[%s9696_s18 + $0x590] ss:$8 sps:$4 sm:$0xff]  }
 0x1e3   : > { %6163 = vmatprep.subr.bf16.mxu0 %v8445_v41  ;;  %v8527_v41 = vld [vmem:[%s9696_s18 + $0x1190] ss:$8 sps:$4 sm:$0xff]  }
 0x1e5   : > { %5672 = vmatpush1.bf16.msra.mxu1 %v8440_v42  ;;  %v8532_v42 = vld [vmem:[%s9696_s18 + $0x5a4] ss:$8 sps:$4 sm:$0xff]  }
 0x1e6   : > { %6164 = vmatpush1.bf16.msra.mxu0 %v8443_v43  ;;  %5673 = vmatprep.subr.bf16.mxu1 %v8448_v25  ;;  %v8535_v43 = vld [vmem:[%s9696_s18 + $0x11a4] ss:$8 sps:$4 sm:$0xff]   ;;  %v8530_v25 = vld [vmem:[%s9696_s18 + $0x5a0] ss:$8 sps:$4 sm:$0xff]  }
 0x1e7   : > { %6165 = vmatprep.subr.bf16.mxu0 %v8451_v45  ;;  %v8533_v45 = vld [vmem:[%s9696_s18 + $0x11a0] ss:$8 sps:$4 sm:$0xff]  }
 0x1e9   : > { %5674 = vmatpush1.bf16.msra.mxu1 %v8446_v50  ;;  %v8538_v50 = vld [vmem:[%s9696_s18 + $0x5b4] ss:$8 sps:$4 sm:$0xff]  }
 0x1ea   : > { %6166 = vmatpush1.bf16.msra.mxu0 %v8449_v52  ;;  %5675 = vmatprep.subr.bf16.mxu1 %v8454_v32  ;;  %v8541_v52 = vld [vmem:[%s9696_s18 + $0x11b4] ss:$8 sps:$4 sm:$0xff]   ;;  %v8536_v32 = vld [vmem:[%s9696_s18 + $0x5b0] ss:$8 sps:$4 sm:$0xff]  }
 0x1eb   : > { %6167 = vmatprep.subr.bf16.mxu0 %v8457_v53  ;;  %v8539_v53 = vld [vmem:[%s9696_s18 + $0x11b0] ss:$8 sps:$4 sm:$0xff]  }
 0x1ed   : > { %5676 = vmatpush1.bf16.msra.mxu1 %v8452_v33  ;;  %v8544_v33 = vld [vmem:[%s9696_s18 + $0x5c4] ss:$8 sps:$4 sm:$0xff]  }
 0x1ee   : > { %6168 = vmatpush1.bf16.msra.mxu0 %v8455_v54  ;;  %5677 = vmatprep.subr.bf16.mxu1 %v8460_v44  ;;  %v8547_v54 = vld [vmem:[%s9696_s18 + $0x11c4] ss:$8 sps:$4 sm:$0xff]   ;;  %v8542_v44 = vld [vmem:[%s9696_s18 + $0x5c0] ss:$8 sps:$4 sm:$0xff]  }
 0x1ef   : > { %6169 = vmatprep.subr.bf16.mxu0 %v8463_v55  ;;  %v8545_v55 = vld [vmem:[%s9696_s18 + $0x11c0] ss:$8 sps:$4 sm:$0xff]  }
 0x1f1   : > { %5678 = vmatpush1.bf16.msra.mxu1 %v8458_v24  ;;  %v8550_v24 = vld [vmem:[%s9696_s18 + $0x5d4] ss:$8 sps:$4 sm:$0xff]  }
 0x1f2   : > { %6170 = vmatpush1.bf16.msra.mxu0 %v8461_v56  ;;  %5679 = vmatprep.subr.bf16.mxu1 %v8466_v58  ;;  %v8553_v56 = vld [vmem:[%s9696_s18 + $0x11d4] ss:$8 sps:$4 sm:$0xff]   ;;  %v8548_v58 = vld [vmem:[%s9696_s18 + $0x5d0] ss:$8 sps:$4 sm:$0xff]  }
 0x1f3   : > { %6171 = vmatprep.subr.bf16.mxu0 %v8469_v59  ;;  %v8551_v59 = vld [vmem:[%s9696_s18 + $0x11d0] ss:$8 sps:$4 sm:$0xff]  }
 0x1f5   : > { %5680 = vmatpush1.bf16.msra.mxu1 %v8464_v61  ;;  %v8556_v61 = vld [vmem:[%s9696_s18 + $0x5e4] ss:$8 sps:$4 sm:$0xff]  }
 0x1f6   : > { %6172 = vmatpush1.bf16.msra.mxu0 %v8467_v62  ;;  %5690 = vmatprep.subr.bf16.mxu1 %v8472_v46  ;;  %v8559_v62 = vld [vmem:[%s9696_s18 + $0x11e4] ss:$8 sps:$4 sm:$0xff]  }
 0x1f7   : > { %6182 = vmatprep.subr.bf16.mxu0 %v8475_v47  ;;  %v9170_v46 = vld [vmem:[%s9689_s11 + $0x8] sm:$0xff] }
 0x1f8   : > { %5682 = vmatmul.mubr.bf16.vlgmr.msra.gmra.mrb[0].mxu1 %v10122_v2  ;;  %v1257_v47 = vcombine.high %v9170_v46, %v9170_v46  ;;  %v8634_v46 = vld [vmem:[%s9696_s18 + $0x6b4] ss:$8 sps:$4 sm:$0xff]  }
 0x1f9   : > { %6174 = vmatmul.mubr.bf16.vlgmr.msra.gmra.mrb[0].mxu0 %v10126_v3  ;;  %5691 = vmatpush1.bf16.msra.mxu1 %v8470_v4  ;;  %v9171_v4 = vld [vmem:[%s9689_s11 + $0x20] sm:$0xff] }
 0x1fa   : > { %6183 = vmatpush1.bf16.msra.mxu0 %v8473_v5  ;;  %5692 = vmatprep.subr.bf16.mxu1 %v8478_v6  ;;  %v1404_v5 = vcombine.high %v9171_v4, %v9171_v4  ;;  %v8554_v6 = vld [vmem:[%s9696_s18 + $0x5e0] ss:$8 sps:$4 sm:$0xff]   ;;  %v8632_v4 = vld [vmem:[%s9696_s18 + $0x6b0] ss:$8 sps:$4 sm:$0xff]  }
 0x1fb   : > { %6184 = vmatprep.subr.bf16.mxu0 %v8481_v7  ;;  %5722 = vmatprep.mubr.bf16.mxu1 %v1304_v48  ;;  %v8557_v7 = vld [vmem:[%s9696_s18 + $0x11e0] ss:$8 sps:$4 sm:$0xff]   ;;  %v8562_v48 = vld [vmem:[%s9696_s18 + $0x5f4] ss:$8 sps:$4 sm:$0xff]  }
 0x1fc   : > { %6214 = vmatprep.mubr.bf16.mxu0 %v1451_v8  ;;  %v8565_v8 = vld [vmem:[%s9696_s18 + $0x11f4] ss:$8 sps:$4 sm:$0xff]  }
 0x1fd   : > { %5693 = vmatpush1.bf16.msra.mxu1 %v8476_v49  ;;  %v10197_v49 = vrot.slane %v1257_v47, %v9758_v57  ;;  %v8637_v47 = vld [vmem:[%s9696_s18 + $0x12b4] ss:$8 sps:$4 sm:$0xff]  }
 0x1fe   : > { %6185 = vmatpush1.bf16.msra.mxu0 %v8479_v9  ;;  %5694 = vmatprep.subr.bf16.mxu1 %v8484_v63  ;;  %v10200_v9 = vrot.slane %v1404_v5, %v9758_v57  ;;  %v8560_v63 = vld [vmem:[%s9696_s18 + $0x5f0] ss:$8 sps:$4 sm:$0xff]  }
 0x1ff   : > { %6186 = vmatprep.subr.bf16.mxu0 %v8487_v10  ;;  %v8563_v10 = vld [vmem:[%s9696_s18 + $0x11f0] ss:$8 sps:$4 sm:$0xff]  }
 0x200   : > { %v8635_v5 = vld [vmem:[%s9696_s18 + $0x12b0] ss:$8 sps:$4 sm:$0xff]  }
 0x201   : > { %5695 = vmatpush1.bf16.msra.mxu1 %v8482_v1  ;;  %v8568_v1 = vld [vmem:[%s9696_s18 + $0x604] ss:$8 sps:$4 sm:$0xff]  }
 0x202   : > { %6187 = vmatpush1.bf16.msra.mxu0 %v8485_v11  ;;  %5696 = vmatprep.subr.bf16.mxu1 %v8490_v12  ;;  %v8571_v11 = vld [vmem:[%s9696_s18 + $0x1204] ss:$8 sps:$4 sm:$0xff]   ;;  %v1273_v12 = vcombine.high %v10197_v49, %v10197_v49 }
 0x203   : > { %6188 = vmatprep.subr.bf16.mxu0 %v8493_v13  ;;  %v1420_v13 = vcombine.high %v10200_v9, %v10200_v9 }
 0x205   : > { %5697 = vmatpush1.bf16.msra.mxu1 %v8488_v14  ;;  %v1302_v14 = vcombine.high %v10122_v2, %v10122_v2  ;;  %v10222_v2 = vrot.slane %v1420_v13, %v9758_v57  ;;  %v8655_v13 = vld [vmem:[%s9696_s18 + $0x12e4] ss:$8 sps:$4 sm:$0xff]  }
 0x206   : > { %6189 = vmatpush1.bf16.msra.mxu0 %v8491_v15  ;;  %5698 = vmatprep.subr.bf16.mxu1 %v8496_v16  ;;  %v1449_v15 = vcombine.high %v10126_v3, %v10126_v3  ;;  %v8566_v16 = vld [vmem:[%s9696_s18 + $0x600] ss:$8 sps:$4 sm:$0xff]   ;;  %v8572_v3 = vld [vmem:[%s9696_s18 + $0x610] ss:$8 sps:$4 sm:$0xff]  }
 0x207   : > { %6190 = vmatprep.subr.bf16.mxu0 %v8499_v17  ;;  %v8569_v17 = vld [vmem:[%s9696_s18 + $0x1200] ss:$8 sps:$4 sm:$0xff]  }
 0x209   : > { %5699 = vmatpush1.bf16.msra.mxu1 %v8494_v18  ;;  %v8574_v18 = vld [vmem:[%s9696_s18 + $0x614] ss:$8 sps:$4 sm:$0xff]  }
 0x20a   : > { %6191 = vmatpush1.bf16.msra.mxu0 %v8497_v19  ;;  %5700 = vmatprep.subr.bf16.mxu1 %v8502_v20  ;;  %v8577_v19 = vld [vmem:[%s9696_s18 + $0x1214] ss:$8 sps:$4 sm:$0xff]   ;;  %v10219_v20 = vrot.slane %v1273_v12, %v9758_v57  ;;  %v8652_v12 = vld [vmem:[%s9696_s18 + $0x6e4] ss:$8 sps:$4 sm:$0xff]  }
 0x20b   : > { %6192 = vmatprep.subr.bf16.mxu0 %v8505_v21  ;;  %v8575_v21 = vld [vmem:[%s9696_s18 + $0x1210] ss:$8 sps:$4 sm:$0xff]  }
 0x20d   : > { %5701 = vmatpush1.bf16.msra.mxu1 %v8500_v22  ;;  %v8580_v22 = vld [vmem:[%s9696_s18 + $0x624] ss:$8 sps:$4 sm:$0xff]  }
 0x20e   : > { %6193 = vmatpush1.bf16.msra.mxu0 %v8503_v23  ;;  %5702 = vmatprep.subr.bf16.mxu1 %v8508_v26  ;;  %v8583_v23 = vld [vmem:[%s9696_s18 + $0x1224] ss:$8 sps:$4 sm:$0xff]   ;;  %v8578_v26 = vld [vmem:[%s9696_s18 + $0x620] ss:$8 sps:$4 sm:$0xff]  }
 0x20f   : > { %6194 = vmatprep.subr.bf16.mxu0 %v8511_v27  ;;  %v8581_v27 = vld [vmem:[%s9696_s18 + $0x1220] ss:$8 sps:$4 sm:$0xff]  }
 0x211   : > { %5703 = vmatpush1.bf16.msra.mxu1 %v8506_v28  ;;  %v8586_v28 = vld [vmem:[%s9696_s18 + $0x634] ss:$8 sps:$4 sm:$0xff]  }
 0x212   : > { %6195 = vmatpush1.bf16.msra.mxu0 %v8509_v29  ;;  %5704 = vmatprep.subr.bf16.mxu1 %v8514_v30  ;;  %v8589_v29 = vld [vmem:[%s9696_s18 + $0x1234] ss:$8 sps:$4 sm:$0xff]   ;;  %v8584_v30 = vld [vmem:[%s9696_s18 + $0x630] ss:$8 sps:$4 sm:$0xff]  }
 0x213   : > { %6196 = vmatprep.subr.bf16.mxu0 %v8517_v31  ;;  %v8587_v31 = vld [vmem:[%s9696_s18 + $0x1230] ss:$8 sps:$4 sm:$0xff]  }
 0x215   : > { %5705 = vmatpush1.bf16.msra.mxu1 %v8512_v60  ;;  %v8592_v60 = vld [vmem:[%s9696_s18 + $0x644] ss:$8 sps:$4 sm:$0xff]  }
 0x216   : > { %6197 = vmatpush1.bf16.msra.mxu0 %v8515_v0  ;;  %5706 = vmatprep.subr.bf16.mxu1 %v8520_v34  ;;  %v8595_v0 = vld [vmem:[%s9696_s18 + $0x1244] ss:$8 sps:$4 sm:$0xff]   ;;  %v8590_v34 = vld [vmem:[%s9696_s18 + $0x640] ss:$8 sps:$4 sm:$0xff]  }
 0x217   : > { %6198 = vmatprep.subr.bf16.mxu0 %v8523_v35  ;;  %v8593_v35 = vld [vmem:[%s9696_s18 + $0x1240] ss:$8 sps:$4 sm:$0xff]  }
 0x219   : > { %5707 = vmatpush1.bf16.msra.mxu1 %v8518_v36  ;;  %v8598_v36 = vld [vmem:[%s9696_s18 + $0x654] ss:$8 sps:$4 sm:$0xff]  }
 0x21a   : > { %6199 = vmatpush1.bf16.msra.mxu0 %v8521_v37  ;;  %5708 = vmatprep.subr.bf16.mxu1 %v8526_v38  ;;  %v8601_v37 = vld [vmem:[%s9696_s18 + $0x1254] ss:$8 sps:$4 sm:$0xff]   ;;  %v8596_v38 = vld [vmem:[%s9696_s18 + $0x650] ss:$8 sps:$4 sm:$0xff]  }
 0x21b   : > { %6200 = vmatprep.subr.bf16.mxu0 %v8529_v39  ;;  %v8599_v39 = vld [vmem:[%s9696_s18 + $0x1250] ss:$8 sps:$4 sm:$0xff]  }
 0x21d   : > { %5709 = vmatpush1.bf16.msra.mxu1 %v8524_v40  ;;  %v8604_v40 = vld [vmem:[%s9696_s18 + $0x664] ss:$8 sps:$4 sm:$0xff]  }
 0x21e   : > { %6201 = vmatpush1.bf16.msra.mxu0 %v8527_v41  ;;  %5710 = vmatprep.subr.bf16.mxu1 %v8532_v42  ;;  %v8607_v41 = vld [vmem:[%s9696_s18 + $0x1264] ss:$8 sps:$4 sm:$0xff]   ;;  %v8602_v42 = vld [vmem:[%s9696_s18 + $0x660] ss:$8 sps:$4 sm:$0xff]  }
 0x21f   : > { %6202 = vmatprep.subr.bf16.mxu0 %v8535_v43  ;;  %v8605_v43 = vld [vmem:[%s9696_s18 + $0x1260] ss:$8 sps:$4 sm:$0xff]  }
 0x221   : > { %5711 = vmatpush1.bf16.msra.mxu1 %v8530_v25  ;;  %v8610_v25 = vld [vmem:[%s9696_s18 + $0x674] ss:$8 sps:$4 sm:$0xff]  }
 0x222   : > { %6203 = vmatpush1.bf16.msra.mxu0 %v8533_v45  ;;  %5712 = vmatprep.subr.bf16.mxu1 %v8538_v50  ;;  %v8613_v45 = vld [vmem:[%s9696_s18 + $0x1274] ss:$8 sps:$4 sm:$0xff]   ;;  %v8608_v50 = vld [vmem:[%s9696_s18 + $0x670] ss:$8 sps:$4 sm:$0xff]  }
 0x223   : > { %6204 = vmatprep.subr.bf16.mxu0 %v8541_v52  ;;  %v8611_v52 = vld [vmem:[%s9696_s18 + $0x1270] ss:$8 sps:$4 sm:$0xff]  }
 0x225   : > { %5713 = vmatpush1.bf16.msra.mxu1 %v8536_v32  ;;  %v8616_v32 = vld [vmem:[%s9696_s18 + $0x684] ss:$8 sps:$4 sm:$0xff]  }
 0x226   : > { %6205 = vmatpush1.bf16.msra.mxu0 %v8539_v53  ;;  %5714 = vmatprep.subr.bf16.mxu1 %v8544_v33  ;;  %v8619_v53 = vld [vmem:[%s9696_s18 + $0x1284] ss:$8 sps:$4 sm:$0xff]   ;;  %v8614_v33 = vld [vmem:[%s9696_s18 + $0x680] ss:$8 sps:$4 sm:$0xff]  }
 0x227   : > { %6206 = vmatprep.subr.bf16.mxu0 %v8547_v54  ;;  %v8617_v54 = vld [vmem:[%s9696_s18 + $0x1280] ss:$8 sps:$4 sm:$0xff]  }
 0x229   : > { %5715 = vmatpush1.bf16.msra.mxu1 %v8542_v44  ;;  %v8622_v44 = vld [vmem:[%s9696_s18 + $0x694] ss:$8 sps:$4 sm:$0xff]  }
 0x22a   : > { %6207 = vmatpush1.bf16.msra.mxu0 %v8545_v55  ;;  %5716 = vmatprep.subr.bf16.mxu1 %v8550_v24  ;;  %v8625_v55 = vld [vmem:[%s9696_s18 + $0x1294] ss:$8 sps:$4 sm:$0xff]   ;;  %v8620_v24 = vld [vmem:[%s9696_s18 + $0x690] ss:$8 sps:$4 sm:$0xff]  }
 0x22b   : > { %6208 = vmatprep.subr.bf16.mxu0 %v8553_v56  ;;  %v8623_v56 = vld [vmem:[%s9696_s18 + $0x1290] ss:$8 sps:$4 sm:$0xff]  }
 0x22d   : > { %5717 = vmatpush1.bf16.msra.mxu1 %v8548_v58  ;;  %v8628_v58 = vld [vmem:[%s9696_s18 + $0x6a4] ss:$8 sps:$4 sm:$0xff]  }
 0x22e   : > { %6209 = vmatpush1.bf16.msra.mxu0 %v8551_v59  ;;  %5718 = vmatprep.subr.bf16.mxu1 %v8556_v61  ;;  %v8631_v59 = vld [vmem:[%s9696_s18 + $0x12a4] ss:$8 sps:$4 sm:$0xff]   ;;  %v8626_v61 = vld [vmem:[%s9696_s18 + $0x6a0] ss:$8 sps:$4 sm:$0xff]  }
 0x22f   : > { %6210 = vmatprep.subr.bf16.mxu0 %v8559_v62  ;;  %v8629_v62 = vld [vmem:[%s9696_s18 + $0x12a0] ss:$8 sps:$4 sm:$0xff]  }
 0x231   : > { %5719 = vmatpush1.bf16.msra.mxu1 %v8554_v6  ;;  %v8640_v6 = vld [vmem:[%s9696_s18 + $0x6c4] ss:$8 sps:$4 sm:$0xff]  }
 0x232   : > { %6211 = vmatpush1.bf16.msra.mxu0 %v8557_v7  ;;  %5720 = vmatprep.subr.bf16.mxu1 %v8562_v48  ;;  %v8643_v7 = vld [vmem:[%s9696_s18 + $0x12c4] ss:$8 sps:$4 sm:$0xff]   ;;  %v8638_v48 = vld [vmem:[%s9696_s18 + $0x6c0] ss:$8 sps:$4 sm:$0xff]  }
 0x233   : > { %6212 = vmatprep.subr.bf16.mxu0 %v8565_v8  ;;  %v8641_v8 = vld [vmem:[%s9696_s18 + $0x12c0] ss:$8 sps:$4 sm:$0xff]  }
 0x235   : > { %5721 = vmatpush1.bf16.msra.mxu1 %v8560_v63  ;;  %v8646_v63 = vld [vmem:[%s9696_s18 + $0x6d4] ss:$8 sps:$4 sm:$0xff]  }
 0x236   : > { %6213 = vmatpush1.bf16.msra.mxu0 %v8563_v10  ;;  %5731 = vmatprep.subr.bf16.mxu1 %v8568_v1  ;;  %v8649_v10 = vld [vmem:[%s9696_s18 + $0x12d4] ss:$8 sps:$4 sm:$0xff]   ;;  %v8644_v1 = vld [vmem:[%s9696_s18 + $0x6d0] ss:$8 sps:$4 sm:$0xff]  }
 0x237   : > { %6223 = vmatprep.subr.bf16.mxu0 %v8571_v11  ;;  %v8647_v11 = vld [vmem:[%s9696_s18 + $0x12d0] ss:$8 sps:$4 sm:$0xff]  }
 0x238   : > { %5723 = vmatmul.mubr.bf16.vlgmr.msra.gmra.mrb[0].mxu1 %v1302_v14  ;;  %v8650_v14 = vld [vmem:[%s9696_s18 + $0x6e0] ss:$8 sps:$4 sm:$0xff]  }
 0x239   : > { %6215 = vmatmul.mubr.bf16.vlgmr.msra.gmra.mrb[0].mxu0 %v1449_v15  ;;  %5732 = vmatpush1.bf16.msra.mxu1 %v8566_v16  ;;  %v8653_v15 = vld [vmem:[%s9696_s18 + $0x12e0] ss:$8 sps:$4 sm:$0xff]   ;;  %v8658_v16 = vld [vmem:[%s9696_s18 + $0x6f4] ss:$8 sps:$4 sm:$0xff]  }
 0x23a   : > { %6224 = vmatpush1.bf16.msra.mxu0 %v8569_v17  ;;  %5733 = vmatprep.subr.bf16.mxu1 %v8574_v18  ;;  %v8661_v17 = vld [vmem:[%s9696_s18 + $0x12f4] ss:$8 sps:$4 sm:$0xff]   ;;  %v8656_v18 = vld [vmem:[%s9696_s18 + $0x6f0] ss:$8 sps:$4 sm:$0xff]  }
 0x23b   : > { %6225 = vmatprep.subr.bf16.mxu0 %v8577_v19  ;;  %5763 = vmatprep.mubr.bf16.mxu1 %v10219_v20  ;;  %v8659_v19 = vld [vmem:[%s9696_s18 + $0x12f0] ss:$8 sps:$4 sm:$0xff]  }
 0x23c   : > { %6255 = vmatprep.mubr.bf16.mxu0 %v10222_v2 }
 0x23d   : > { %5734 = vmatpush1.bf16.msra.mxu1 %v8572_v3  ;;  %v8665_v3 = vld [vmem:[%s9696_s18 + $0x704] ss:$8 sps:$4 sm:$0xff]  }
 0x23e   : > { %6226 = vmatpush1.bf16.msra.mxu0 %v8575_v21  ;;  %5735 = vmatprep.subr.bf16.mxu1 %v8580_v22  ;;  %v8669_v21 = vld [vmem:[%s9696_s18 + $0x1304] ss:$8 sps:$4 sm:$0xff]   ;;  %v10288_v22 = vrot.slane %v10197_v49, %v9758_v57  ;;  %v1305_v49 = vcombine.high %v10219_v20, %v10219_v20 }
 0x23f   : > { %6227 = vmatprep.subr.bf16.mxu0 %v8583_v23  ;;  %v10292_v23 = vrot.slane %v10200_v9, %v9758_v57  ;;  %v8670_v9 = vld [vmem:[%s9696_s18 + $0x710] ss:$8 sps:$4 sm:$0xff]   ;;  %v8678_v20 = vld [vmem:[%s9696_s18 + $0x724] ss:$8 sps:$4 sm:$0xff]  }
 0x241   : > { %5736 = vmatpush1.bf16.msra.mxu1 %v8578_v26  ;;  %v8663_v26 = vld [vmem:[%s9696_s18 + $0x700] ss:$8 sps:$4 sm:$0xff]  }
 0x242   : > { %6228 = vmatpush1.bf16.msra.mxu0 %v8581_v27  ;;  %5737 = vmatprep.subr.bf16.mxu1 %v8586_v28  ;;  %v8667_v27 = vld [vmem:[%s9696_s18 + $0x1300] ss:$8 sps:$4 sm:$0xff]   ;;  %v8672_v28 = vld [vmem:[%s9696_s18 + $0x714] ss:$8 sps:$4 sm:$0xff]  }
 0x243   : > { %6229 = vmatprep.subr.bf16.mxu0 %v8589_v29  ;;  %v8675_v29 = vld [vmem:[%s9696_s18 + $0x1314] ss:$8 sps:$4 sm:$0xff]  }
 0x245   : > { %5738 = vmatpush1.bf16.msra.mxu1 %v8584_v30  ;;  %v1452_v30 = vcombine.high %v10222_v2, %v10222_v2  ;;  %v8676_v2 = vld [vmem:[%s9696_s18 + $0x720] ss:$8 sps:$4 sm:$0xff]  }
 0x246   : > { %6230 = vmatpush1.bf16.msra.mxu0 %v8587_v31  ;;  %5739 = vmatprep.subr.bf16.mxu1 %v8592_v60  ;;  %v8673_v31 = vld [vmem:[%s9696_s18 + $0x1310] ss:$8 sps:$4 sm:$0xff]   ;;  %v8681_v60 = vld [vmem:[%s9696_s18 + $0x1324] ss:$8 sps:$4 sm:$0xff]  }
 0x247   : > { %6231 = vmatprep.subr.bf16.mxu0 %v8595_v0  ;;  %v8679_v0 = vld [vmem:[%s9696_s18 + $0x1320] ss:$8 sps:$4 sm:$0xff]  }
 0x249   : > { %5740 = vmatpush1.bf16.msra.mxu1 %v8590_v34  ;;  %v8684_v34 = vld [vmem:[%s9696_s18 + $0x734] ss:$8 sps:$4 sm:$0xff]  }
 0x24a   : > { %6232 = vmatpush1.bf16.msra.mxu0 %v8593_v35  ;;  %5741 = vmatprep.subr.bf16.mxu1 %v8598_v36  ;;  %v8687_v35 = vld [vmem:[%s9696_s18 + $0x1334] ss:$8 sps:$4 sm:$0xff]   ;;  %v8682_v36 = vld [vmem:[%s9696_s18 + $0x730] ss:$8 sps:$4 sm:$0xff]  }
 0x24b   : > { %6233 = vmatprep.subr.bf16.mxu0 %v8601_v37  ;;  %v8685_v37 = vld [vmem:[%s9696_s18 + $0x1330] ss:$8 sps:$4 sm:$0xff]  }
 0x24d   : > { %5742 = vmatpush1.bf16.msra.mxu1 %v8596_v38  ;;  %v8690_v38 = vld [vmem:[%s9696_s18 + $0x744] ss:$8 sps:$4 sm:$0xff]  }
 0x24e   : > { %6234 = vmatpush1.bf16.msra.mxu0 %v8599_v39  ;;  %5743 = vmatprep.subr.bf16.mxu1 %v8604_v40  ;;  %v8693_v39 = vld [vmem:[%s9696_s18 + $0x1344] ss:$8 sps:$4 sm:$0xff]   ;;  %v8688_v40 = vld [vmem:[%s9696_s18 + $0x740] ss:$8 sps:$4 sm:$0xff]  }
 0x24f   : > { %6235 = vmatprep.subr.bf16.mxu0 %v8607_v41  ;;  %v8691_v41 = vld [vmem:[%s9696_s18 + $0x1340] ss:$8 sps:$4 sm:$0xff]  }
 0x251   : > { %5744 = vmatpush1.bf16.msra.mxu1 %v8602_v42  ;;  %v8696_v42 = vld [vmem:[%s9696_s18 + $0x754] ss:$8 sps:$4 sm:$0xff]  }
 0x252   : > { %6236 = vmatpush1.bf16.msra.mxu0 %v8605_v43  ;;  %5745 = vmatprep.subr.bf16.mxu1 %v8610_v25  ;;  %v8699_v43 = vld [vmem:[%s9696_s18 + $0x1354] ss:$8 sps:$4 sm:$0xff]   ;;  %v8694_v25 = vld [vmem:[%s9696_s18 + $0x750] ss:$8 sps:$4 sm:$0xff]  }
 0x253   : > { %6237 = vmatprep.subr.bf16.mxu0 %v8613_v45  ;;  %v8697_v45 = vld [vmem:[%s9696_s18 + $0x1350] ss:$8 sps:$4 sm:$0xff]  }
 0x255   : > { %5746 = vmatpush1.bf16.msra.mxu1 %v8608_v50  ;;  %v8702_v50 = vld [vmem:[%s9696_s18 + $0x764] ss:$8 sps:$4 sm:$0xff]  }
 0x256   : > { %6238 = vmatpush1.bf16.msra.mxu0 %v8611_v52  ;;  %5747 = vmatprep.subr.bf16.mxu1 %v8616_v32  ;;  %v8705_v52 = vld [vmem:[%s9696_s18 + $0x1364] ss:$8 sps:$4 sm:$0xff]   ;;  %v8700_v32 = vld [vmem:[%s9696_s18 + $0x760] ss:$8 sps:$4 sm:$0xff]  }
 0x257   : > { %6239 = vmatprep.subr.bf16.mxu0 %v8619_v53  ;;  %v8703_v53 = vld [vmem:[%s9696_s18 + $0x1360] ss:$8 sps:$4 sm:$0xff]  }
 0x259   : > { %5748 = vmatpush1.bf16.msra.mxu1 %v8614_v33  ;;  %v8708_v33 = vld [vmem:[%s9696_s18 + $0x774] ss:$8 sps:$4 sm:$0xff]  }
 0x25a   : > { %6240 = vmatpush1.bf16.msra.mxu0 %v8617_v54  ;;  %5749 = vmatprep.subr.bf16.mxu1 %v8622_v44  ;;  %v8711_v54 = vld [vmem:[%s9696_s18 + $0x1374] ss:$8 sps:$4 sm:$0xff]   ;;  %v8706_v44 = vld [vmem:[%s9696_s18 + $0x770] ss:$8 sps:$4 sm:$0xff]  }
 0x25b   : > { %6241 = vmatprep.subr.bf16.mxu0 %v8625_v55  ;;  %v8709_v55 = vld [vmem:[%s9696_s18 + $0x1370] ss:$8 sps:$4 sm:$0xff]  }
 0x25d   : > { %5750 = vmatpush1.bf16.msra.mxu1 %v8620_v24  ;;  %v8714_v24 = vld [vmem:[%s9696_s18 + $0x784] ss:$8 sps:$4 sm:$0xff]  }
 0x25e   : > { %6242 = vmatpush1.bf16.msra.mxu0 %v8623_v56  ;;  %5751 = vmatprep.subr.bf16.mxu1 %v8628_v58  ;;  %v8717_v56 = vld [vmem:[%s9696_s18 + $0x1384] ss:$8 sps:$4 sm:$0xff]   ;;  %v8712_v58 = vld [vmem:[%s9696_s18 + $0x780] ss:$8 sps:$4 sm:$0xff]  }
 0x25f   : > { %6243 = vmatprep.subr.bf16.mxu0 %v8631_v59  ;;  %v8715_v59 = vld [vmem:[%s9696_s18 + $0x1380] ss:$8 sps:$4 sm:$0xff]  }
 0x261   : > { %5752 = vmatpush1.bf16.msra.mxu1 %v8626_v61  ;;  %v8720_v61 = vld [vmem:[%s9696_s18 + $0x794] ss:$8 sps:$4 sm:$0xff]  }
 0x262   : > { %6244 = vmatpush1.bf16.msra.mxu0 %v8629_v62  ;;  %5753 = vmatprep.subr.bf16.mxu1 %v8634_v46  ;;  %v8723_v62 = vld [vmem:[%s9696_s18 + $0x1394] ss:$8 sps:$4 sm:$0xff]   ;;  %v8718_v46 = vld [vmem:[%s9696_s18 + $0x790] ss:$8 sps:$4 sm:$0xff]  }
 0x263   : > { %6245 = vmatprep.subr.bf16.mxu0 %v8637_v47  ;;  %v8721_v47 = vld [vmem:[%s9696_s18 + $0x1390] ss:$8 sps:$4 sm:$0xff]  }
 0x265   : > { %5754 = vmatpush1.bf16.msra.mxu1 %v8632_v4  ;;  %v8726_v4 = vld [vmem:[%s9696_s18 + $0x7a4] ss:$8 sps:$4 sm:$0xff]  }
 0x266   : > { %6246 = vmatpush1.bf16.msra.mxu0 %v8635_v5  ;;  %5755 = vmatprep.subr.bf16.mxu1 %v8640_v6  ;;  %v8729_v5 = vld [vmem:[%s9696_s18 + $0x13a4] ss:$8 sps:$4 sm:$0xff]   ;;  %v8724_v6 = vld [vmem:[%s9696_s18 + $0x7a0] ss:$8 sps:$4 sm:$0xff]  }
 0x267   : > { %6247 = vmatprep.subr.bf16.mxu0 %v8643_v7  ;;  %v8727_v7 = vld [vmem:[%s9696_s18 + $0x13a0] ss:$8 sps:$4 sm:$0xff]  }
 0x269   : > { %5756 = vmatpush1.bf16.msra.mxu1 %v8638_v48  ;;  %v8732_v48 = vld [vmem:[%s9696_s18 + $0x7b4] ss:$8 sps:$4 sm:$0xff]  }
 0x26a   : > { %6248 = vmatpush1.bf16.msra.mxu0 %v8641_v8  ;;  %5757 = vmatprep.subr.bf16.mxu1 %v8646_v63  ;;  %v8735_v8 = vld [vmem:[%s9696_s18 + $0x13b4] ss:$8 sps:$4 sm:$0xff]   ;;  %v8730_v63 = vld [vmem:[%s9696_s18 + $0x7b0] ss:$8 sps:$4 sm:$0xff]  }
 0x26b   : > { %6249 = vmatprep.subr.bf16.mxu0 %v8649_v10  ;;  %v8733_v10 = vld [vmem:[%s9696_s18 + $0x13b0] ss:$8 sps:$4 sm:$0xff]  }
 0x26d   : > { %5758 = vmatpush1.bf16.msra.mxu1 %v8644_v1  ;;  %v8738_v1 = vld [vmem:[%s9696_s18 + $0x7c4] ss:$8 sps:$4 sm:$0xff]  }
 0x26e   : > { %6250 = vmatpush1.bf16.msra.mxu0 %v8647_v11  ;;  %5759 = vmatprep.subr.bf16.mxu1 %v8652_v12  ;;  %v8741_v11 = vld [vmem:[%s9696_s18 + $0x13c4] ss:$8 sps:$4 sm:$0xff]   ;;  %v8736_v12 = vld [vmem:[%s9696_s18 + $0x7c0] ss:$8 sps:$4 sm:$0xff]  }
 0x26f   : > { %6251 = vmatprep.subr.bf16.mxu0 %v8655_v13  ;;  %v8739_v13 = vld [vmem:[%s9696_s18 + $0x13c0] ss:$8 sps:$4 sm:$0xff]  }
 0x271   : > { %5760 = vmatpush1.bf16.msra.mxu1 %v8650_v14  ;;  %v8744_v14 = vld [vmem:[%s9696_s18 + $0x7d4] ss:$8 sps:$4 sm:$0xff]  }
 0x272   : > { %6252 = vmatpush1.bf16.msra.mxu0 %v8653_v15  ;;  %5761 = vmatprep.subr.bf16.mxu1 %v8658_v16  ;;  %v8747_v15 = vld [vmem:[%s9696_s18 + $0x13d4] ss:$8 sps:$4 sm:$0xff]   ;;  %v8742_v16 = vld [vmem:[%s9696_s18 + $0x7d0] ss:$8 sps:$4 sm:$0xff]  }
 0x273   : > { %6253 = vmatprep.subr.bf16.mxu0 %v8661_v17  ;;  %v8745_v17 = vld [vmem:[%s9696_s18 + $0x13d0] ss:$8 sps:$4 sm:$0xff]  }
 0x275   : > { %5762 = vmatpush1.bf16.msra.mxu1 %v8656_v18  ;;  %v8750_v18 = vld [vmem:[%s9696_s18 + $0x7e4] ss:$8 sps:$4 sm:$0xff]  }
 0x276   : > { %6254 = vmatpush1.bf16.msra.mxu0 %v8659_v19  ;;  %5772 = vmatprep.subr.bf16.mxu1 %v8665_v3  ;;  %v8753_v19 = vld [vmem:[%s9696_s18 + $0x13e4] ss:$8 sps:$4 sm:$0xff]  }
 0x277   : > { %6264 = vmatprep.subr.bf16.mxu0 %v8669_v21  ;;  %v10357_v3 = vld [vmem:[%s9689_s11 + $0x10] sm:$0xff]  ;;  %v10360_v21 = vld [vmem:[%s9689_s11 + $0x28] sm:$0xff] }
 0x278   : > { %5764 = vmatmul.mubr.bf16.vlgmr.msra.gmra.mrb[0].mxu1 %v10288_v22 }
 0x279   : > { %6256 = vmatmul.mubr.bf16.vlgmr.msra.gmra.mrb[0].mxu0 %v10292_v23  ;;  %5773 = vmatpush1.bf16.msra.mxu1 %v8663_v26  ;;  %v8748_v26 = vld [vmem:[%s9696_s18 + $0x7e0] ss:$8 sps:$4 sm:$0xff]  }
 0x27a   : > { %6265 = vmatpush1.bf16.msra.mxu0 %v8667_v27  ;;  %5774 = vmatprep.subr.bf16.mxu1 %v8672_v28  ;;  %v8751_v27 = vld [vmem:[%s9696_s18 + $0x13e0] ss:$8 sps:$4 sm:$0xff]   ;;  %v8756_v28 = vld [vmem:[%s9696_s18 + $0x7f4] ss:$8 sps:$4 sm:$0xff]  }
 0x27b   : > { %6266 = vmatprep.subr.bf16.mxu0 %v8675_v29  ;;  %5804 = vmatprep.mubr.bf16.mxu1 %v1305_v49  ;;  %v8759_v29 = vld [vmem:[%s9696_s18 + $0x13f4] ss:$8 sps:$4 sm:$0xff]   ;;  %v10368_v49 = vrot.slane %v10357_v3, %v9758_v57 }
 0x27c   : > { %6296 = vmatprep.mubr.bf16.mxu0 %v1452_v30  ;;  %v10372_v30 = vrot.slane %v10360_v21, %v9758_v57 }
 0x27d   : > { %5775 = vmatpush1.bf16.msra.mxu1 %v8670_v9  ;;  %v8754_v9 = vld [vmem:[%s9696_s18 + $0x7f0] ss:$8 sps:$4 sm:$0xff]  }
 0x27e   : > { %6267 = vmatpush1.bf16.msra.mxu0 %v8673_v31  ;;  %5776 = vmatprep.subr.bf16.mxu1 %v8678_v20  ;;  %v8757_v31 = vld [vmem:[%s9696_s18 + $0x13f0] ss:$8 sps:$4 sm:$0xff]   ;;  %v8762_v20 = vld [vmem:[%s9696_s18 + $0x804] ss:$8 sps:$4 sm:$0xff]  }
 0x27f   : > { %6268 = vmatprep.subr.bf16.mxu0 %v8681_v60  ;;  %v8765_v60 = vld [vmem:[%s9696_s18 + $0x1404] ss:$8 sps:$4 sm:$0xff]  }
 0x281   : > { %5777 = vmatpush1.bf16.msra.mxu1 %v8676_v2  ;;  %v1321_v2 = vcombine.high %v10368_v49, %v10368_v49 }
 0x282   : > { %6269 = vmatpush1.bf16.msra.mxu0 %v8679_v0  ;;  %5778 = vmatprep.subr.bf16.mxu1 %v8684_v34  ;;  %v1468_v0 = vcombine.high %v10372_v30, %v10372_v30  ;;  %v1303_v34 = vcombine.high %v10288_v22, %v10288_v22 }
 0x283   : > { %6270 = vmatprep.subr.bf16.mxu0 %v8687_v35  ;;  %v1450_v35 = vcombine.high %v10292_v23, %v10292_v23  ;;  %v8766_v23 = vld [vmem:[%s9696_s18 + $0x810] ss:$8 sps:$4 sm:$0xff]  }
 0x284   : > { %v10394_v22 = vrot.slane %v1468_v0, %v9758_v57  ;;  %v8841_v0 = vld [vmem:[%s9696_s18 + $0x14d0] ss:$8 sps:$4 sm:$0xff]  }
 0x285   : > { %5779 = vmatpush1.bf16.msra.mxu1 %v8682_v36  ;;  %v8760_v36 = vld [vmem:[%s9696_s18 + $0x800] ss:$8 sps:$4 sm:$0xff]  }
 0x286   : > { %6271 = vmatpush1.bf16.msra.mxu0 %v8685_v37  ;;  %5780 = vmatprep.subr.bf16.mxu1 %v8690_v38  ;;  %v8763_v37 = vld [vmem:[%s9696_s18 + $0x1400] ss:$8 sps:$4 sm:$0xff]   ;;  %v8768_v38 = vld [vmem:[%s9696_s18 + $0x814] ss:$8 sps:$4 sm:$0xff]  }
 0x287   : > { %6272 = vmatprep.subr.bf16.mxu0 %v8693_v39  ;;  %v8771_v39 = vld [vmem:[%s9696_s18 + $0x1414] ss:$8 sps:$4 sm:$0xff]  }
 0x289   : > { %5781 = vmatpush1.bf16.msra.mxu1 %v8688_v40  ;;  %v10391_v40 = vrot.slane %v1321_v2, %v9758_v57  ;;  %v8838_v2 = vld [vmem:[%s9696_s18 + $0x8d0] ss:$8 sps:$4 sm:$0xff]  }
 0x28a   : > { %6273 = vmatpush1.bf16.msra.mxu0 %v8691_v41  ;;  %5782 = vmatprep.subr.bf16.mxu1 %v8696_v42  ;;  %v8769_v41 = vld [vmem:[%s9696_s18 + $0x1410] ss:$8 sps:$4 sm:$0xff]   ;;  %v8774_v42 = vld [vmem:[%s9696_s18 + $0x824] ss:$8 sps:$4 sm:$0xff]  }
 0x28b   : > { %6274 = vmatprep.subr.bf16.mxu0 %v8699_v43  ;;  %v8777_v43 = vld [vmem:[%s9696_s18 + $0x1424] ss:$8 sps:$4 sm:$0xff]  }
 0x28d   : > { %5783 = vmatpush1.bf16.msra.mxu1 %v8694_v25  ;;  %v8772_v25 = vld [vmem:[%s9696_s18 + $0x820] ss:$8 sps:$4 sm:$0xff]  }
 0x28e   : > { %6275 = vmatpush1.bf16.msra.mxu0 %v8697_v45  ;;  %5784 = vmatprep.subr.bf16.mxu1 %v8702_v50  ;;  %v8775_v45 = vld [vmem:[%s9696_s18 + $0x1420] ss:$8 sps:$4 sm:$0xff]   ;;  %v8780_v50 = vld [vmem:[%s9696_s18 + $0x834] ss:$8 sps:$4 sm:$0xff]  }
 0x28f   : > { %6276 = vmatprep.subr.bf16.mxu0 %v8705_v52  ;;  %v8783_v52 = vld [vmem:[%s9696_s18 + $0x1434] ss:$8 sps:$4 sm:$0xff]  }
 0x291   : > { %5785 = vmatpush1.bf16.msra.mxu1 %v8700_v32  ;;  %v8778_v32 = vld [vmem:[%s9696_s18 + $0x830] ss:$8 sps:$4 sm:$0xff]  }
 0x292   : > { %6277 = vmatpush1.bf16.msra.mxu0 %v8703_v53  ;;  %5786 = vmatprep.subr.bf16.mxu1 %v8708_v33  ;;  %v8781_v53 = vld [vmem:[%s9696_s18 + $0x1430] ss:$8 sps:$4 sm:$0xff]   ;;  %v8786_v33 = vld [vmem:[%s9696_s18 + $0x844] ss:$8 sps:$4 sm:$0xff]  }
 0x293   : > { %6278 = vmatprep.subr.bf16.mxu0 %v8711_v54  ;;  %v8789_v54 = vld [vmem:[%s9696_s18 + $0x1444] ss:$8 sps:$4 sm:$0xff]  }
 0x295   : > { %5787 = vmatpush1.bf16.msra.mxu1 %v8706_v44  ;;  %v8784_v44 = vld [vmem:[%s9696_s18 + $0x840] ss:$8 sps:$4 sm:$0xff]  }
 0x296   : > { %6279 = vmatpush1.bf16.msra.mxu0 %v8709_v55  ;;  %5788 = vmatprep.subr.bf16.mxu1 %v8714_v24  ;;  %v8787_v55 = vld [vmem:[%s9696_s18 + $0x1440] ss:$8 sps:$4 sm:$0xff]   ;;  %v8792_v24 = vld [vmem:[%s9696_s18 + $0x854] ss:$8 sps:$4 sm:$0xff]  }
 0x297   : > { %6280 = vmatprep.subr.bf16.mxu0 %v8717_v56  ;;  %v8795_v56 = vld [vmem:[%s9696_s18 + $0x1454] ss:$8 sps:$4 sm:$0xff]  }
 0x299   : > { %5789 = vmatpush1.bf16.msra.mxu1 %v8712_v58  ;;  %v8790_v58 = vld [vmem:[%s9696_s18 + $0x850] ss:$8 sps:$4 sm:$0xff]  }
 0x29a   : > { %6281 = vmatpush1.bf16.msra.mxu0 %v8715_v59  ;;  %5790 = vmatprep.subr.bf16.mxu1 %v8720_v61  ;;  %v8793_v59 = vld [vmem:[%s9696_s18 + $0x1450] ss:$8 sps:$4 sm:$0xff]   ;;  %v8798_v61 = vld [vmem:[%s9696_s18 + $0x864] ss:$8 sps:$4 sm:$0xff]  }
 0x29b   : > { %6282 = vmatprep.subr.bf16.mxu0 %v8723_v62  ;;  %v8801_v62 = vld [vmem:[%s9696_s18 + $0x1464] ss:$8 sps:$4 sm:$0xff]  }
 0x29d   : > { %5791 = vmatpush1.bf16.msra.mxu1 %v8718_v46  ;;  %v8796_v46 = vld [vmem:[%s9696_s18 + $0x860] ss:$8 sps:$4 sm:$0xff]  }
 0x29e   : > { %6283 = vmatpush1.bf16.msra.mxu0 %v8721_v47  ;;  %5792 = vmatprep.subr.bf16.mxu1 %v8726_v4  ;;  %v8799_v47 = vld [vmem:[%s9696_s18 + $0x1460] ss:$8 sps:$4 sm:$0xff]   ;;  %v8804_v4 = vld [vmem:[%s9696_s18 + $0x874] ss:$8 sps:$4 sm:$0xff]  }
 0x29f   : > { %6284 = vmatprep.subr.bf16.mxu0 %v8729_v5  ;;  %v8807_v5 = vld [vmem:[%s9696_s18 + $0x1474] ss:$8 sps:$4 sm:$0xff]  }
 0x2a1   : > { %5793 = vmatpush1.bf16.msra.mxu1 %v8724_v6  ;;  %v8802_v6 = vld [vmem:[%s9696_s18 + $0x870] ss:$8 sps:$4 sm:$0xff]  }
 0x2a2   : > { %6285 = vmatpush1.bf16.msra.mxu0 %v8727_v7  ;;  %5794 = vmatprep.subr.bf16.mxu1 %v8732_v48  ;;  %v8805_v7 = vld [vmem:[%s9696_s18 + $0x1470] ss:$8 sps:$4 sm:$0xff]   ;;  %v8810_v48 = vld [vmem:[%s9696_s18 + $0x884] ss:$8 sps:$4 sm:$0xff]  }
 0x2a3   : > { %6286 = vmatprep.subr.bf16.mxu0 %v8735_v8  ;;  %v8813_v8 = vld [vmem:[%s9696_s18 + $0x1484] ss:$8 sps:$4 sm:$0xff]  }
 0x2a5   : > { %5795 = vmatpush1.bf16.msra.mxu1 %v8730_v63  ;;  %v8808_v63 = vld [vmem:[%s9696_s18 + $0x880] ss:$8 sps:$4 sm:$0xff]  }
 0x2a6   : > { %6287 = vmatpush1.bf16.msra.mxu0 %v8733_v10  ;;  %5796 = vmatprep.subr.bf16.mxu1 %v8738_v1  ;;  %v8811_v10 = vld [vmem:[%s9696_s18 + $0x1480] ss:$8 sps:$4 sm:$0xff]   ;;  %v8816_v1 = vld [vmem:[%s9696_s18 + $0x894] ss:$8 sps:$4 sm:$0xff]  }
 0x2a7   : > { %6288 = vmatprep.subr.bf16.mxu0 %v8741_v11  ;;  %v8819_v11 = vld [vmem:[%s9696_s18 + $0x1494] ss:$8 sps:$4 sm:$0xff]  }
 0x2a9   : > { %5797 = vmatpush1.bf16.msra.mxu1 %v8736_v12  ;;  %v8814_v12 = vld [vmem:[%s9696_s18 + $0x890] ss:$8 sps:$4 sm:$0xff]  }
 0x2aa   : > { %6289 = vmatpush1.bf16.msra.mxu0 %v8739_v13  ;;  %5798 = vmatprep.subr.bf16.mxu1 %v8744_v14  ;;  %v8817_v13 = vld [vmem:[%s9696_s18 + $0x1490] ss:$8 sps:$4 sm:$0xff]   ;;  %v8822_v14 = vld [vmem:[%s9696_s18 + $0x8a4] ss:$8 sps:$4 sm:$0xff]  }
 0x2ab   : > { %6290 = vmatprep.subr.bf16.mxu0 %v8747_v15  ;;  %v8825_v15 = vld [vmem:[%s9696_s18 + $0x14a4] ss:$8 sps:$4 sm:$0xff]  }
 0x2ad   : > { %5799 = vmatpush1.bf16.msra.mxu1 %v8742_v16  ;;  %v8820_v16 = vld [vmem:[%s9696_s18 + $0x8a0] ss:$8 sps:$4 sm:$0xff]  }
 0x2ae   : > { %6291 = vmatpush1.bf16.msra.mxu0 %v8745_v17  ;;  %5800 = vmatprep.subr.bf16.mxu1 %v8750_v18  ;;  %v8823_v17 = vld [vmem:[%s9696_s18 + $0x14a0] ss:$8 sps:$4 sm:$0xff]   ;;  %v8828_v18 = vld [vmem:[%s9696_s18 + $0x8b4] ss:$8 sps:$4 sm:$0xff]  }
 0x2af   : > { %6292 = vmatprep.subr.bf16.mxu0 %v8753_v19  ;;  %v8831_v19 = vld [vmem:[%s9696_s18 + $0x14b4] ss:$8 sps:$4 sm:$0xff]  }
 0x2b1   : > { %5801 = vmatpush1.bf16.msra.mxu1 %v8748_v26  ;;  %v8826_v26 = vld [vmem:[%s9696_s18 + $0x8b0] ss:$8 sps:$4 sm:$0xff]  }
 0x2b2   : > { %6293 = vmatpush1.bf16.msra.mxu0 %v8751_v27  ;;  %5802 = vmatprep.subr.bf16.mxu1 %v8756_v28  ;;  %v8829_v27 = vld [vmem:[%s9696_s18 + $0x14b0] ss:$8 sps:$4 sm:$0xff]   ;;  %v8834_v28 = vld [vmem:[%s9696_s18 + $0x8c4] ss:$8 sps:$4 sm:$0xff]  }
 0x2b3   : > { %6294 = vmatprep.subr.bf16.mxu0 %v8759_v29  ;;  %v8837_v29 = vld [vmem:[%s9696_s18 + $0x14c4] ss:$8 sps:$4 sm:$0xff]  }
 0x2b5   : > { %5803 = vmatpush1.bf16.msra.mxu1 %v8754_v9  ;;  %v8832_v9 = vld [vmem:[%s9696_s18 + $0x8c0] ss:$8 sps:$4 sm:$0xff]  }
 0x2b6   : > { %6295 = vmatpush1.bf16.msra.mxu0 %v8757_v31  ;;  %5813 = vmatprep.subr.bf16.mxu1 %v8762_v20  ;;  %v8835_v31 = vld [vmem:[%s9696_s18 + $0x14c0] ss:$8 sps:$4 sm:$0xff]   ;;  %v8840_v20 = vld [vmem:[%s9696_s18 + $0x8d4] ss:$8 sps:$4 sm:$0xff]  }
 0x2b7   : > { %6305 = vmatprep.subr.bf16.mxu0 %v8765_v60  ;;  %v8843_v60 = vld [vmem:[%s9696_s18 + $0x14d4] ss:$8 sps:$4 sm:$0xff]  }
 0x2b8   : > { %5805 = vmatmul.mubr.bf16.vlgmr.msra.gmra.mrb[0].mxu1 %v1303_v34  ;;  %v8846_v34 = vld [vmem:[%s9696_s18 + $0x8e4] ss:$8 sps:$4 sm:$0xff]  }
 0x2b9   : > { %6297 = vmatmul.mubr.bf16.vlgmr.msra.gmra.mrb[0].mxu0 %v1450_v35  ;;  %5814 = vmatpush1.bf16.msra.mxu1 %v8760_v36  ;;  %v8849_v35 = vld [vmem:[%s9696_s18 + $0x14e4] ss:$8 sps:$4 sm:$0xff]   ;;  %v8844_v36 = vld [vmem:[%s9696_s18 + $0x8e0] ss:$8 sps:$4 sm:$0xff]  }
 0x2ba   : > { %6306 = vmatpush1.bf16.msra.mxu0 %v8763_v37  ;;  %5815 = vmatprep.subr.bf16.mxu1 %v8768_v38  ;;  %v8847_v37 = vld [vmem:[%s9696_s18 + $0x14e0] ss:$8 sps:$4 sm:$0xff]   ;;  %v8852_v38 = vld [vmem:[%s9696_s18 + $0x8f4] ss:$8 sps:$4 sm:$0xff]  }
 0x2bb   : > { %6307 = vmatprep.subr.bf16.mxu0 %v8771_v39  ;;  %5845 = vmatprep.mubr.bf16.mxu1 %v10391_v40  ;;  %v8855_v39 = vld [vmem:[%s9696_s18 + $0x14f4] ss:$8 sps:$4 sm:$0xff]  }
 0x2bc   : > { %6337 = vmatprep.mubr.bf16.mxu0 %v10394_v22 }
 0x2bd   : > { %5816 = vmatpush1.bf16.msra.mxu1 %v8766_v23  ;;  %v8850_v23 = vld [vmem:[%s9696_s18 + $0x8f0] ss:$8 sps:$4 sm:$0xff]  }
 0x2be   : > { %6308 = vmatpush1.bf16.msra.mxu0 %v8769_v41  ;;  %5817 = vmatprep.subr.bf16.mxu1 %v8774_v42  ;;  %v8853_v41 = vld [vmem:[%s9696_s18 + $0x14f0] ss:$8 sps:$4 sm:$0xff]   ;;  %v8858_v42 = vld [vmem:[%s9696_s18 + $0x904] ss:$8 sps:$4 sm:$0xff]  }
 0x2bf   : > { %6309 = vmatprep.subr.bf16.mxu0 %v8777_v43  ;;  %v8861_v43 = vld [vmem:[%s9696_s18 + $0x1504] ss:$8 sps:$4 sm:$0xff]  }
 0x2c1   : > { %5818 = vmatpush1.bf16.msra.mxu1 %v8772_v25  ;;  %v10460_v25 = vrot.slane %v10368_v49, %v9758_v57  ;;  %v1353_v49 = vcombine.high %v10391_v40, %v10391_v40  ;;  %v8870_v40 = vld [vmem:[%s9696_s18 + $0x924] ss:$8 sps:$4 sm:$0xff]  }
 0x2c2   : > { %6310 = vmatpush1.bf16.msra.mxu0 %v8775_v45  ;;  %5819 = vmatprep.subr.bf16.mxu1 %v8780_v50  ;;  %v10464_v45 = vrot.slane %v10372_v30, %v9758_v57  ;;  %v8856_v50 = vld [vmem:[%s9696_s18 + $0x900] ss:$8 sps:$4 sm:$0xff]   ;;  %v8862_v30 = vld [vmem:[%s9696_s18 + $0x910] ss:$8 sps:$4 sm:$0xff]  }
 0x2c3   : > { %6311 = vmatprep.subr.bf16.mxu0 %v8783_v52  ;;  %v8859_v52 = vld [vmem:[%s9696_s18 + $0x1500] ss:$8 sps:$4 sm:$0xff]  }
 0x2c5   : > { %5820 = vmatpush1.bf16.msra.mxu1 %v8778_v32  ;;  %v8864_v32 = vld [vmem:[%s9696_s18 + $0x914] ss:$8 sps:$4 sm:$0xff]  }
 0x2c6   : > { %6312 = vmatpush1.bf16.msra.mxu0 %v8781_v53  ;;  %5821 = vmatprep.subr.bf16.mxu1 %v8786_v33  ;;  %v8867_v53 = vld [vmem:[%s9696_s18 + $0x1514] ss:$8 sps:$4 sm:$0xff]   ;;  %v1500_v33 = vcombine.high %v10394_v22, %v10394_v22  ;;  %v8868_v22 = vld [vmem:[%s9696_s18 + $0x920] ss:$8 sps:$4 sm:$0xff]  }
 0x2c7   : > { %6313 = vmatprep.subr.bf16.mxu0 %v8789_v54  ;;  %v8865_v54 = vld [vmem:[%s9696_s18 + $0x1510] ss:$8 sps:$4 sm:$0xff]  }
 0x2c9   : > { %5822 = vmatpush1.bf16.msra.mxu1 %v8784_v44  ;;  %v8873_v44 = vld [vmem:[%s9696_s18 + $0x1524] ss:$8 sps:$4 sm:$0xff]  }
 0x2ca   : > { %6314 = vmatpush1.bf16.msra.mxu0 %v8787_v55  ;;  %5823 = vmatprep.subr.bf16.mxu1 %v8792_v24  ;;  %v8871_v55 = vld [vmem:[%s9696_s18 + $0x1520] ss:$8 sps:$4 sm:$0xff]   ;;  %v8876_v24 = vld [vmem:[%s9696_s18 + $0x934] ss:$8 sps:$4 sm:$0xff]  }
 0x2cb   : > { %6315 = vmatprep.subr.bf16.mxu0 %v8795_v56  ;;  %v8879_v56 = vld [vmem:[%s9696_s18 + $0x1534] ss:$8 sps:$4 sm:$0xff]  }
 0x2cd   : > { %5824 = vmatpush1.bf16.msra.mxu1 %v8790_v58  ;;  %v8874_v58 = vld [vmem:[%s9696_s18 + $0x930] ss:$8 sps:$4 sm:$0xff]  }
 0x2ce   : > { %6316 = vmatpush1.bf16.msra.mxu0 %v8793_v59  ;;  %5825 = vmatprep.subr.bf16.mxu1 %v8798_v61  ;;  %v8877_v59 = vld [vmem:[%s9696_s18 + $0x1530] ss:$8 sps:$4 sm:$0xff]   ;;  %v8882_v61 = vld [vmem:[%s9696_s18 + $0x944] ss:$8 sps:$4 sm:$0xff]  }
 0x2cf   : > { %6317 = vmatprep.subr.bf16.mxu0 %v8801_v62  ;;  %v8885_v62 = vld [vmem:[%s9696_s18 + $0x1544] ss:$8 sps:$4 sm:$0xff]  }
 0x2d1   : > { %5826 = vmatpush1.bf16.msra.mxu1 %v8796_v46  ;;  %v8880_v46 = vld [vmem:[%s9696_s18 + $0x940] ss:$8 sps:$4 sm:$0xff]  }
 0x2d2   : > { %6318 = vmatpush1.bf16.msra.mxu0 %v8799_v47  ;;  %5827 = vmatprep.subr.bf16.mxu1 %v8804_v4  ;;  %v8883_v47 = vld [vmem:[%s9696_s18 + $0x1540] ss:$8 sps:$4 sm:$0xff]   ;;  %v8888_v4 = vld [vmem:[%s9696_s18 + $0x954] ss:$8 sps:$4 sm:$0xff]  }
 0x2d3   : > { %6319 = vmatprep.subr.bf16.mxu0 %v8807_v5  ;;  %v8891_v5 = vld [vmem:[%s9696_s18 + $0x1554] ss:$8 sps:$4 sm:$0xff]  }
 0x2d5   : > { %5828 = vmatpush1.bf16.msra.mxu1 %v8802_v6  ;;  %v8886_v6 = vld [vmem:[%s9696_s18 + $0x950] ss:$8 sps:$4 sm:$0xff]  }
 0x2d6   : > { %6320 = vmatpush1.bf16.msra.mxu0 %v8805_v7  ;;  %5829 = vmatprep.subr.bf16.mxu1 %v8810_v48  ;;  %v8889_v7 = vld [vmem:[%s9696_s18 + $0x1550] ss:$8 sps:$4 sm:$0xff]   ;;  %v8894_v48 = vld [vmem:[%s9696_s18 + $0x964] ss:$8 sps:$4 sm:$0xff]  }
 0x2d7   : > { %6321 = vmatprep.subr.bf16.mxu0 %v8813_v8  ;;  %v8897_v8 = vld [vmem:[%s9696_s18 + $0x1564] ss:$8 sps:$4 sm:$0xff]  }
 0x2d9   : > { %5830 = vmatpush1.bf16.msra.mxu1 %v8808_v63  ;;  %v8892_v63 = vld [vmem:[%s9696_s18 + $0x960] ss:$8 sps:$4 sm:$0xff]  }
 0x2da   : > { %6322 = vmatpush1.bf16.msra.mxu0 %v8811_v10  ;;  %5831 = vmatprep.subr.bf16.mxu1 %v8816_v1  ;;  %v8895_v10 = vld [vmem:[%s9696_s18 + $0x1560] ss:$8 sps:$4 sm:$0xff]   ;;  %v8900_v1 = vld [vmem:[%s9696_s18 + $0x974] ss:$8 sps:$4 sm:$0xff]  }
 0x2db   : > { %6323 = vmatprep.subr.bf16.mxu0 %v8819_v11  ;;  %v8903_v11 = vld [vmem:[%s9696_s18 + $0x1574] ss:$8 sps:$4 sm:$0xff]  }
 0x2dd   : > { %5832 = vmatpush1.bf16.msra.mxu1 %v8814_v12  ;;  %v8898_v12 = vld [vmem:[%s9696_s18 + $0x970] ss:$8 sps:$4 sm:$0xff]  }
 0x2de   : > { %6324 = vmatpush1.bf16.msra.mxu0 %v8817_v13  ;;  %5833 = vmatprep.subr.bf16.mxu1 %v8822_v14  ;;  %v8901_v13 = vld [vmem:[%s9696_s18 + $0x1570] ss:$8 sps:$4 sm:$0xff]   ;;  %v8906_v14 = vld [vmem:[%s9696_s18 + $0x984] ss:$8 sps:$4 sm:$0xff]  }
 0x2df   : > { %6325 = vmatprep.subr.bf16.mxu0 %v8825_v15  ;;  %v8909_v15 = vld [vmem:[%s9696_s18 + $0x1584] ss:$8 sps:$4 sm:$0xff]  }
 0x2e1   : > { %5834 = vmatpush1.bf16.msra.mxu1 %v8820_v16  ;;  %v8904_v16 = vld [vmem:[%s9696_s18 + $0x980] ss:$8 sps:$4 sm:$0xff]  }
 0x2e2   : > { %6326 = vmatpush1.bf16.msra.mxu0 %v8823_v17  ;;  %5835 = vmatprep.subr.bf16.mxu1 %v8828_v18  ;;  %v8907_v17 = vld [vmem:[%s9696_s18 + $0x1580] ss:$8 sps:$4 sm:$0xff]   ;;  %v8912_v18 = vld [vmem:[%s9696_s18 + $0x994] ss:$8 sps:$4 sm:$0xff]  }
 0x2e3   : > { %6327 = vmatprep.subr.bf16.mxu0 %v8831_v19  ;;  %v8915_v19 = vld [vmem:[%s9696_s18 + $0x1594] ss:$8 sps:$4 sm:$0xff]  }
 0x2e5   : > { %5836 = vmatpush1.bf16.msra.mxu1 %v8826_v26  ;;  %v8910_v26 = vld [vmem:[%s9696_s18 + $0x990] ss:$8 sps:$4 sm:$0xff]  }
 0x2e6   : > { %6328 = vmatpush1.bf16.msra.mxu0 %v8829_v27  ;;  %5837 = vmatprep.subr.bf16.mxu1 %v8834_v28  ;;  %v8913_v27 = vld [vmem:[%s9696_s18 + $0x1590] ss:$8 sps:$4 sm:$0xff]   ;;  %v8918_v28 = vld [vmem:[%s9696_s18 + $0x9a4] ss:$8 sps:$4 sm:$0xff]  }
 0x2e7   : > { %6329 = vmatprep.subr.bf16.mxu0 %v8837_v29  ;;  %v8921_v29 = vld [vmem:[%s9696_s18 + $0x15a4] ss:$8 sps:$4 sm:$0xff]  }
 0x2e9   : > { %5838 = vmatpush1.bf16.msra.mxu1 %v8832_v9  ;;  %v8916_v9 = vld [vmem:[%s9696_s18 + $0x9a0] ss:$8 sps:$4 sm:$0xff]  }
 0x2ea   : > { %6330 = vmatpush1.bf16.msra.mxu0 %v8835_v31  ;;  %5839 = vmatprep.subr.bf16.mxu1 %v8840_v20  ;;  %v8919_v31 = vld [vmem:[%s9696_s18 + $0x15a0] ss:$8 sps:$4 sm:$0xff]   ;;  %v8924_v20 = vld [vmem:[%s9696_s18 + $0x9b4] ss:$8 sps:$4 sm:$0xff]  }
 0x2eb   : > { %6331 = vmatprep.subr.bf16.mxu0 %v8843_v60  ;;  %v8927_v60 = vld [vmem:[%s9696_s18 + $0x15b4] ss:$8 sps:$4 sm:$0xff]  }
 0x2ed   : > { %5840 = vmatpush1.bf16.msra.mxu1 %v8838_v2  ;;  %v8922_v2 = vld [vmem:[%s9696_s18 + $0x9b0] ss:$8 sps:$4 sm:$0xff]  }
 0x2ee   : > { %6332 = vmatpush1.bf16.msra.mxu0 %v8841_v0  ;;  %5841 = vmatprep.subr.bf16.mxu1 %v8846_v34  ;;  %v8925_v0 = vld [vmem:[%s9696_s18 + $0x15b0] ss:$8 sps:$4 sm:$0xff]   ;;  %v8930_v34 = vld [vmem:[%s9696_s18 + $0x9c4] ss:$8 sps:$4 sm:$0xff]  }
 0x2ef   : > { %6333 = vmatprep.subr.bf16.mxu0 %v8849_v35  ;;  %v8933_v35 = vld [vmem:[%s9696_s18 + $0x15c4] ss:$8 sps:$4 sm:$0xff]  }
 0x2f1   : > { %5842 = vmatpush1.bf16.msra.mxu1 %v8844_v36  ;;  %v8928_v36 = vld [vmem:[%s9696_s18 + $0x9c0] ss:$8 sps:$4 sm:$0xff]  }
 0x2f2   : > { %6334 = vmatpush1.bf16.msra.mxu0 %v8847_v37  ;;  %5843 = vmatprep.subr.bf16.mxu1 %v8852_v38  ;;  %v8931_v37 = vld [vmem:[%s9696_s18 + $0x15c0] ss:$8 sps:$4 sm:$0xff]   ;;  %v8936_v38 = vld [vmem:[%s9696_s18 + $0x9d4] ss:$8 sps:$4 sm:$0xff]  }
 0x2f3   : > { %6335 = vmatprep.subr.bf16.mxu0 %v8855_v39  ;;  %v8939_v39 = vld [vmem:[%s9696_s18 + $0x15d4] ss:$8 sps:$4 sm:$0xff]  }
 0x2f5   : > { %5844 = vmatpush1.bf16.msra.mxu1 %v8850_v23  ;;  %v8934_v23 = vld [vmem:[%s9696_s18 + $0x9d0] ss:$8 sps:$4 sm:$0xff]  }
 0x2f6   : > { %6336 = vmatpush1.bf16.msra.mxu0 %v8853_v41  ;;  %5854 = vmatprep.subr.bf16.mxu1 %v8858_v42  ;;  %v8937_v41 = vld [vmem:[%s9696_s18 + $0x15d0] ss:$8 sps:$4 sm:$0xff]   ;;  %v8942_v42 = vld [vmem:[%s9696_s18 + $0x9e4] ss:$8 sps:$4 sm:$0xff]  }
 0x2f7   : > { %6346 = vmatprep.subr.bf16.mxu0 %v8861_v43  ;;  %v8945_v43 = vld [vmem:[%s9696_s18 + $0x15e4] ss:$8 sps:$4 sm:$0xff]  }
 0x2f8   : > { %5846 = vmatmul.mubr.bf16.vlgmr.msra.gmra.mrb[0].mxu1 %v10460_v25 }
 0x2f9   : > { %6338 = vmatmul.mubr.bf16.vlgmr.msra.gmra.mrb[0].mxu0 %v10464_v45  ;;  %5855 = vmatpush1.bf16.msra.mxu1 %v8856_v50  ;;  %v1306_v50 = vcombine.high %v10357_v3, %v10357_v3  ;;  %v8946_v3 = vld [vmem:[%s9696_s18 + $0x9f0] ss:$8 sps:$4 sm:$0xff]  }
 0x2fa   : > { %6347 = vmatpush1.bf16.msra.mxu0 %v8859_v52  ;;  %5856 = vmatprep.subr.bf16.mxu1 %v8864_v32  ;;  %v1453_v52 = vcombine.high %v10360_v21, %v10360_v21  ;;  %v8940_v32 = vld [vmem:[%s9696_s18 + $0x9e0] ss:$8 sps:$4 sm:$0xff]   ;;  %v8949_v21 = vld [vmem:[%s9696_s18 + $0x15f0] ss:$8 sps:$4 sm:$0xff]  }
 0x2fb   : > { %6348 = vmatprep.subr.bf16.mxu0 %v8867_v53  ;;  %5886 = vmatprep.mubr.bf16.mxu1 %v1353_v49  ;;  %v8943_v53 = vld [vmem:[%s9696_s18 + $0x15e0] ss:$8 sps:$4 sm:$0xff]   ;;  %v8948_v49 = vld [vmem:[%s9696_s18 + $0x9f4] ss:$8 sps:$4 sm:$0xff]  }
 0x2fc   : > { %6378 = vmatprep.mubr.bf16.mxu0 %v1500_v33  ;;  %v8951_v33 = vld [vmem:[%s9696_s18 + $0x15f4] ss:$8 sps:$4 sm:$0xff]  }
 0x2fd   : > { %5857 = vmatpush1.bf16.msra.mxu1 %v8862_v30  ;;  %v10537_v30 = vrot.slane %v1306_v50, %v9758_v57  ;;  %v9018_v50 = vld [vmem:[%s9696_s18 + $0xab0] ss:$8 sps:$4 sm:$0xff]  }
 0x2fe   : > { %6349 = vmatpush1.bf16.msra.mxu0 %v8865_v54  ;;  %5858 = vmatprep.subr.bf16.mxu1 %v8870_v40  ;;  %v10540_v54 = vrot.slane %v1453_v52, %v9758_v57  ;;  %v8954_v40 = vld [vmem:[%s9696_s18 + $0xa04] ss:$8 sps:$4 sm:$0xff]   ;;  %v9021_v52 = vld [vmem:[%s9696_s18 + $0x16b0] ss:$8 sps:$4 sm:$0xff]  }
 0x2ff   : > { %6350 = vmatprep.subr.bf16.mxu0 %v8873_v44  ;;  %v8957_v44 = vld [vmem:[%s9696_s18 + $0x1604] ss:$8 sps:$4 sm:$0xff]  }
 0x301   : > { %5859 = vmatpush1.bf16.msra.mxu1 %v8868_v22  ;;  %v1322_v22 = vcombine.high %v10537_v30, %v10537_v30 }
 0x302   : > { %6351 = vmatpush1.bf16.msra.mxu0 %v8871_v55  ;;  %5860 = vmatprep.subr.bf16.mxu1 %v8876_v24  ;;  %v1469_v55 = vcombine.high %v10540_v54, %v10540_v54  ;;  %v1351_v24 = vcombine.high %v10460_v25, %v10460_v25 }
 0x303   : > { %6352 = vmatprep.subr.bf16.mxu0 %v8879_v56  ;;  %v1498_v56 = vcombine.high %v10464_v45, %v10464_v45  ;;  %v8958_v45 = vld [vmem:[%s9696_s18 + $0xa10] ss:$8 sps:$4 sm:$0xff]  }
 0x304   : > { %v10562_v25 = vrot.slane %v1469_v55, %v9758_v57  ;;  %v9041_v55 = vld [vmem:[%s9696_s18 + $0x16e4] ss:$8 sps:$4 sm:$0xff]  }
 0x305   : > { %5861 = vmatpush1.bf16.msra.mxu1 %v8874_v58  ;;  %v8952_v58 = vld [vmem:[%s9696_s18 + $0xa00] ss:$8 sps:$4 sm:$0xff]  }
 0x306   : > { %6353 = vmatpush1.bf16.msra.mxu0 %v8877_v59  ;;  %5862 = vmatprep.subr.bf16.mxu1 %v8882_v61  ;;  %v8955_v59 = vld [vmem:[%s9696_s18 + $0x1600] ss:$8 sps:$4 sm:$0xff]   ;;  %v8960_v61 = vld [vmem:[%s9696_s18 + $0xa14] ss:$8 sps:$4 sm:$0xff]  }
 0x307   : > { %6354 = vmatprep.subr.bf16.mxu0 %v8885_v62  ;;  %v8963_v62 = vld [vmem:[%s9696_s18 + $0x1614] ss:$8 sps:$4 sm:$0xff]  }
 0x309   : > { %5863 = vmatpush1.bf16.msra.mxu1 %v8880_v46  ;;  %v10559_v46 = vrot.slane %v1322_v22, %v9758_v57  ;;  %v9038_v22 = vld [vmem:[%s9696_s18 + $0xae4] ss:$8 sps:$4 sm:$0xff]  }
 0x30a   : > { %6355 = vmatpush1.bf16.msra.mxu0 %v8883_v47  ;;  %5864 = vmatprep.subr.bf16.mxu1 %v8888_v4  ;;  %v8961_v47 = vld [vmem:[%s9696_s18 + $0x1610] ss:$8 sps:$4 sm:$0xff]   ;;  %v8966_v4 = vld [vmem:[%s9696_s18 + $0xa24] ss:$8 sps:$4 sm:$0xff]  }
 0x30b   : > { %6356 = vmatprep.subr.bf16.mxu0 %v8891_v5  ;;  %v8969_v5 = vld [vmem:[%s9696_s18 + $0x1624] ss:$8 sps:$4 sm:$0xff]  }
 0x30d   : > { %5865 = vmatpush1.bf16.msra.mxu1 %v8886_v6  ;;  %v8964_v6 = vld [vmem:[%s9696_s18 + $0xa20] ss:$8 sps:$4 sm:$0xff]  }
 0x30e   : > { %6357 = vmatpush1.bf16.msra.mxu0 %v8889_v7  ;;  %5866 = vmatprep.subr.bf16.mxu1 %v8894_v48  ;;  %v8967_v7 = vld [vmem:[%s9696_s18 + $0x1620] ss:$8 sps:$4 sm:$0xff]   ;;  %v8972_v48 = vld [vmem:[%s9696_s18 + $0xa34] ss:$8 sps:$4 sm:$0xff]  }
 0x30f   : > { %6358 = vmatprep.subr.bf16.mxu0 %v8897_v8  ;;  %v8975_v8 = vld [vmem:[%s9696_s18 + $0x1634] ss:$8 sps:$4 sm:$0xff]  }
 0x311   : > { %5867 = vmatpush1.bf16.msra.mxu1 %v8892_v63  ;;  %v8970_v63 = vld [vmem:[%s9696_s18 + $0xa30] ss:$8 sps:$4 sm:$0xff]  }
 0x312   : > { %6359 = vmatpush1.bf16.msra.mxu0 %v8895_v10  ;;  %5868 = vmatprep.subr.bf16.mxu1 %v8900_v1  ;;  %v8973_v10 = vld [vmem:[%s9696_s18 + $0x1630] ss:$8 sps:$4 sm:$0xff]   ;;  %v8978_v1 = vld [vmem:[%s9696_s18 + $0xa44] ss:$8 sps:$4 sm:$0xff]  }
 0x313   : > { %6360 = vmatprep.subr.bf16.mxu0 %v8903_v11  ;;  %v8981_v11 = vld [vmem:[%s9696_s18 + $0x1644] ss:$8 sps:$4 sm:$0xff]  }
 0x315   : > { %5869 = vmatpush1.bf16.msra.mxu1 %v8898_v12  ;;  %v8976_v12 = vld [vmem:[%s9696_s18 + $0xa40] ss:$8 sps:$4 sm:$0xff]  }
 0x316   : > { %6361 = vmatpush1.bf16.msra.mxu0 %v8901_v13  ;;  %5870 = vmatprep.subr.bf16.mxu1 %v8906_v14  ;;  %v8979_v13 = vld [vmem:[%s9696_s18 + $0x1640] ss:$8 sps:$4 sm:$0xff]   ;;  %v8984_v14 = vld [vmem:[%s9696_s18 + $0xa54] ss:$8 sps:$4 sm:$0xff]  }
 0x317   : > { %6362 = vmatprep.subr.bf16.mxu0 %v8909_v15  ;;  %v8987_v15 = vld [vmem:[%s9696_s18 + $0x1654] ss:$8 sps:$4 sm:$0xff]  }
 0x319   : > { %5871 = vmatpush1.bf16.msra.mxu1 %v8904_v16  ;;  %v8982_v16 = vld [vmem:[%s9696_s18 + $0xa50] ss:$8 sps:$4 sm:$0xff]  }
 0x31a   : > { %6363 = vmatpush1.bf16.msra.mxu0 %v8907_v17  ;;  %5872 = vmatprep.subr.bf16.mxu1 %v8912_v18  ;;  %v8985_v17 = vld [vmem:[%s9696_s18 + $0x1650] ss:$8 sps:$4 sm:$0xff]   ;;  %v8990_v18 = vld [vmem:[%s9696_s18 + $0xa64] ss:$8 sps:$4 sm:$0xff]  }
 0x31b   : > { %6364 = vmatprep.subr.bf16.mxu0 %v8915_v19  ;;  %v8993_v19 = vld [vmem:[%s9696_s18 + $0x1664] ss:$8 sps:$4 sm:$0xff]  }
 0x31d   : > { %5873 = vmatpush1.bf16.msra.mxu1 %v8910_v26  ;;  %v8988_v26 = vld [vmem:[%s9696_s18 + $0xa60] ss:$8 sps:$4 sm:$0xff]  }
 0x31e   : > { %6365 = vmatpush1.bf16.msra.mxu0 %v8913_v27  ;;  %5874 = vmatprep.subr.bf16.mxu1 %v8918_v28  ;;  %v8991_v27 = vld [vmem:[%s9696_s18 + $0x1660] ss:$8 sps:$4 sm:$0xff]   ;;  %v8996_v28 = vld [vmem:[%s9696_s18 + $0xa74] ss:$8 sps:$4 sm:$0xff]  }
 0x31f   : > { %6366 = vmatprep.subr.bf16.mxu0 %v8921_v29  ;;  %v8999_v29 = vld [vmem:[%s9696_s18 + $0x1674] ss:$8 sps:$4 sm:$0xff]  }
 0x321   : > { %5875 = vmatpush1.bf16.msra.mxu1 %v8916_v9  ;;  %v8994_v9 = vld [vmem:[%s9696_s18 + $0xa70] ss:$8 sps:$4 sm:$0xff]  }
 0x322   : > { %6367 = vmatpush1.bf16.msra.mxu0 %v8919_v31  ;;  %5876 = vmatprep.subr.bf16.mxu1 %v8924_v20  ;;  %v8997_v31 = vld [vmem:[%s9696_s18 + $0x1670] ss:$8 sps:$4 sm:$0xff]   ;;  %v9002_v20 = vld [vmem:[%s9696_s18 + $0xa84] ss:$8 sps:$4 sm:$0xff]  }
 0x323   : > { %6368 = vmatprep.subr.bf16.mxu0 %v8927_v60  ;;  %v9005_v60 = vld [vmem:[%s9696_s18 + $0x1684] ss:$8 sps:$4 sm:$0xff]  }
 0x325   : > { %5877 = vmatpush1.bf16.msra.mxu1 %v8922_v2  ;;  %v9000_v2 = vld [vmem:[%s9696_s18 + $0xa80] ss:$8 sps:$4 sm:$0xff]  }
 0x326   : > { %6369 = vmatpush1.bf16.msra.mxu0 %v8925_v0  ;;  %5878 = vmatprep.subr.bf16.mxu1 %v8930_v34  ;;  %v9003_v0 = vld [vmem:[%s9696_s18 + $0x1680] ss:$8 sps:$4 sm:$0xff]   ;;  %v9008_v34 = vld [vmem:[%s9696_s18 + $0xa94] ss:$8 sps:$4 sm:$0xff]  }
 0x327   : > { %6370 = vmatprep.subr.bf16.mxu0 %v8933_v35  ;;  %v9011_v35 = vld [vmem:[%s9696_s18 + $0x1694] ss:$8 sps:$4 sm:$0xff]  }
 0x329   : > { %5879 = vmatpush1.bf16.msra.mxu1 %v8928_v36  ;;  %v9006_v36 = vld [vmem:[%s9696_s18 + $0xa90] ss:$8 sps:$4 sm:$0xff]  }
 0x32a   : > { %6371 = vmatpush1.bf16.msra.mxu0 %v8931_v37  ;;  %5880 = vmatprep.subr.bf16.mxu1 %v8936_v38  ;;  %v9009_v37 = vld [vmem:[%s9696_s18 + $0x1690] ss:$8 sps:$4 sm:$0xff]   ;;  %v9014_v38 = vld [vmem:[%s9696_s18 + $0xaa4] ss:$8 sps:$4 sm:$0xff]  }
 0x32b   : > { %6372 = vmatprep.subr.bf16.mxu0 %v8939_v39  ;;  %v9017_v39 = vld [vmem:[%s9696_s18 + $0x16a4] ss:$8 sps:$4 sm:$0xff]  }
 0x32d   : > { %5881 = vmatpush1.bf16.msra.mxu1 %v8934_v23  ;;  %v9012_v23 = vld [vmem:[%s9696_s18 + $0xaa0] ss:$8 sps:$4 sm:$0xff]  }
 0x32e   : > { %6373 = vmatpush1.bf16.msra.mxu0 %v8937_v41  ;;  %5882 = vmatprep.subr.bf16.mxu1 %v8942_v42  ;;  %v9015_v41 = vld [vmem:[%s9696_s18 + $0x16a0] ss:$8 sps:$4 sm:$0xff]   ;;  %v9020_v42 = vld [vmem:[%s9696_s18 + $0xab4] ss:$8 sps:$4 sm:$0xff]  }
 0x32f   : > { %6374 = vmatprep.subr.bf16.mxu0 %v8945_v43  ;;  %v9023_v43 = vld [vmem:[%s9696_s18 + $0x16b4] ss:$8 sps:$4 sm:$0xff]  }
 0x331   : > { %5883 = vmatpush1.bf16.msra.mxu1 %v8940_v32  ;;  %v9026_v32 = vld [vmem:[%s9696_s18 + $0xac4] ss:$8 sps:$4 sm:$0xff]  }
 0x332   : > { %6375 = vmatpush1.bf16.msra.mxu0 %v8943_v53  ;;  %5884 = vmatprep.subr.bf16.mxu1 %v8948_v49  ;;  %v9029_v53 = vld [vmem:[%s9696_s18 + $0x16c4] ss:$8 sps:$4 sm:$0xff]   ;;  %v9024_v49 = vld [vmem:[%s9696_s18 + $0xac0] ss:$8 sps:$4 sm:$0xff]  }
 0x333   : > { %6376 = vmatprep.subr.bf16.mxu0 %v8951_v33  ;;  %v9027_v33 = vld [vmem:[%s9696_s18 + $0x16c0] ss:$8 sps:$4 sm:$0xff]  }
 0x335   : > { %5885 = vmatpush1.bf16.msra.mxu1 %v8946_v3  ;;  %v9032_v3 = vld [vmem:[%s9696_s18 + $0xad4] ss:$8 sps:$4 sm:$0xff]  }
 0x336   : > { %6377 = vmatpush1.bf16.msra.mxu0 %v8949_v21  ;;  %5895 = vmatprep.subr.bf16.mxu1 %v8954_v40  ;;  %v9035_v21 = vld [vmem:[%s9696_s18 + $0x16d4] ss:$8 sps:$4 sm:$0xff]   ;;  %v9030_v40 = vld [vmem:[%s9696_s18 + $0xad0] ss:$8 sps:$4 sm:$0xff]  }
 0x337   : > { %6387 = vmatprep.subr.bf16.mxu0 %v8957_v44  ;;  %v9033_v44 = vld [vmem:[%s9696_s18 + $0x16d0] ss:$8 sps:$4 sm:$0xff]  }
 0x338   : > { %5887 = vmatmul.mubr.bf16.vlgmr.msra.gmra.mrb[0].mxu1 %v1351_v24  ;;  %v9036_v24 = vld [vmem:[%s9696_s18 + $0xae0] ss:$8 sps:$4 sm:$0xff]  }
 0x339   : > { %6379 = vmatmul.mubr.bf16.vlgmr.msra.gmra.mrb[0].mxu0 %v1498_v56  ;;  %5896 = vmatpush1.bf16.msra.mxu1 %v8952_v58  ;;  %v9039_v56 = vld [vmem:[%s9696_s18 + $0x16e0] ss:$8 sps:$4 sm:$0xff]   ;;  %v9044_v58 = vld [vmem:[%s9696_s18 + $0xaf4] ss:$8 sps:$4 sm:$0xff]  }
 0x33a   : > { %6388 = vmatpush1.bf16.msra.mxu0 %v8955_v59  ;;  %5897 = vmatprep.subr.bf16.mxu1 %v8960_v61  ;;  %v9047_v59 = vld [vmem:[%s9696_s18 + $0x16f4] ss:$8 sps:$4 sm:$0xff]   ;;  %v9042_v61 = vld [vmem:[%s9696_s18 + $0xaf0] ss:$8 sps:$4 sm:$0xff]  }
 0x33b   : > { %6389 = vmatprep.subr.bf16.mxu0 %v8963_v62  ;;  %5927 = vmatprep.mubr.bf16.mxu1 %v10559_v46  ;;  %v9045_v62 = vld [vmem:[%s9696_s18 + $0x16f0] ss:$8 sps:$4 sm:$0xff]  }
 0x33c   : > { %6419 = vmatprep.mubr.bf16.mxu0 %v10562_v25 }
 0x33d   : > { %5898 = vmatpush1.bf16.msra.mxu1 %v8958_v45  ;;  %v9051_v45 = vld [vmem:[%s9696_s18 + $0xb04] ss:$8 sps:$4 sm:$0xff]  }
 0x33e   : > { %6390 = vmatpush1.bf16.msra.mxu0 %v8961_v47  ;;  %5899 = vmatprep.subr.bf16.mxu1 %v8966_v4  ;;  %v9055_v47 = vld [vmem:[%s9696_s18 + $0x1704] ss:$8 sps:$4 sm:$0xff]   ;;  %v10628_v4 = vrot.slane %v10537_v30, %v9758_v57  ;;  %v1354_v30 = vcombine.high %v10559_v46, %v10559_v46 }
 0x33f   : > { %6391 = vmatprep.subr.bf16.mxu0 %v8969_v5  ;;  %v10632_v5 = vrot.slane %v10540_v54, %v9758_v57  ;;  %v9056_v54 = vld [vmem:[%s9696_s18 + $0xb10] ss:$8 sps:$4 sm:$0xff]   ;;  %v9064_v46 = vld [vmem:[%s9696_s18 + $0xb24] ss:$8 sps:$4 sm:$0xff]  }
 0x341   : > { %5900 = vmatpush1.bf16.msra.mxu1 %v8964_v6  ;;  %v9049_v6 = vld [vmem:[%s9696_s18 + $0xb00] ss:$8 sps:$4 sm:$0xff]  }
 0x342   : > { %6392 = vmatpush1.bf16.msra.mxu0 %v8967_v7  ;;  %5901 = vmatprep.subr.bf16.mxu1 %v8972_v48  ;;  %v9053_v7 = vld [vmem:[%s9696_s18 + $0x1700] ss:$8 sps:$4 sm:$0xff]   ;;  %v9058_v48 = vld [vmem:[%s9696_s18 + $0xb14] ss:$8 sps:$4 sm:$0xff]  }
 0x343   : > { %6393 = vmatprep.subr.bf16.mxu0 %v8975_v8  ;;  %v9061_v8 = vld [vmem:[%s9696_s18 + $0x1714] ss:$8 sps:$4 sm:$0xff]  }
 0x345   : > { %5902 = vmatpush1.bf16.msra.mxu1 %v8970_v63  ;;  %v1501_v63 = vcombine.high %v10562_v25, %v10562_v25  ;;  %v9062_v25 = vld [vmem:[%s9696_s18 + $0xb20] ss:$8 sps:$4 sm:$0xff]  }
 0x346   : > { %6394 = vmatpush1.bf16.msra.mxu0 %v8973_v10  ;;  %5903 = vmatprep.subr.bf16.mxu1 %v8978_v1  ;;  %v9059_v10 = vld [vmem:[%s9696_s18 + $0x1710] ss:$8 sps:$4 sm:$0xff]   ;;  %v9067_v1 = vld [vmem:[%s9696_s18 + $0x1724] ss:$8 sps:$4 sm:$0xff]  }
 0x347   : > { %6395 = vmatprep.subr.bf16.mxu0 %v8981_v11  ;;  %v9065_v11 = vld [vmem:[%s9696_s18 + $0x1720] ss:$8 sps:$4 sm:$0xff]  }
 0x349   : > { %5904 = vmatpush1.bf16.msra.mxu1 %v8976_v12  ;;  %v9070_v12 = vld [vmem:[%s9696_s18 + $0xb34] ss:$8 sps:$4 sm:$0xff]  }
 0x34a   : > { %6396 = vmatpush1.bf16.msra.mxu0 %v8979_v13  ;;  %5905 = vmatprep.subr.bf16.mxu1 %v8984_v14  ;;  %v9073_v13 = vld [vmem:[%s9696_s18 + $0x1734] ss:$8 sps:$4 sm:$0xff]   ;;  %v9068_v14 = vld [vmem:[%s9696_s18 + $0xb30] ss:$8 sps:$4 sm:$0xff]  }
 0x34b   : > { %6397 = vmatprep.subr.bf16.mxu0 %v8987_v15  ;;  %v9071_v15 = vld [vmem:[%s9696_s18 + $0x1730] ss:$8 sps:$4 sm:$0xff]  }
 0x34d   : > { %5906 = vmatpush1.bf16.msra.mxu1 %v8982_v16  ;;  %v9076_v16 = vld [vmem:[%s9696_s18 + $0xb44] ss:$8 sps:$4 sm:$0xff]  }
 0x34e   : > { %6398 = vmatpush1.bf16.msra.mxu0 %v8985_v17  ;;  %5907 = vmatprep.subr.bf16.mxu1 %v8990_v18  ;;  %v9079_v17 = vld [vmem:[%s9696_s18 + $0x1744] ss:$8 sps:$4 sm:$0xff]   ;;  %v9074_v18 = vld [vmem:[%s9696_s18 + $0xb40] ss:$8 sps:$4 sm:$0xff]  }
 0x34f   : > { %6399 = vmatprep.subr.bf16.mxu0 %v8993_v19  ;;  %v9077_v19 = vld [vmem:[%s9696_s18 + $0x1740] ss:$8 sps:$4 sm:$0xff]  }
 0x351   : > { %5908 = vmatpush1.bf16.msra.mxu1 %v8988_v26  ;;  %v9082_v26 = vld [vmem:[%s9696_s18 + $0xb54] ss:$8 sps:$4 sm:$0xff]  }
 0x352   : > { %6400 = vmatpush1.bf16.msra.mxu0 %v8991_v27  ;;  %5909 = vmatprep.subr.bf16.mxu1 %v8996_v28  ;;  %v9085_v27 = vld [vmem:[%s9696_s18 + $0x1754] ss:$8 sps:$4 sm:$0xff]   ;;  %v9080_v28 = vld [vmem:[%s9696_s18 + $0xb50] ss:$8 sps:$4 sm:$0xff]  }
 0x353   : > { %6401 = vmatprep.subr.bf16.mxu0 %v8999_v29  ;;  %v9083_v29 = vld [vmem:[%s9696_s18 + $0x1750] ss:$8 sps:$4 sm:$0xff]  }
 0x355   : > { %5910 = vmatpush1.bf16.msra.mxu1 %v8994_v9  ;;  %v9088_v9 = vld [vmem:[%s9696_s18 + $0xb64] ss:$8 sps:$4 sm:$0xff]  }
 0x356   : > { %6402 = vmatpush1.bf16.msra.mxu0 %v8997_v31  ;;  %5911 = vmatprep.subr.bf16.mxu1 %v9002_v20  ;;  %v9091_v31 = vld [vmem:[%s9696_s18 + $0x1764] ss:$8 sps:$4 sm:$0xff]   ;;  %v9086_v20 = vld [vmem:[%s9696_s18 + $0xb60] ss:$8 sps:$4 sm:$0xff]  }
 0x357   : > { %6403 = vmatprep.subr.bf16.mxu0 %v9005_v60  ;;  %v9089_v60 = vld [vmem:[%s9696_s18 + $0x1760] ss:$8 sps:$4 sm:$0xff]  }
 0x359   : > { %5912 = vmatpush1.bf16.msra.mxu1 %v9000_v2  ;;  %v9094_v2 = vld [vmem:[%s9696_s18 + $0xb74] ss:$8 sps:$4 sm:$0xff]  }
 0x35a   : > { %6404 = vmatpush1.bf16.msra.mxu0 %v9003_v0  ;;  %5913 = vmatprep.subr.bf16.mxu1 %v9008_v34  ;;  %v9097_v0 = vld [vmem:[%s9696_s18 + $0x1774] ss:$8 sps:$4 sm:$0xff]   ;;  %v9092_v34 = vld [vmem:[%s9696_s18 + $0xb70] ss:$8 sps:$4 sm:$0xff]  }
 0x35b   : > { %6405 = vmatprep.subr.bf16.mxu0 %v9011_v35  ;;  %v9095_v35 = vld [vmem:[%s9696_s18 + $0x1770] ss:$8 sps:$4 sm:$0xff]  }
 0x35d   : > { %5914 = vmatpush1.bf16.msra.mxu1 %v9006_v36  ;;  %v9100_v36 = vld [vmem:[%s9696_s18 + $0xb84] ss:$8 sps:$4 sm:$0xff]  }
 0x35e   : > { %6406 = vmatpush1.bf16.msra.mxu0 %v9009_v37  ;;  %5915 = vmatprep.subr.bf16.mxu1 %v9014_v38  ;;  %v9103_v37 = vld [vmem:[%s9696_s18 + $0x1784] ss:$8 sps:$4 sm:$0xff]   ;;  %v9098_v38 = vld [vmem:[%s9696_s18 + $0xb80] ss:$8 sps:$4 sm:$0xff]  }
 0x35f   : > { %6407 = vmatprep.subr.bf16.mxu0 %v9017_v39  ;;  %v9101_v39 = vld [vmem:[%s9696_s18 + $0x1780] ss:$8 sps:$4 sm:$0xff]  }
 0x361   : > { %5916 = vmatpush1.bf16.msra.mxu1 %v9012_v23  ;;  %v9106_v23 = vld [vmem:[%s9696_s18 + $0xb94] ss:$8 sps:$4 sm:$0xff]  }
 0x362   : > { %6408 = vmatpush1.bf16.msra.mxu0 %v9015_v41  ;;  %5917 = vmatprep.subr.bf16.mxu1 %v9020_v42  ;;  %v9109_v41 = vld [vmem:[%s9696_s18 + $0x1794] ss:$8 sps:$4 sm:$0xff]   ;;  %v9104_v42 = vld [vmem:[%s9696_s18 + $0xb90] ss:$8 sps:$4 sm:$0xff]  }
 0x363   : > { %6409 = vmatprep.subr.bf16.mxu0 %v9023_v43  ;;  %v9107_v43 = vld [vmem:[%s9696_s18 + $0x1790] ss:$8 sps:$4 sm:$0xff]  }
 0x365   : > { %5918 = vmatpush1.bf16.msra.mxu1 %v9018_v50  ;;  %v9112_v50 = vld [vmem:[%s9696_s18 + $0xba4] ss:$8 sps:$4 sm:$0xff]  }
 0x366   : > { %6410 = vmatpush1.bf16.msra.mxu0 %v9021_v52  ;;  %5919 = vmatprep.subr.bf16.mxu1 %v9026_v32  ;;  %v9115_v52 = vld [vmem:[%s9696_s18 + $0x17a4] ss:$8 sps:$4 sm:$0xff]   ;;  %v9110_v32 = vld [vmem:[%s9696_s18 + $0xba0] ss:$8 sps:$4 sm:$0xff]  }
 0x367   : > { %6411 = vmatprep.subr.bf16.mxu0 %v9029_v53  ;;  %v9113_v53 = vld [vmem:[%s9696_s18 + $0x17a0] ss:$8 sps:$4 sm:$0xff]  }
 0x369   : > { %5920 = vmatpush1.bf16.msra.mxu1 %v9024_v49  ;;  %v9118_v49 = vld [vmem:[%s9696_s18 + $0xbb4] ss:$8 sps:$4 sm:$0xff]  }
 0x36a   : > { %6412 = vmatpush1.bf16.msra.mxu0 %v9027_v33  ;;  %5921 = vmatprep.subr.bf16.mxu1 %v9032_v3  ;;  %v9121_v33 = vld [vmem:[%s9696_s18 + $0x17b4] ss:$8 sps:$4 sm:$0xff]   ;;  %v9116_v3 = vld [vmem:[%s9696_s18 + $0xbb0] ss:$8 sps:$4 sm:$0xff]  }
 0x36b   : > { %6413 = vmatprep.subr.bf16.mxu0 %v9035_v21  ;;  %v9119_v21 = vld [vmem:[%s9696_s18 + $0x17b0] ss:$8 sps:$4 sm:$0xff]  }
 0x36d   : > { %5922 = vmatpush1.bf16.msra.mxu1 %v9030_v40  ;;  %v9124_v40 = vld [vmem:[%s9696_s18 + $0xbc4] ss:$8 sps:$4 sm:$0xff]  }
 0x36e   : > { %6414 = vmatpush1.bf16.msra.mxu0 %v9033_v44  ;;  %5923 = vmatprep.subr.bf16.mxu1 %v9038_v22  ;;  %v9127_v44 = vld [vmem:[%s9696_s18 + $0x17c4] ss:$8 sps:$4 sm:$0xff]   ;;  %v9122_v22 = vld [vmem:[%s9696_s18 + $0xbc0] ss:$8 sps:$4 sm:$0xff]  }
 0x36f   : > { %6415 = vmatprep.subr.bf16.mxu0 %v9041_v55  ;;  %v9125_v55 = vld [vmem:[%s9696_s18 + $0x17c0] ss:$8 sps:$4 sm:$0xff]  }
 0x371   : > { %5924 = vmatpush1.bf16.msra.mxu1 %v9036_v24  ;;  %v9130_v24 = vld [vmem:[%s9696_s18 + $0xbd4] ss:$8 sps:$4 sm:$0xff]  }
 0x372   : > { %6416 = vmatpush1.bf16.msra.mxu0 %v9039_v56  ;;  %5925 = vmatprep.subr.bf16.mxu1 %v9044_v58  ;;  %v9133_v56 = vld [vmem:[%s9696_s18 + $0x17d4] ss:$8 sps:$4 sm:$0xff]   ;;  %v9128_v58 = vld [vmem:[%s9696_s18 + $0xbd0] ss:$8 sps:$4 sm:$0xff]  }
 0x373   : > { %6417 = vmatprep.subr.bf16.mxu0 %v9047_v59  ;;  %v9131_v59 = vld [vmem:[%s9696_s18 + $0x17d0] ss:$8 sps:$4 sm:$0xff]  }
 0x375   : > { %5926 = vmatpush1.bf16.msra.mxu1 %v9042_v61  ;;  %v9136_v61 = vld [vmem:[%s9696_s18 + $0xbe4] ss:$8 sps:$4 sm:$0xff]  }
 0x376   : > { %6418 = vmatpush1.bf16.msra.mxu0 %v9045_v62  ;;  %5936 = vmatprep.subr.bf16.mxu1 %v9051_v45  ;;  %v9139_v62 = vld [vmem:[%s9696_s18 + $0x17e4] ss:$8 sps:$4 sm:$0xff]   ;;  %v9134_v45 = vld [vmem:[%s9696_s18 + $0xbe0] ss:$8 sps:$4 sm:$0xff]  }
 0x377   : > { %6428 = vmatprep.subr.bf16.mxu0 %v9055_v47  ;;  %v9137_v47 = vld [vmem:[%s9696_s18 + $0x17e0] ss:$8 sps:$4 sm:$0xff]  }
 0x378   : > { %5928 = vmatmul.mubr.bf16.vlgmr.msra.gmra.mrb[0].mxu1 %v10628_v4 }
 0x379   : > { %6420 = vmatmul.mubr.bf16.vlgmr.msra.gmra.mrb[0].mxu0 %v10632_v5  ;;  %5937 = vmatpush1.bf16.msra.mxu1 %v9049_v6  ;;  %v9142_v6 = vld [vmem:[%s9696_s18 + $0xbf4] ss:$8 sps:$4 sm:$0xff]  }
 0x37a   : > { %6429 = vmatpush1.bf16.msra.mxu0 %v9053_v7  ;;  %5938 = vmatprep.subr.bf16.mxu1 %v9058_v48  ;;  %v9145_v7 = vld [vmem:[%s9696_s18 + $0x17f4] ss:$8 sps:$4 sm:$0xff]   ;;  %v9140_v48 = vld [vmem:[%s9696_s18 + $0xbf0] ss:$8 sps:$4 sm:$0xff]  }
 0x37b   : > { %6430 = vmatprep.subr.bf16.mxu0 %v9061_v8  ;;  %5968 = vmatprep.mubr.bf16.mxu1 %v1354_v30  ;;  %v9143_v8 = vld [vmem:[%s9696_s18 + $0x17f0] ss:$8 sps:$4 sm:$0xff]   ;;  %v9148_v30 = vld [vmem:[%s9696_s18 + $0x1804] ss:$8 sps:$4 sm:$0xff]  }
 0x37c   : > { %6460 = vmatprep.mubr.bf16.mxu0 %v1501_v63  ;;  %v1352_v63 = vcombine.high %v10628_v4, %v10628_v4  ;;  %v9154_v4 = vld [vmem:[%s9696_s18 + $0x1824] ss:$8 sps:$4 sm:$0xff]  }
 0x37d   : > { %5939 = vmatpush1.bf16.msra.mxu1 %v9056_v54  ;;  %v1499_v54 = vcombine.high %v10632_v5, %v10632_v5  ;;  %v9152_v5 = vld [vmem:[%s9696_s18 + $0x1820] ss:$8 sps:$4 sm:$0xff]  }
 0x37e   : > { %6431 = vmatpush1.bf16.msra.mxu0 %v9059_v10  ;;  %5940 = vmatprep.subr.bf16.mxu1 %v9064_v46  ;;  %v9146_v10 = vld [vmem:[%s9696_s18 + $0x1800] ss:$8 sps:$4 sm:$0xff]   ;;  %v9151_v46 = vld [vmem:[%s9696_s18 + $0x1814] ss:$8 sps:$4 sm:$0xff]  }
 0x37f   : > { %6432 = vmatprep.subr.bf16.mxu0 %v9067_v1  ;;  %v9149_v1 = vld [vmem:[%s9696_s18 + $0x1810] ss:$8 sps:$4 sm:$0xff]  }
 0x381   : > { %5941 = vmatpush1.bf16.msra.mxu1 %v9062_v25  ;;  %v9420_v25 = vmov 0  }
 0x382   : > { %6433 = vmatpush1.bf16.msra.mxu0 %v9065_v11  ;;  %5942 = vmatprep.subr.bf16.mxu1 %v9070_v12  ;;  %v9157_v11 = vld [vmem:[%s9696_s18 + $0x1834] ss:$8 sps:$4 sm:$0xff]   ;;  %v9155_v12 = vld [vmem:[%s9696_s18 + $0x1830] ss:$8 sps:$4 sm:$0xff]  }
 0x383   : > { %6434 = vmatprep.subr.bf16.mxu0 %v9073_v13  ;;  %v9160_v13 = vld [vmem:[%s9696_s18 + $0x1844] ss:$8 sps:$4 sm:$0xff]  }
 0x385   : > { %5943 = vmatpush1.bf16.msra.mxu1 %v9068_v14  ;;  %v9158_v14 = vld [vmem:[%s9696_s18 + $0x1840] ss:$8 sps:$4 sm:$0xff]  }
 0x386   : > { %6435 = vmatpush1.bf16.msra.mxu0 %v9071_v15  ;;  %5944 = vmatprep.subr.bf16.mxu1 %v9076_v16  ;;  %v9163_v15 = vld [vmem:[%s9696_s18 + $0x1854] ss:$8 sps:$4 sm:$0xff]   ;;  %v9161_v16 = vld [vmem:[%s9696_s18 + $0x1850] ss:$8 sps:$4 sm:$0xff]  }
 0x387   : > { %6436 = vmatprep.subr.bf16.mxu0 %v9079_v17  ;;  %v9166_v17 = vld [vmem:[%s9696_s18 + $0x1864] ss:$8 sps:$4 sm:$0xff]  }
 0x389   : > { %5945 = vmatpush1.bf16.msra.mxu1 %v9074_v18  ;;  %v9164_v18 = vld [vmem:[%s9696_s18 + $0x1860] ss:$8 sps:$4 sm:$0xff]  }
 0x38a   : > { %6437 = vmatpush1.bf16.msra.mxu0 %v9077_v19  ;;  %5946 = vmatprep.subr.bf16.mxu1 %v9082_v26  ;;  %v9169_v19 = vld [vmem:[%s9696_s18 + $0x1874] ss:$8 sps:$4 sm:$0xff]   ;;  %v9167_v26 = vld [vmem:[%s9696_s18 + $0x1870] ss:$8 sps:$4 sm:$0xff]  }
 0x38b   : > { %6438 = vmatprep.subr.bf16.mxu0 %v9085_v27  ;;  %v6880_v27 = vld.sshfl [vmem:[%s9689_s11 + $0x30] sm:$0x1 pattern:$0x75316420] }
 0x38d   : > { %5947 = vmatpush1.bf16.msra.mxu1 %v9080_v28  ;;  %v1515_v28 = vrot.slane %v6880_v27, %v9758_v57  ;;  %v6539_v27 = vld [vmem:[%s10894_s3 + $0x50] sm:$0xff] (!%p7665_p13) }
 0x38e   : > { %6439 = vmatpush1.bf16.msra.mxu0 %v9083_v29  ;;  %5948 = vmatprep.subr.bf16.mxu1 %v9088_v9 }
 0x38f   : > { %6440 = vmatprep.subr.bf16.mxu0 %v9091_v31 }
 0x391   : > { %5949 = vmatpush1.bf16.msra.mxu1 %v9086_v20 }
 0x392   : > { %6441 = vmatpush1.bf16.msra.mxu0 %v9089_v60  ;;  %5950 = vmatprep.subr.bf16.mxu1 %v9094_v2  ;;  %v9421_v60 = vmov 1983009808  }
 0x393   : > { %6442 = vmatprep.subr.bf16.mxu0 %v9097_v0  ;;  %v6514_v2 = vunpack.c.l.s4 %v9421_v60  ;;  %v6541_v60 = vld [vmem:[%s10894_s3 + $0x60] sm:$0xff] (!%p7665_p13) }
 0x395   : > { %5951 = vmatpush1.bf16.msra.mxu1 %v9092_v34  ;;  %v6515_v0 = vunpack.c.0.s8 %v6514_v2  ;;  %v6542_v2 = vld [vmem:[%s10894_s3 + $0x68] sm:$0xff] (!%p7665_p13) }
 0x396   : > { %6443 = vmatpush1.bf16.msra.mxu0 %v9095_v35  ;;  %5952 = vmatprep.subr.bf16.mxu1 %v9100_v36 }
 0x397   : > { %6444 = vmatprep.subr.bf16.mxu0 %v9103_v37 }
 0x399   : > { %5953 = vmatpush1.bf16.msra.mxu1 %v9098_v38  ;;  %v6518_v38 = vsub.s32 %v6515_v0, %v9750_v51  ;;  %v6529_v51 = vld [vmem:[%s10894_s3] sm:$0xff] (!%p7665_p13)  ;;  %v6559_v0 = vld [vmem:[%s10894_s3 + $0xf0] sm:$0xff] (!%p7665_p13) }
 0x39a   : > { %6445 = vmatpush1.bf16.msra.mxu0 %v9101_v39  ;;  %5954 = vmatprep.subr.bf16.mxu1 %v9106_v23 }
 0x39b   : > { %6446 = vmatprep.subr.bf16.mxu0 %v9109_v41 }
 0x39d   : > { %5955 = vmatpush1.bf16.msra.mxu1 %v9104_v42  ;;  %v409_v42 = vld [vmem:[#allocation2] sm:$0xf] }
 0x39e   : > { %6447 = vmatpush1.bf16.msra.mxu0 %v9107_v43  ;;  %5956 = vmatprep.subr.bf16.mxu1 %v9112_v50  ;;  %v6545_v50 = vld [vmem:[%s10894_s3 + $0x80] sm:$0xff] (!%p7665_p13) }
 0x39f   : > { %6448 = vmatprep.subr.bf16.mxu0 %v9115_v52  ;;  %v6546_v52 = vld [vmem:[%s10894_s3 + $0x88] sm:$0xff] (!%p7665_p13) }
 0x3a1   : > { %5957 = vmatpush1.bf16.msra.mxu1 %v9110_v32  ;;  %v7740_v32 = vpack.c.bf16 (!%p7665_p13), %v6546_v52, %v6545_v50  ;;  %v9424_v52 = vmov (!%p7665_p13), 0.0  }
 0x3a2   : > { %6449 = vmatpush1.bf16.msra.mxu0 %v9113_v53  ;;  %5958 = vmatprep.subr.bf16.mxu1 %v9118_v49  ;;  %v6530_v53 = vld [vmem:[%s10894_s3 + $0x8] sm:$0xff] (!%p7665_p13)  ;;  %v6547_v49 = vld [vmem:[%s10894_s3 + $0x90] sm:$0xff] (!%p7665_p13) }
 0x3a3   : > { %6450 = vmatprep.subr.bf16.mxu0 %v9121_v33  ;;  %v6548_v33 = vld [vmem:[%s10894_s3 + $0x98] sm:$0xff] (!%p7665_p13) }
 0x3a5   : > { %5959 = vmatpush1.bf16.msra.mxu1 %v9116_v3  ;;  %v9422_v3 = vmov (!%p7665_p13), 0.0|0.0  }
 0x3a6   : > { %6451 = vmatpush1.bf16.msra.mxu0 %v9119_v21  ;;  %5960 = vmatprep.subr.bf16.mxu1 %v9124_v40  ;;  %v7742_v21 = vpack.c.bf16 (!%p7665_p13), %v6530_v53, %v6529_v51  ;;  %v7744_v40 = vpack.c.bf16 (!%p7665_p13), %v6548_v33, %v6547_v49 }
 0x3a7   : > { %6452 = vmatprep.subr.bf16.mxu0 %v9127_v44  ;;  %v6531_v44 = vld [vmem:[%s10894_s3 + $0x10] sm:$0xff] (!%p7665_p13) }
 0x3a9   : > { %5961 = vmatpush1.bf16.msra.mxu1 %v9122_v22  ;;  %v6532_v22 = vld [vmem:[%s10894_s3 + $0x18] sm:$0xff] (!%p7665_p13) }
 0x3aa   : > { %6453 = vmatpush1.bf16.msra.mxu0 %v9125_v55  ;;  %5962 = vmatprep.subr.bf16.mxu1 %v9130_v24  ;;  %v6549_v55 = vld [vmem:[%s10894_s3 + $0xa0] sm:$0xff] (!%p7665_p13)  ;;  %v6550_v24 = vld [vmem:[%s10894_s3 + $0xa8] sm:$0xff] (!%p7665_p13) }
 0x3ab   : > { %6454 = vmatprep.subr.bf16.mxu0 %v9133_v56  ;;  %v7746_v56 = vpack.c.bf16 (!%p7665_p13), %v6532_v22, %v6531_v44 }
 0x3ad   : > { %5963 = vmatpush1.bf16.msra.mxu1 %v9128_v58  ;;  %v7748_v58 = vpack.c.bf16 (!%p7665_p13), %v6550_v24, %v6549_v55 }
 0x3ae   : > { %6455 = vmatpush1.bf16.msra.mxu0 %v9131_v59  ;;  %5964 = vmatprep.subr.bf16.mxu1 %v9136_v61  ;;  %v6533_v59 = vld [vmem:[%s10894_s3 + $0x20] sm:$0xff] (!%p7665_p13)  ;;  %v6534_v61 = vld [vmem:[%s10894_s3 + $0x28] sm:$0xff] (!%p7665_p13) }
 0x3af   : > { %6456 = vmatprep.subr.bf16.mxu0 %v9139_v62  ;;  %v6551_v62 = vld [vmem:[%s10894_s3 + $0xb0] sm:$0xff] (!%p7665_p13) }
 0x3b1   : > { %5965 = vmatpush1.bf16.msra.mxu1 %v9134_v45  ;;  %v6552_v45 = vld [vmem:[%s10894_s3 + $0xb8] sm:$0xff] (!%p7665_p13) }
 0x3b2   : > { %6457 = vmatpush1.bf16.msra.mxu0 %v9137_v47  ;;  %5966 = vmatprep.subr.bf16.mxu1 %v9142_v6  ;;  %v7750_v47 = vpack.c.bf16 (!%p7665_p13), %v6534_v61, %v6533_v59  ;;  %v7752_v6 = vpack.c.bf16 (!%p7665_p13), %v6552_v45, %v6551_v62 }
 0x3b3   : > { %6458 = vmatprep.subr.bf16.mxu0 %v9145_v7  ;;  %v6535_v7 = vld [vmem:[%s10894_s3 + $0x30] sm:$0xff] (!%p7665_p13) }
 0x3b5   : > { %5967 = vmatpush1.bf16.msra.mxu1 %v9140_v48  ;;  %v6536_v48 = vld [vmem:[%s10894_s3 + $0x38] sm:$0xff] (!%p7665_p13) }
 0x3b6   : > { %6459 = vmatpush1.bf16.msra.mxu0 %v9143_v8  ;;  %7772 = vmatprep.subr.bf16.mxu1 (!%p7665_p13), %v9422_v3  ;;  %v6553_v8 = vld [vmem:[%s10894_s3 + $0xc0] sm:$0xff] (!%p7665_p13) }
 0x3b7   : > { %6469 = vmatprep.subr.bf16.mxu0 %v9148_v30  ;;  %v6554_v30 = vld [vmem:[%s10894_s3 + $0xc8] sm:$0xff] (!%p7665_p13) }
 0x3b8   : > { %5969 = vmatmul.mubr.bf16.vlgmr.msra.gmra.mrb[0].mxu1 %v1352_v63 }
 0x3b9   : > { %6461 = vmatmul.mubr.bf16.vlgmr.msra.gmra.mrb[0].mxu0 %v1499_v54  ;;  %7737 = vmatprep.mubr.msk.f32.mxu1 (!%p7665_p13), %vm9423_vm0, %v9424_v52 }
 0x3ba   : > { %6470 = vmatpush1.bf16.msra.mxu0 %v9146_v10  ;;  %6501 = vmatprep.mubr.bf16.mxu0 %v9420_v25  ;;  %v6650_v10 = vld [vmem:[%s10896_s5] sm:$0xff] (!%p7665_p13)  ;;  %v7754_v25 = vpack.c.bf16 (!%p7665_p13), %v6536_v48, %v6535_v7 }
 0x3bb   : > { %6471 = vmatprep.subr.bf16.mxu0 %v9151_v46  ;;  %v6651_v46 = vld [vmem:[%s10896_s5 + $0x8] sm:$0xff] (!%p7665_p13) }
 0x3be   : > { %6472 = vmatpush1.bf16.msra.mxu0 %v9149_v1  ;;  %v6652_v1 = vld [vmem:[%s10896_s5 + $0x10] sm:$0xff] (!%p7665_p13) }
 0x3bf   : > { %6473 = vmatprep.subr.bf16.mxu0 %v9154_v4  ;;  %v7773_v4 = vpack.c.bf16 (!%p7665_p13), %v6651_v46, %v6650_v10 }
 0x3c1   : > { %7774 = vmatpush3.bf16.msra.mxu1 (!%p7665_p13), %v7773_v4 }
 0x3c2   : > { %6474 = vmatpush1.bf16.msra.mxu0 %v9152_v5  ;;  %v6653_v5 = vld [vmem:[%s10896_s5 + $0x18] sm:$0xff] (!%p7665_p13)  ;;  %7775 = vmatprep.subr.bf16.mxu1 (!%p7665_p13), %v9422_v3 }
 0x3c3   : > { %6475 = vmatprep.subr.bf16.mxu0 %v9157_v11  ;;  %v7756_v11 = vpack.c.bf16 (!%p7665_p13), %v6554_v30, %v6553_v8 }
 0x3c6   : > { %6476 = vmatpush1.bf16.msra.mxu0 %v9155_v12  ;;  %v6537_v12 = vld [vmem:[%s10894_s3 + $0x40] sm:$0xff] (!%p7665_p13) }
 0x3c7   : > { %6477 = vmatprep.subr.bf16.mxu0 %v9160_v13  ;;  %v6538_v13 = vld [vmem:[%s10894_s3 + $0x48] sm:$0xff] (!%p7665_p13) }
 0x3ca   : > { %6478 = vmatpush1.bf16.msra.mxu0 %v9158_v14 }
 0x3cb   : > { %6479 = vmatprep.subr.bf16.mxu0 %v9163_v15  ;;  %v6555_v15 = vld [vmem:[%s10894_s3 + $0xd0] sm:$0xff] (!%p7665_p13) }
 0x3ce   : > { %6480 = vmatpush1.bf16.msra.mxu0 %v9161_v16  ;;  %v6556_v16 = vld [vmem:[%s10894_s3 + $0xd8] sm:$0xff] (!%p7665_p13) }
 0x3cf   : > { %6481 = vmatprep.subr.bf16.mxu0 %v9166_v17  ;;  %v7776_v17 = vpack.c.bf16 (!%p7665_p13), %v6653_v5, %v6652_v1 }
 0x3d1   : > { %7777 = vmatpush3.bf16.msra.mxu1 (!%p7665_p13), %v7776_v17 }
 0x3d2   : > { %6482 = vmatpush1.bf16.msra.mxu0 %v9164_v18  ;;  %7778 = vmatprep.subr.bf16.mxu1 (!%p7665_p13), %v9422_v3 }
 0x3d3   : > { %6483 = vmatprep.subr.bf16.mxu0 %v9169_v19  ;;  %v7758_v19 = vpack.c.bf16 (!%p7665_p13), %v6538_v13, %v6537_v12 }
 0x3d6   : > { %6484 = vmatpush1.bf16.msra.mxu0 %v9167_v26  ;;  %v7760_v26 = vpack.c.bf16 (!%p7665_p13), %v6556_v16, %v6555_v15 }
 0x3d7   : > { %7741 = vmatprep.subr.bf16.mxu0 (!%p7665_p13), %v7740_v32  ;;  %v7666_v32 = vld [vmem:[#allocation9] ss:$0 sm:$0xff] (!%p7665_p13) }
 0x3d9   : > { %6502 = vmatmul.mubr.bf16.vlgmr.msra.gmra.mrb[0].mxu0 %v1515_v28  ;;  %v6540_v28 = vld [vmem:[%s10894_s3 + $0x58] sm:$0xff] (!%p7665_p13) }
 0x3da   : > { %7743 = vmatpush3.bf16.msra.mxu0 (!%p7665_p13), %v7742_v21  ;;  %v7667_v21 = vld [vmem:[#allocation11] ss:$0 sm:$0xff] (!%p7665_p13) }
 0x3db   : > { %7745 = vmatprep.subr.bf16.mxu0 (!%p7665_p13), %v7744_v40 }
 0x3de   : > { %7747 = vmatpush3.bf16.msra.mxu0 (!%p7665_p13), %v7746_v56 }
 0x3df   : > { %7749 = vmatprep.subr.bf16.mxu0 (!%p7665_p13), %v7748_v58 }
 0x3e2   : > { %7751 = vmatpush3.bf16.msra.mxu0 (!%p7665_p13), %v7750_v47 }
 0x3e3   : > { %7753 = vmatprep.subr.bf16.mxu0 (!%p7665_p13), %v7752_v6 }
 0x3e6   : > { %7755 = vmatpush3.bf16.msra.mxu0 (!%p7665_p13), %v7754_v25 }
 0x3e7   : > { %7757 = vmatprep.subr.bf16.mxu0 (!%p7665_p13), %v7756_v11 }
 0x3ea   : > { %7759 = vmatpush3.bf16.msra.mxu0 (!%p7665_p13), %v7758_v19 }
 0x3eb   : > { %7761 = vmatprep.subr.bf16.mxu0 (!%p7665_p13), %v7760_v26 }
 0x48b   : > { %v5970_v29 = vpop.f32.mrb[0].mxu1 }
 0x48c   : > { %v5972_v9 = vpop.f32.mrb[1].mxu1 }
 0x48d   : > { %v5974_v31 = vpop.f32.mrb[2].mxu1 }
 0x48e   : > { %v5975_v20 = vpop.f32.mrb[3].mxu1  ;;  %v7762_v31 = vpack.c.bf16 (!%p7665_p13), %v6540_v28, %v6539_v27 }
 0x490   : > { %7763 = vmatpush3.bf16.msra.mxu0 (!%p7665_p13), %v7762_v31 }
 0x4ac   : > { %v6503_v34 = vpop.f32.mrb[0].mxu0 }
 0x4ad   : > { %v7784_v35 = vadd.f32 %v6503_v34, %v5970_v29  ;;  %v6505_v36 = vpop.f32.mrb[1].mxu0  ;;  %v6557_v29 = vld [vmem:[%s10894_s3 + $0xe0] sm:$0xff] (!%p7665_p13)  ;;  %v6560_v34 = vld [vmem:[%s10894_s3 + $0xf8] sm:$0xff] (!%p7665_p13) }
 0x4ae   : > { %v7785_v37 = vadd.f32 %v6505_v36, %v5972_v9  ;;  %v6507_v39 = vpop.f32.mrb[2].mxu0  ;;  %v6558_v9 = vld [vmem:[%s10894_s3 + $0xe8] sm:$0xff] (!%p7665_p13)  ;;  %v7768_v36 = vpack.c.bf16 (!%p7665_p13), %v6560_v34, %v6559_v0 }
 0x4af   : > { %v6508_v23 = vpop.f32.mrb[3].mxu0  ;;  %v7764_v20 = vpack.c.bf16 (!%p7665_p13), %v6558_v9, %v6557_v29 }
 0x4b0   : > { %v6512_v41 = vcombine.low %v7784_v35, %v7785_v37  ;;  %6526 = sbr.rel (%p7665_p13) target bundleno = 1656 (0x678), region = 76  ;;  %v7766_v35 = vpack.c.bf16 (!%p7665_p13), %v6542_v2, %v6541_v60  ;;  %v6543_v37 = vld [vmem:[%s10894_s3 + $0x70] sm:$0xff] (!%p7665_p13)  ;;  %v6654_v23 = vld [vmem:[%s10896_s5 + $0x20] sm:$0xff] (!%p7665_p13) }
 0x4b1   : > { %7765 = vmatprep.subr.bf16.mxu0 (!%p7665_p13), %v7764_v20 }
 0x4b2   : > { %v6519_v57 = vrot.slane %v6512_v41, %v6518_v38  ;;  %7767 = vmatpush3.bf16.msra.mxu0 (!%p7665_p13), %v7766_v35  ;;  %v6655_v41 = vld [vmem:[%s10896_s5 + $0x28] sm:$0xff] (!%p7665_p13) }
 0x4b3   : > { %7769 = vmatprep.subr.bf16.mxu0 (!%p7665_p13), %v7768_v36 }
 0x4b4   : > { %v6521_v43 = vadd.f32 %v6519_v57, %v409_v42  ;;  %v7779_v42 = vpack.c.bf16 (!%p7665_p13), %v6655_v41, %v6654_v23  ;;  %v6656_v57 = vld [vmem:[%s10896_s5 + $0x30] sm:$0xff] (!%p7665_p13) }
 0x4b6   : > { %6522 = vst [vmem:[#allocation2] sm:$0xf] %v6521_v43  ;;  %7780 = vmatpush3.bf16.msra.mxu1 (!%p7665_p13), %v7779_v42  ;;  %v6657_v43 = vld [vmem:[%s10896_s5 + $0x38] sm:$0xff] (!%p7665_p13) }
 0x4b7   : > { %7781 = vmatprep.subr.bf16.mxu1 %v9422_v3  ;;  %v7782_v50 = vpack.c.bf16 %v6657_v43, %v6656_v57 }
 0x4ba   : > { %7783 = vmatpush3.bf16.msra.mxu1 %v7782_v50 }
 0x4bd   : > { %v6527_v63 = vld [vmem:[#allocation2] sm:$0xf] }
 0x4be   : > { %v6528_v54 = vmax.f32 %v6527_v63, 0.0 }
 0x4c0   : > { %v6575_v14 = vrot.slane %v6528_v54, %v6518_v38  ;;  %v6544_v38 = vld [vmem:[%s10894_s3 + $0x78] sm:$0xff] }
 0x4c1   : > { %v7770_v39 = vpack.c.bf16 %v6544_v38, %v6543_v37 }
 0x4c2   : > { %v6576_v18 = vcombine.high %v6575_v14, %v6575_v14 }
 0x4c3   : > { %7771 = vmatpush3.bf16.msra.mxu0 %v7770_v39 }
 0x4c4   : > { %6643 = vmatprep.mubr.f32.mxu0 %v6576_v18 }
 0x4c6   : > { %6644 = vmatmul.mubr.f32.vlgmr.msra.gmra.mrb[0].mxu0 %v6575_v14 }
 0x599   : > { %v7709_v51 = vpop.f32.mrb[0].mxu0 }
 0x59a   : > { %v7710_v53 = vpop.f32.mrb[1].mxu0 }
 0x59b   : > { %v7711_v49 = vadd.f32 %v7710_v53, %v7709_v51 }
 0x59d   : > { %v6646_v33 = vadd.f32 %v7711_v49, %v7666_v32 }
 0x59f   : > { %v6649_v3 = vmax.f32 %v6646_v33, 0.0 }
 0x5a1   : > { %7738 = vmatmul.mubr.msk.f32.vlgmr.msra.gmra.mrb[0].mxu1 %vm6665_vm1, %v6649_v3 }
 0x674   : > { %v6735_v40 = vpop.f32.mrb[0].mxu1 }
 0x675   : > { %v6736_v44 = vadd.f32 %v7667_v21, %v6735_v40  ;;  %v7739_v22 = vpop.f32.mrb[1].mxu1 }
 0x677   : > { %6740 = vst.msk [vmem:[#allocation12] sm:$0x3] %vm6739_vm2, %v6736_v44 }
 0x678 PF: > { %p7926_p2 = scmp.eq.s32.totalorder %s9495_s30, 1  ;;  %s9425_s22 = smov [#allocation12]  }
 0x679   : > { %s6750_s27 = sshll.u32 %s9425_s22, 4  ;;  %s6751_s27 = int_to_ptr.vmem [resolvable:$true] %s6750_s27 }
 0x67a   : > { %s9318_s14 = scalar_lea.vmem %s6751_s27, 32  ;;  %p9325_p8 = scmp.lt.s32.totalorder %s6751_s27, %s6751_s27 }
 0x67b   : > { %p9319_p3 = scmp.ne.s32.totalorder %s6751_s27, %s9318_s14  ;;  %p9326_p10 = scmp.lt.s32.totalorder %s9318_s14, %s9318_s14 }
 0x67d   : > { %p9320_p0 = pnand %p9319_p3, %p7926_p2  ;;  %p9327_p12 = por %p9326_p10, %p9325_p8 }
 0x67f   : > { %p9321_p6 = pneg %p9320_p0 }
 0x681   : > { %p9328_p9 = pnand %p9327_p12, %p9321_p6 }
 0x683   : > { %9331 = shalt.err (!%p9328_p9)
}
 0x684   : > { %s9332_s11 = scalar_lea.hbm %s10898_s7, 32 }
 0x685   : > { %p9333_p11 = scmp.ne.s32.totalorder %s10898_s7, %s9332_s11  ;;  %p9338_p5 = scmp.lt.u32.totalorder %s9332_s11, %s10898_s7 }
 0x687   : > { %p9334_p1 = pnand %p9333_p11, %p7926_p2 }
 0x689   : > { %p9335_p4 = pneg %p9334_p1 }
 0x68b   : > { %p9340_p7 = pnand %p9338_p5, %p9335_p4 }
 0x68d   : > { %9343 = shalt.err (!%p9340_p7)
}
 0x68e   : > { %7899 = dma.vmem_to_hbm [thread:$0]  (%p7926_p2), %s6751_s27, 32, %s10898_s7, [#allocation5]  }
 0x68f   : > { %9385 = dma.done.wait (%p7926_p2), [#allocation5], 32  }
 0x690   : > { %9387 = vsyncadd (%p7926_p2), [#allocation5], 4294967264 }
 0x691 PF: > { %s25_s29 = sadd.s32 1, %s9410_s29   ;;  %s10917_s24 = smov %s9394_s25 }
 0x692   : > { %p22_p13 = scmp.ge.s32.totalorder %s25_s29, 4   ;;  %s10918_s25 = smov %s9398_s26 }
 0x693   : > { %s10919_s26 = smov %s9615_s20  ;;  %s10920_s27 = smov %s9406_s28 }
 0x694   : > { %s10921_s28 = smov %s10923_s15  ;;  %24 = sbr.rel (!%p22_p13) target bundleno = 11 (0xb), region = 119 }
 0x69b   :  { %6763 = vsyncpa [#allocation4], 1 }
 0x69c   :  { %6765 = vsyncpa [#allocation4 + $0x1], 1 }
 0x69d   :  { %6766 = vsyncpa [#allocation7], 1 }
 0x69e   :  { %6768 = vsyncpa [#allocation7 + $0x1], 1 }
 0x69f   :  { %6769 = vsyncpa [#allocation10], 1 }
 0x6a0   :  { %6770 = vsyncpa [#allocation5], 1 }
 0x6a1   :  { %6772 = vsyncpa [#allocation5 + $0x1], 1 }

</bundles_post_ra>
